<compile_context>
chip_gen: v5e
topology: v5e:2x2
jax: 0.10.0
libtpu: 0.0.40
codegen_flags: <defaults>
</compile_context>

<pallas_src>
import numpy as np
import jax
import jax.numpy as jnp
from jax.experimental import pallas as pl
from jax.experimental.pallas import tpu as pltpu

LN_EPS = 1e-5     # nn.LayerNorm default eps
ASB_EPS = 1e-6    # epsilon in create_adaptive_high_freq_mask


def _round_up(v, m):
    return (v + m - 1) // m * m


def _gelu(x):
    # TODO(synk): torch.nn.GELU() uses exact erf; the tanh approximation (abs err ~1e-3)
    # keeps the transcendental on the EUP slot.  Constants are Python floats (weak
    # typed) so the computation stays in x.dtype (bf16 on the ICB path).
    c0 = 0.7978845608028654   # sqrt(2/pi)
    c1 = 0.044715
    return 0.5 * x * (1.0 + jnp.tanh(c0 * (x + c1 * x * x * x)))


def _layernorm(x, gamma, beta):
    mean = jnp.mean(x, axis=-1, keepdims=True)
    var = jnp.mean(jnp.square(x - mean), axis=-1, keepdims=True)
    return (x - mean) * jax.lax.rsqrt(var + LN_EPS) * gamma + beta


def _make_tslanet_kernel(n_seq, bb, n_freq, f_pad, h_pad, fwd_bf16):
    rows = bb * n_seq                       # flattened (batch-block, seq) rows per step
    kth = float((n_freq - 1) // 2 + 1)      # torch lower-median rank (1-indexed)

    def kernel(x_ref, cpar_ref, dfwd_ref, dinv_ref, wicb_ref, bicb_ref, w3_ref,
               keepa_ref, keepc_ref, o_ref):
        f32 = jnp.float32
        bf16 = jnp.bfloat16
        x = x_ref[...].astype(f32)                              # (rows, C)

        # packed per-channel parameters
        ln1_g = cpar_ref[0:1, :]
        ln1_b = cpar_ref[1:2, :]
        ln2_g = cpar_ref[2:3, :]
        ln2_b = cpar_ref[3:4, :]
        wr = cpar_ref[4:5, :]
        wi = cpar_ref[5:6, :]
        whr = cpar_ref[6:7, :]
        whi = cpar_ref[7:8, :]
        b3 = cpar_ref[8:9, :]
        thr = cpar_ref[9:10, 0:1]                               # (1, 1)

        # ----- norm1 -----
        xn = _layernorm(x, ln1_g, ln1_b)

        # ----- Adaptive Spectral Block -----
        # One shared DFT matrix per direction, applied per batch element (no BB^2
        # block-diagonal waste).  Padded frequency rows of dfwd are zero, so padded
        # bins carry zero energy and are excluded from the median via the iota masks.
        dfwd = dfwd_ref[...]                                    # (2*f_pad, n_seq)
        dinv = dinv_ref[...]                                    # (n_seq, 2*f_pad) bf16
        # hoisted validity masks (no div/mod; shared across the unrolled batch loop)
        col_ok = jax.lax.broadcasted_iota(jnp.int32, (1, f_pad), 1) < n_freq
        row_ok = jax.lax.broadcasted_iota(jnp.int32, (f_pad, 1), 0) < n_freq

        a_parts = []
        for bi in range(bb):                                    # static unroll
            xn_b = xn[bi * n_seq:(bi + 1) * n_seq, :]           # (n_seq, C), aligned
            if fwd_bf16:
                xf = jnp.dot(dfwd, xn_b.astype(bf16), preferred_element_type=f32)
            else:
                xf = jnp.dot(dfwd, xn_b, preferred_element_type=f32)
            xr = xf[:f_pad, :]                                  # (f_pad, C)
            xi = xf[f_pad:, :]

            # torch lower median of per-bin energy over the n_freq valid bins
            energy = jnp.sum(xr * xr + xi * xi, axis=-1, keepdims=True)   # (f_pad, 1)
            e_row = jnp.transpose(energy)                                  # (1, f_pad)
            counts = jnp.sum(
                jnp.where(col_ok & (e_row <= energy), 1.0, 0.0),
                axis=-1, keepdims=True)                                    # (f_pad, 1)
            cand = jnp.where(row_ok & (counts >= kth), energy, jnp.inf)
            median = jnp.min(jnp.transpose(cand), axis=-1, keepdims=True)  # (1, 1)
            mask = (energy / (median + ASB_EPS) > thr).astype(f32)         # (f_pad, 1)

            # fused adaptive weighting: x_fft * (w + mask * w_high)
            cr = wr + mask * whr                                           # (f_pad, C)
            ci = wi + mask * whi
            yr = xr * cr - xi * ci
            yi = xr * ci + xi * cr

            # irfft (norm='ortho'); imaginary DC/Nyquist columns of dinv are exactly 0.
            yf = jnp.concatenate([yr, yi], axis=0).astype(bf16)            # (2*f_pad, C)
            a_parts.append(jnp.dot(dinv, yf, preferred_element_type=f32))  # (n_seq, C)
        a = jnp.concatenate(a_parts, axis=0)                               # (rows, C)

        # ----- norm2 -----
        z = _layernorm(a, ln2_g, ln2_b)

        # ----- ICB -----
        # conv1 (k=1) + the 3 taps of conv2 (k=3, pad=1) fused into one bf16 matmul;
        # the +/-1 sequence shifts are sublane rolls (XLU) masked by precomputed
        # boundary-keep operands.
        u = (jnp.dot(z.astype(bf16), wicb_ref[...], preferred_element_type=f32)
             + bicb_ref[...])                                              # (rows, 4*h_pad)
        x1 = u[:, 0:h_pad]
        ua = u[:, h_pad:2 * h_pad]        # z @ w2[:, :, 0]  -> needs z[n-1]
        ub = u[:, 2 * h_pad:3 * h_pad]    # z @ w2[:, :, 1]  (conv2 bias folded in)
        uc = u[:, 3 * h_pad:4 * h_pad]    # z @ w2[:, :, 2]  -> needs z[n+1]
        ua = pltpu.roll(ua, shift=1, axis=0) * keepa_ref[...]
        uc = pltpu.roll(uc, shift=rows - 1, axis=0) * keepc_ref[...]
        x2 = ua + ub + uc

        x1b = x1.astype(bf16)
        x2b = x2.astype(bf16)
        mid = x1b * _gelu(x2b) + x2b * _gelu(x1b)                          # bf16
        icb = jnp.dot(mid, w3_ref[...], preferred_element_type=f32) + b3   # (rows, C)

        # ----- residual -----
        o_ref[...] = (x + icb).astype(o_ref.dtype)

    return kernel


def _choose_block_batch(b, n_seq, row_target=256, prefer_even_grid=True):
    """Largest divisor BB of b with BB*n_seq <= row_target.  With prefer_even_grid,
    prefer a BB that leaves an even number of grid steps (>= 2) so both v7x
    TensorCores get work; single-TC v5e/v6e callers can pass prefer_even_grid=False
    and a larger row_target to amortize per-step pipeline overhead."""
    divs = [d for d in range(1, b + 1) if b % d == 0 and d * n_seq <= row_target]
    if not divs:
        return 1
    if prefer_even_grid:
        even = [d for d in divs if (b // d) % 2 == 0]
        if even:
            return max(even)
    return max(divs)


def _dft_mats(n_seq, f_pad):
    """Shared real rfft/irfft (norm='ortho') matrices, frequency axis padded to f_pad."""
    n_freq = n_seq // 2 + 1
    n = np.arange(n_seq)
    k = np.arange(n_freq)
    ang = 2.0 * np.pi * np.outer(k, n) / n_seq
    scale = 1.0 / np.sqrt(n_seq)
    dr = np.cos(ang) * scale                      # Re of rfft matrix  (F, N)
    di = -np.sin(ang) * scale                     # Im of rfft matrix  (F, N)
    c = np.full((n_freq, 1), 2.0)
    c[0, 0] = 1.0
    if n_seq % 2 == 0:
        c[-1, 0] = 1.0
    crt = (c * np.cos(ang) * scale).T             # irfft from Re      (N, F)
    cit = (-c * np.sin(ang) * scale).T            # irfft from Im      (N, F)

    fwd = np.zeros((2 * f_pad, n_seq), np.float32)
    fwd[:n_freq] = dr
    fwd[f_pad:f_pad + n_freq] = di
    inv = np.zeros((n_seq, 2 * f_pad), np.float32)
    inv[:, :n_freq] = crt
    inv[:, f_pad:f_pad + n_freq] = cit
    return fwd, inv


def init_tslanet_params(key, dim, mlp_ratio=3.0):
    """Deterministic stand-ins for TSLANet_layer.__init__ parameters."""
    hdim = int(dim * mlp_ratio)
    ks = jax.random.split(key, 9)

    def conv_init(k, shape, fan_in):
        bound = 1.0 / np.sqrt(fan_in)
        return jax.random.uniform(k, shape, jnp.float32, -bound, bound)

    return dict(
        # Adaptive_Spectral_Block params
        cw=(0.02 * jax.random.normal(ks[0], (dim, 2))).astype(jnp.float32),
        cwh=(0.02 * jax.random.normal(ks[1], (dim, 2))).astype(jnp.float32),
        thr=jax.random.uniform(ks[2], (1,), dtype=jnp.float32),
        # LayerNorms (PyTorch defaults: weight=1, bias=0)
        ln1_g=jnp.ones((dim,), jnp.float32), ln1_b=jnp.zeros((dim,), jnp.float32),
        ln2_g=jnp.ones((dim,), jnp.float32), ln2_b=jnp.zeros((dim,), jnp.float32),
        # ICB convs (PyTorch Conv1d weight layout: (out_ch, in_ch, kernel))
        w1=conv_init(ks[3], (hdim, dim, 1), dim * 1),
        b1=conv_init(ks[4], (hdim,), dim * 1),
        w2=conv_init(ks[5], (hdim, dim, 3), dim * 3),
        b2=conv_init(ks[6], (hdim,), dim * 3),
        w3=conv_init(ks[7], (dim, hdim, 1), hdim * 1),
        b3=conv_init(ks[8], (dim,), hdim * 1),
    )


def tslanet_layer_forward(x, raw, *, row_target=256, prefer_even_grid=True,
                          spectral_fwd_bf16=False):
    b, n_seq, dim = x.shape
    hdim = raw["w1"].shape[0]
    bb = _choose_block_batch(b, n_seq, row_target, prefer_even_grid)
    n_freq = n_seq // 2 + 1
    f_pad = _round_up(n_freq, 8)
    h_pad = _round_up(hdim, 128)
    rows = bb * n_seq
    n_steps = b // bb

    dft_fwd, dft_inv = _dft_mats(n_seq, f_pad)
    fwd_dtype = jnp.bfloat16 if spectral_fwd_bf16 else jnp.float32
    dfwd = jnp.asarray(dft_fwd).astype(fwd_dtype)       # forward DFT (f32 by default)
    dinv = jnp.asarray(dft_inv).astype(jnp.bfloat16)    # inverse DFT in bf16

    # pack all per-channel vectors (+ threshold broadcast) into one (10, C) operand
    cpar = jnp.stack([
        raw["ln1_g"], raw["ln1_b"], raw["ln2_g"], raw["ln2_b"],
        raw["cw"][:, 0], raw["cw"][:, 1],
        raw["cwh"][:, 0], raw["cwh"][:, 1],
        raw["b3"],
        jnp.full((dim,), raw["thr"][0], jnp.float32),
    ], axis=0).astype(jnp.float32)

    # ICB stage-1 weights fused into one (C, 4*h_pad) bf16 matrix; each chunk padded
    # to a 128-lane boundary so in-kernel column slices are lane-aligned (padding is
    # exact: zero weights/bias -> zero activations -> zero contribution through w3).
    def pad_w(w):       # (C, H) -> (C, h_pad)
        return jnp.pad(w, ((0, 0), (0, h_pad - hdim)))

    def pad_b(v):       # (H,) -> (h_pad,)
        return jnp.pad(v, (0, h_pad - hdim))

    w1t = jnp.transpose(raw["w1"][:, :, 0])
    w2a = jnp.transpose(raw["w2"][:, :, 0])
    w2b = jnp.transpose(raw["w2"][:, :, 1])
    w2c = jnp.transpose(raw["w2"][:, :, 2])
    w_icb = jnp.concatenate([pad_w(w1t), pad_w(w2a), pad_w(w2b), pad_w(w2c)],
                            axis=1).astype(jnp.bfloat16)               # (C, 4*h_pad)
    zeros_h = jnp.zeros((h_pad,), jnp.float32)
    b_icb = jnp.concatenate([pad_b(raw["b1"]), zeros_h,
                             pad_b(raw["b2"]), zeros_h])[None, :]      # (1, 4*h_pad)
    w3p = jnp.pad(jnp.transpose(raw["w3"][:, :, 0]),
                  ((0, h_pad - hdim), (0, 0))).astype(jnp.bfloat16)    # (h_pad, C)

    # precomputed boundary-keep masks for the +/-1 sequence shifts (no in-kernel mod)
    sidx = np.arange(rows) % n_seq
    keep_a = jnp.asarray((sidx != 0).astype(np.float32).reshape(rows, 1))
    keep_c = jnp.asarray((sidx != n_seq - 1).astype(np.float32).reshape(rows, 1))

    # free reshape: (B, N, C) and (B//BB, BB*N, C) share row-major layout
    x_blk = x.reshape(n_steps, rows, dim)

    kernel = _make_tslanet_kernel(n_seq, bb, n_freq, f_pad, h_pad, spectral_fwd_bf16)

    ops = [x_blk, cpar, dfwd, dinv, w_icb, b_icb, w3p, keep_a, keep_c]
    in_specs = ([pl.BlockSpec((None, rows, dim), lambda g: (g, 0, 0))]
                + [pl.BlockSpec(tuple(o.shape), lambda g: (0, 0)) for o in ops[1:]])

    # advisory cost hint for XLA scheduling around the custom call
    mxu_flops = n_steps * (
        bb * 2 * (2 * f_pad) * n_seq * dim        # forward DFT
        + bb * 2 * n_seq * (2 * f_pad) * dim      # inverse DFT
        + 2 * rows * dim * (4 * h_pad)            # fused conv1 + conv2 taps
        + 2 * rows * h_pad * dim)                 # conv3
    transcendentals = n_steps * 2 * rows * h_pad  # two tanh per hidden element
    bytes_accessed = int(
        2 * b * n_seq * dim * x.dtype.itemsize
        + sum(int(np.prod(o.shape)) * o.dtype.itemsize for o in ops[1:]))
    cost = pl.CostEstimate(flops=int(mxu_flops),
                           transcendentals=int(transcendentals),
                           bytes_accessed=bytes_accessed)

    out = pl.pallas_call(
        kernel,
        out_shape=jax.ShapeDtypeStruct((n_steps, rows, dim), x.dtype),
        grid_spec=pltpu.PrefetchScalarGridSpec(
            num_scalar_prefetch=0,
            grid=(n_steps,),
            in_specs=in_specs,
            out_specs=pl.BlockSpec((None, rows, dim), lambda g: (g, 0, 0)),
        ),
        compiler_params=pltpu.CompilerParams(
            dimension_semantics=("parallel",),
            # Grid-invariant operands are small after dropping the block-diagonal DFT,
            # so double-buffering them is cheap and this limit fits the 64 MiB v7x.
            # Raise together with row_target on 128 MiB v5e/v6e.
            vmem_limit_bytes=32 * 1024 * 1024),
        cost_estimate=cost,
    )(*ops)
    return out.reshape(b, n_seq, dim)


def tslanet_layer_reference(x, raw):
    """Pure-JAX reference mirroring the PyTorch forward (for sanity checking)."""
    n_seq = x.shape[1]

    def ln(v, g, b):
        m = jnp.mean(v, axis=-1, keepdims=True)
        var = jnp.mean(jnp.square(v - m), axis=-1, keepdims=True)
        return (v - m) / jnp.sqrt(var + LN_EPS) * g + b

    xn = ln(x, raw["ln1_g"], raw["ln1_b"])
    xf = jnp.fft.rfft(xn, axis=1, norm="ortho")
    w = raw["cw"][:, 0] + 1j * raw["cw"][:, 1]
    xw = xf * w
    energy = jnp.sum(jnp.abs(xf) ** 2, axis=-1)                  # (B, F)
    f = energy.shape[-1]
    med = jnp.sort(energy, axis=-1)[:, (f - 1) // 2][:, None]    # torch lower median
    mask = (energy / (med + ASB_EPS) > raw["thr"][0]).astype(jnp.float32)[..., None]
    wh = raw["cwh"][:, 0] + 1j * raw["cwh"][:, 1]
    xw = xw + (xf * mask) * wh
    a = jnp.fft.irfft(xw, n=n_seq, axis=1, norm="ortho")

    z = ln(a, raw["ln2_g"], raw["ln2_b"])
    zt = jnp.swapaxes(z, 1, 2)                                   # (B, C, N)

    def conv1d(inp, wgt, bias, pad):
        out = jax.lax.conv_general_dilated(
            inp, wgt, window_strides=(1,), padding=[(pad, pad)],
            dimension_numbers=("NCH", "OIH", "NCH"),
            precision=jax.lax.Precision.HIGHEST)
        return out + bias[None, :, None]

    gelu = lambda v: jax.nn.gelu(v, approximate=False)
    x1 = conv1d(zt, raw["w1"], raw["b1"], 0)
    x2 = conv1d(zt, raw["w2"], raw["b2"], 1)
    y = conv1d(x1 * gelu(x2) + x2 * gelu(x1), raw["w3"], raw["b3"], 0)
    return x + jnp.swapaxes(y, 1, 2)


if __name__ == "__main__":
    B, N, C = 8, 16, 16          # batch, sequence length, embedding dim
    key = jax.random.PRNGKey(0)
    kx, kp = jax.random.split(key)
    x = jax.random.normal(kx, (B, N, C), dtype=jnp.float32)
    raw = init_tslanet_params(kp, C, mlp_ratio=3.0)

    y = jax.block_until_ready(tslanet_layer_forward(x, raw))

    y_ref = tslanet_layer_reference(x, raw)
    # normalized error: tolerance covers bf16 irfft/ICB matmuls, bf16 GELU and the
    # tanh GELU approximation (typical max normalized error ~1e-2)
    err = float(jnp.max(jnp.abs(y - y_ref) / (1.0 + jnp.abs(y_ref))))
    assert y.shape == (B, N, C) and err < 5e-2, f"mismatch vs reference: {err}"
    print("KERNEL_OK")
</pallas_src>

<mosaic_0001>
module attributes {stable_mosaic.version = 11 : i64} {
  func.func @kernel(%arg0: i32, %arg1: memref<1x64x16xf32, #tpu.memory_space<vmem>>, %arg2: memref<10x16xf32, #tpu.memory_space<vmem>>, %arg3: memref<32x16xf32, #tpu.memory_space<vmem>>, %arg4: memref<16x32xbf16, #tpu.memory_space<vmem>>, %arg5: memref<16x512xbf16, #tpu.memory_space<vmem>>, %arg6: memref<1x512xf32, #tpu.memory_space<vmem>>, %arg7: memref<128x16xbf16, #tpu.memory_space<vmem>>, %arg8: memref<64x1xf32, #tpu.memory_space<vmem>>, %arg9: memref<64x1xf32, #tpu.memory_space<vmem>>, %arg10: memref<1x64x16xf32, #tpu.memory_space<vmem>>) attributes {dimension_semantics = [#tpu.dimension_semantics<parallel>], iteration_bounds = array<i64: 2>, scalar_prefetch = 0 : i64, scratch_operands = 0 : i64, tpu.core_type = #tpu.core_type<tc>, window_params = [{transform_indices = @transform_0, window_bounds = array<i64: 1, 64, 16>}, {pipeline_mode = #tpu.pipeline_mode<synchronous>, transform_indices = @transform_1, window_bounds = array<i64: 10, 16>}, {pipeline_mode = #tpu.pipeline_mode<synchronous>, transform_indices = @transform_2, window_bounds = array<i64: 32, 16>}, {pipeline_mode = #tpu.pipeline_mode<synchronous>, transform_indices = @transform_3, window_bounds = array<i64: 16, 32>}, {pipeline_mode = #tpu.pipeline_mode<synchronous>, transform_indices = @transform_4, window_bounds = array<i64: 16, 512>}, {pipeline_mode = #tpu.pipeline_mode<synchronous>, transform_indices = @transform_5, window_bounds = array<i64: 1, 512>}, {pipeline_mode = #tpu.pipeline_mode<synchronous>, transform_indices = @transform_6, window_bounds = array<i64: 128, 16>}, {pipeline_mode = #tpu.pipeline_mode<synchronous>, transform_indices = @transform_7, window_bounds = array<i64: 64, 1>}, {pipeline_mode = #tpu.pipeline_mode<synchronous>, transform_indices = @transform_8, window_bounds = array<i64: 64, 1>}, {transform_indices = @transform_9, window_bounds = array<i64: 1, 64, 16>}]} {
    %c0 = arith.constant 0 : index
    %c0_0 = arith.constant 0 : index
    %c0_1 = arith.constant 0 : index
    %0 = vector.load %arg1[%c0, %c0_0, %c0_1] : memref<1x64x16xf32, #tpu.memory_space<vmem>>, vector<1x64x16xf32>
    %1 = vector.shape_cast %0 : vector<1x64x16xf32> to vector<64x16xf32>
    %c0_2 = arith.constant 0 : index
    %c0_3 = arith.constant 0 : index
    %2 = vector.load %arg2[%c0_2, %c0_3] : memref<10x16xf32, #tpu.memory_space<vmem>>, vector<1x16xf32>
    %c1 = arith.constant 1 : index
    %c0_4 = arith.constant 0 : index
    %3 = vector.load %arg2[%c1, %c0_4] : memref<10x16xf32, #tpu.memory_space<vmem>>, vector<1x16xf32>
    %c2 = arith.constant 2 : index
    %c0_5 = arith.constant 0 : index
    %4 = vector.load %arg2[%c2, %c0_5] : memref<10x16xf32, #tpu.memory_space<vmem>>, vector<1x16xf32>
    %c3 = arith.constant 3 : index
    %c0_6 = arith.constant 0 : index
    %5 = vector.load %arg2[%c3, %c0_6] : memref<10x16xf32, #tpu.memory_space<vmem>>, vector<1x16xf32>
    %c4 = arith.constant 4 : index
    %c0_7 = arith.constant 0 : index
    %6 = vector.load %arg2[%c4, %c0_7] : memref<10x16xf32, #tpu.memory_space<vmem>>, vector<1x16xf32>
    %c5 = arith.constant 5 : index
    %c0_8 = arith.constant 0 : index
    %7 = vector.load %arg2[%c5, %c0_8] : memref<10x16xf32, #tpu.memory_space<vmem>>, vector<1x16xf32>
    %c6 = arith.constant 6 : index
    %c0_9 = arith.constant 0 : index
    %8 = vector.load %arg2[%c6, %c0_9] : memref<10x16xf32, #tpu.memory_space<vmem>>, vector<1x16xf32>
    %c7 = arith.constant 7 : index
    %c0_10 = arith.constant 0 : index
    %9 = vector.load %arg2[%c7, %c0_10] : memref<10x16xf32, #tpu.memory_space<vmem>>, vector<1x16xf32>
    %c8 = arith.constant 8 : index
    %c0_11 = arith.constant 0 : index
    %10 = vector.load %arg2[%c8, %c0_11] : memref<10x16xf32, #tpu.memory_space<vmem>>, vector<1x16xf32>
    %c9 = arith.constant 9 : index
    %c0_12 = arith.constant 0 : index
    %11 = vector.load %arg2[%c9, %c0_12] : memref<10x16xf32, #tpu.memory_space<vmem>>, vector<1x1xf32>
    %cst = arith.constant dense<0.000000e+00> : vector<64xf32>
    %12 = vector.multi_reduction <add>, %1, %cst [1] : vector<64x16xf32> to vector<64xf32>
    %13 = vector.shape_cast %12 : vector<64xf32> to vector<64x1xf32>
    %cst_13 = arith.constant 1.600000e+01 : f32
    %14 = vector.broadcast %cst_13 : f32 to vector<64x1xf32>
    %15 = arith.divf %13, %14 : vector<64x1xf32>
    %16 = vector.broadcast %15 : vector<64x1xf32> to vector<64x16xf32>
    %17 = arith.subf %1, %16 : vector<64x16xf32>
    %18 = arith.mulf %17, %17 : vector<64x16xf32>
    %cst_14 = arith.constant dense<0.000000e+00> : vector<64xf32>
    %19 = vector.multi_reduction <add>, %18, %cst_14 [1] : vector<64x16xf32> to vector<64xf32>
    %20 = vector.shape_cast %19 : vector<64xf32> to vector<64x1xf32>
    %cst_15 = arith.constant 1.600000e+01 : f32
    %21 = vector.broadcast %cst_15 : f32 to vector<64x1xf32>
    %22 = arith.divf %20, %21 : vector<64x1xf32>
    %23 = vector.broadcast %15 : vector<64x1xf32> to vector<64x16xf32>
    %24 = arith.subf %1, %23 : vector<64x16xf32>
    %cst_16 = arith.constant 9.99999974E-6 : f32
    %25 = vector.broadcast %cst_16 : f32 to vector<64x1xf32>
    %26 = arith.addf %22, %25 : vector<64x1xf32>
    %27 = math.rsqrt %26 : vector<64x1xf32>
    %28 = vector.broadcast %27 : vector<64x1xf32> to vector<64x16xf32>
    %29 = arith.mulf %24, %28 : vector<64x16xf32>
    %30 = vector.broadcast %2 : vector<1x16xf32> to vector<64x16xf32>
    %31 = arith.mulf %29, %30 : vector<64x16xf32>
    %32 = vector.broadcast %3 : vector<1x16xf32> to vector<64x16xf32>
    %33 = arith.addf %31, %32 : vector<64x16xf32>
    %c0_17 = arith.constant 0 : index
    %c0_18 = arith.constant 0 : index
    %34 = vector.load %arg3[%c0_17, %c0_18] : memref<32x16xf32, #tpu.memory_space<vmem>>, vector<32x16xf32>
    %c0_19 = arith.constant 0 : index
    %c0_20 = arith.constant 0 : index
    %35 = vector.load %arg4[%c0_19, %c0_20] : memref<16x32xbf16, #tpu.memory_space<vmem>>, vector<16x32xbf16>
    %36 = tpu.iota {dimensions = array<i32: 1>} : vector<1x16xi32>
    %c9_i32 = arith.constant 9 : i32
    %37 = vector.broadcast %c9_i32 : i32 to vector<1x16xi32>
    %38 = arith.cmpi slt, %36, %37 : vector<1x16xi32>
    %39 = tpu.iota {dimensions = array<i32: 0>} : vector<16x1xi32>
    %c9_i32_21 = arith.constant 9 : i32
    %40 = vector.broadcast %c9_i32_21 : i32 to vector<16x1xi32>
    %41 = arith.cmpi slt, %39, %40 : vector<16x1xi32>
    %42 = vector.extract_strided_slice %33 {offsets = [0, 0], sizes = [16, 16], strides = [1, 1]} : vector<64x16xf32> to vector<16x16xf32>
    %cst_22 = arith.constant dense<0.000000e+00> : vector<32x16xf32>
    %43 = tpu.matmul %34, %42, %cst_22 {dimension_numbers = #tpu.dot_dimension_numbers<[1], [0], [0], [1], [0, 0, 1, 1], [], []>} : vector<32x16xf32>, vector<16x16xf32>, vector<32x16xf32> -> vector<32x16xf32>
    %44 = vector.extract_strided_slice %43 {offsets = [0, 0], sizes = [16, 16], strides = [1, 1]} : vector<32x16xf32> to vector<16x16xf32>
    %45 = vector.extract_strided_slice %43 {offsets = [16, 0], sizes = [16, 16], strides = [1, 1]} : vector<32x16xf32> to vector<16x16xf32>
    %46 = arith.mulf %44, %44 : vector<16x16xf32>
    %47 = arith.mulf %45, %45 : vector<16x16xf32>
    %48 = arith.addf %46, %47 : vector<16x16xf32>
    %cst_23 = arith.constant dense<0.000000e+00> : vector<16xf32>
    %49 = vector.multi_reduction <add>, %48, %cst_23 [1] : vector<16x16xf32> to vector<16xf32>
    %50 = vector.shape_cast %49 : vector<16xf32> to vector<16x1xf32>
    %51 = tpu.transpose %50, [1, 0] : vector<16x1xf32> -> vector<1x16xf32>
    %52 = vector.broadcast %51 : vector<1x16xf32> to vector<16x16xf32>
    %53 = vector.broadcast %50 : vector<16x1xf32> to vector<16x16xf32>
    %54 = arith.cmpf ole, %52, %53 : vector<16x16xf32>
    %55 = vector.broadcast %38 : vector<1x16xi1> to vector<16x16xi1>
    %56 = arith.andi %55, %54 : vector<16x16xi1>
    %cst_24 = arith.constant 1.000000e+00 : f32
    %cst_25 = arith.constant 0.000000e+00 : f32
    %57 = vector.broadcast %cst_24 : f32 to vector<16x16xf32>
    %58 = vector.broadcast %cst_25 : f32 to vector<16x16xf32>
    %59 = arith.select %56, %57, %58 : vector<16x16xi1>, vector<16x16xf32>
    %cst_26 = arith.constant dense<0.000000e+00> : vector<16xf32>
    %60 = vector.multi_reduction <add>, %59, %cst_26 [1] : vector<16x16xf32> to vector<16xf32>
    %61 = vector.shape_cast %60 : vector<16xf32> to vector<16x1xf32>
    %cst_27 = arith.constant 5.000000e+00 : f32
    %62 = vector.broadcast %cst_27 : f32 to vector<16x1xf32>
    %63 = arith.cmpf oge, %61, %62 : vector<16x1xf32>
    %64 = arith.andi %41, %63 : vector<16x1xi1>
    %cst_28 = arith.constant 0x7F800000 : f32
    %65 = vector.broadcast %cst_28 : f32 to vector<16x1xf32>
    %66 = arith.select %64, %50, %65 : vector<16x1xi1>, vector<16x1xf32>
    %67 = tpu.transpose %66, [1, 0] : vector<16x1xf32> -> vector<1x16xf32>
    %cst_29 = arith.constant dense<0x7F800000> : vector<1xf32>
    %68 = vector.multi_reduction <minimumf>, %67, %cst_29 [1] : vector<1x16xf32> to vector<1xf32>
    %69 = vector.shape_cast %68 : vector<1xf32> to vector<1x1xf32>
    %cst_30 = arith.constant 9.99999997E-7 : f32
    %70 = vector.broadcast %cst_30 : f32 to vector<1x1xf32>
    %71 = arith.addf %69, %70 : vector<1x1xf32>
    %72 = vector.broadcast %71 : vector<1x1xf32> to vector<16x1xf32>
    %73 = arith.divf %50, %72 : vector<16x1xf32>
    %74 = vector.broadcast %11 : vector<1x1xf32> to vector<16x1xf32>
    %75 = arith.cmpf ogt, %73, %74 : vector<16x1xf32>
    %76 = arith.extui %75 : vector<16x1xi1> to vector<16x1xi32>
    %77 = arith.sitofp %76 : vector<16x1xi32> to vector<16x1xf32>
    %78 = vector.broadcast %77 : vector<16x1xf32> to vector<16x16xf32>
    %79 = vector.broadcast %8 : vector<1x16xf32> to vector<16x16xf32>
    %80 = arith.mulf %78, %79 : vector<16x16xf32>
    %81 = vector.broadcast %6 : vector<1x16xf32> to vector<16x16xf32>
    %82 = arith.addf %81, %80 : vector<16x16xf32>
    %83 = vector.broadcast %77 : vector<16x1xf32> to vector<16x16xf32>
    %84 = vector.broadcast %9 : vector<1x16xf32> to vector<16x16xf32>
    %85 = arith.mulf %83, %84 : vector<16x16xf32>
    %86 = vector.broadcast %7 : vector<1x16xf32> to vector<16x16xf32>
    %87 = arith.addf %86, %85 : vector<16x16xf32>
    %88 = arith.mulf %44, %82 : vector<16x16xf32>
    %89 = arith.mulf %45, %87 : vector<16x16xf32>
    %90 = arith.subf %88, %89 : vector<16x16xf32>
    %91 = arith.mulf %44, %87 : vector<16x16xf32>
    %92 = arith.mulf %45, %82 : vector<16x16xf32>
    %93 = arith.addf %91, %92 : vector<16x16xf32>
    %94 = tpu.concatenate %90, %93 in 0 : vector<16x16xf32>, vector<16x16xf32> -> vector<32x16xf32>
    %95 = arith.truncf %94 : vector<32x16xf32> to vector<32x16xbf16>
    %cst_31 = arith.constant dense<0.000000e+00> : vector<16x16xf32>
    %96 = tpu.matmul %35, %95, %cst_31 {dimension_numbers = #tpu.dot_dimension_numbers<[1], [0], [0], [1], [0, 0, 1, 1], [], []>} : vector<16x32xbf16>, vector<32x16xbf16>, vector<16x16xf32> -> vector<16x16xf32>
    %97 = vector.extract_strided_slice %33 {offsets = [16, 0], sizes = [16, 16], strides = [1, 1]} : vector<64x16xf32> to vector<16x16xf32>
    %cst_32 = arith.constant dense<0.000000e+00> : vector<32x16xf32>
    %98 = tpu.matmul %34, %97, %cst_32 {dimension_numbers = #tpu.dot_dimension_numbers<[1], [0], [0], [1], [0, 0, 1, 1], [], []>} : vector<32x16xf32>, vector<16x16xf32>, vector<32x16xf32> -> vector<32x16xf32>
    %99 = vector.extract_strided_slice %98 {offsets = [0, 0], sizes = [16, 16], strides = [1, 1]} : vector<32x16xf32> to vector<16x16xf32>
    %100 = vector.extract_strided_slice %98 {offsets = [16, 0], sizes = [16, 16], strides = [1, 1]} : vector<32x16xf32> to vector<16x16xf32>
    %101 = arith.mulf %99, %99 : vector<16x16xf32>
    %102 = arith.mulf %100, %100 : vector<16x16xf32>
    %103 = arith.addf %101, %102 : vector<16x16xf32>
    %cst_33 = arith.constant dense<0.000000e+00> : vector<16xf32>
    %104 = vector.multi_reduction <add>, %103, %cst_33 [1] : vector<16x16xf32> to vector<16xf32>
    %105 = vector.shape_cast %104 : vector<16xf32> to vector<16x1xf32>
    %106 = tpu.transpose %105, [1, 0] : vector<16x1xf32> -> vector<1x16xf32>
    %107 = vector.broadcast %106 : vector<1x16xf32> to vector<16x16xf32>
    %108 = vector.broadcast %105 : vector<16x1xf32> to vector<16x16xf32>
    %109 = arith.cmpf ole, %107, %108 : vector<16x16xf32>
    %110 = vector.broadcast %38 : vector<1x16xi1> to vector<16x16xi1>
    %111 = arith.andi %110, %109 : vector<16x16xi1>
    %cst_34 = arith.constant 1.000000e+00 : f32
    %cst_35 = arith.constant 0.000000e+00 : f32
    %112 = vector.broadcast %cst_34 : f32 to vector<16x16xf32>
    %113 = vector.broadcast %cst_35 : f32 to vector<16x16xf32>
    %114 = arith.select %111, %112, %113 : vector<16x16xi1>, vector<16x16xf32>
    %cst_36 = arith.constant dense<0.000000e+00> : vector<16xf32>
    %115 = vector.multi_reduction <add>, %114, %cst_36 [1] : vector<16x16xf32> to vector<16xf32>
    %116 = vector.shape_cast %115 : vector<16xf32> to vector<16x1xf32>
    %cst_37 = arith.constant 5.000000e+00 : f32
    %117 = vector.broadcast %cst_37 : f32 to vector<16x1xf32>
    %118 = arith.cmpf oge, %116, %117 : vector<16x1xf32>
    %119 = arith.andi %41, %118 : vector<16x1xi1>
    %cst_38 = arith.constant 0x7F800000 : f32
    %120 = vector.broadcast %cst_38 : f32 to vector<16x1xf32>
    %121 = arith.select %119, %105, %120 : vector<16x1xi1>, vector<16x1xf32>
    %122 = tpu.transpose %121, [1, 0] : vector<16x1xf32> -> vector<1x16xf32>
    %cst_39 = arith.constant dense<0x7F800000> : vector<1xf32>
    %123 = vector.multi_reduction <minimumf>, %122, %cst_39 [1] : vector<1x16xf32> to vector<1xf32>
    %124 = vector.shape_cast %123 : vector<1xf32> to vector<1x1xf32>
    %cst_40 = arith.constant 9.99999997E-7 : f32
    %125 = vector.broadcast %cst_40 : f32 to vector<1x1xf32>
    %126 = arith.addf %124, %125 : vector<1x1xf32>
    %127 = vector.broadcast %126 : vector<1x1xf32> to vector<16x1xf32>
    %128 = arith.divf %105, %127 : vector<16x1xf32>
    %129 = vector.broadcast %11 : vector<1x1xf32> to vector<16x1xf32>
    %130 = arith.cmpf ogt, %128, %129 : vector<16x1xf32>
    %131 = arith.extui %130 : vector<16x1xi1> to vector<16x1xi32>
    %132 = arith.sitofp %131 : vector<16x1xi32> to vector<16x1xf32>
    %133 = vector.broadcast %132 : vector<16x1xf32> to vector<16x16xf32>
    %134 = vector.broadcast %8 : vector<1x16xf32> to vector<16x16xf32>
    %135 = arith.mulf %133, %134 : vector<16x16xf32>
    %136 = vector.broadcast %6 : vector<1x16xf32> to vector<16x16xf32>
    %137 = arith.addf %136, %135 : vector<16x16xf32>
    %138 = vector.broadcast %132 : vector<16x1xf32> to vector<16x16xf32>
    %139 = vector.broadcast %9 : vector<1x16xf32> to vector<16x16xf32>
    %140 = arith.mulf %138, %139 : vector<16x16xf32>
    %141 = vector.broadcast %7 : vector<1x16xf32> to vector<16x16xf32>
    %142 = arith.addf %141, %140 : vector<16x16xf32>
    %143 = arith.mulf %99, %137 : vector<16x16xf32>
    %144 = arith.mulf %100, %142 : vector<16x16xf32>
    %145 = arith.subf %143, %144 : vector<16x16xf32>
    %146 = arith.mulf %99, %142 : vector<16x16xf32>
    %147 = arith.mulf %100, %137 : vector<16x16xf32>
    %148 = arith.addf %146, %147 : vector<16x16xf32>
    %149 = tpu.concatenate %145, %148 in 0 : vector<16x16xf32>, vector<16x16xf32> -> vector<32x16xf32>
    %150 = arith.truncf %149 : vector<32x16xf32> to vector<32x16xbf16>
    %cst_41 = arith.constant dense<0.000000e+00> : vector<16x16xf32>
    %151 = tpu.matmul %35, %150, %cst_41 {dimension_numbers = #tpu.dot_dimension_numbers<[1], [0], [0], [1], [0, 0, 1, 1], [], []>} : vector<16x32xbf16>, vector<32x16xbf16>, vector<16x16xf32> -> vector<16x16xf32>
    %152 = vector.extract_strided_slice %33 {offsets = [32, 0], sizes = [16, 16], strides = [1, 1]} : vector<64x16xf32> to vector<16x16xf32>
    %cst_42 = arith.constant dense<0.000000e+00> : vector<32x16xf32>
    %153 = tpu.matmul %34, %152, %cst_42 {dimension_numbers = #tpu.dot_dimension_numbers<[1], [0], [0], [1], [0, 0, 1, 1], [], []>} : vector<32x16xf32>, vector<16x16xf32>, vector<32x16xf32> -> vector<32x16xf32>
    %154 = vector.extract_strided_slice %153 {offsets = [0, 0], sizes = [16, 16], strides = [1, 1]} : vector<32x16xf32> to vector<16x16xf32>
    %155 = vector.extract_strided_slice %153 {offsets = [16, 0], sizes = [16, 16], strides = [1, 1]} : vector<32x16xf32> to vector<16x16xf32>
    %156 = arith.mulf %154, %154 : vector<16x16xf32>
    %157 = arith.mulf %155, %155 : vector<16x16xf32>
    %158 = arith.addf %156, %157 : vector<16x16xf32>
    %cst_43 = arith.constant dense<0.000000e+00> : vector<16xf32>
    %159 = vector.multi_reduction <add>, %158, %cst_43 [1] : vector<16x16xf32> to vector<16xf32>
    %160 = vector.shape_cast %159 : vector<16xf32> to vector<16x1xf32>
    %161 = tpu.transpose %160, [1, 0] : vector<16x1xf32> -> vector<1x16xf32>
    %162 = vector.broadcast %161 : vector<1x16xf32> to vector<16x16xf32>
    %163 = vector.broadcast %160 : vector<16x1xf32> to vector<16x16xf32>
    %164 = arith.cmpf ole, %162, %163 : vector<16x16xf32>
    %165 = vector.broadcast %38 : vector<1x16xi1> to vector<16x16xi1>
    %166 = arith.andi %165, %164 : vector<16x16xi1>
    %cst_44 = arith.constant 1.000000e+00 : f32
    %cst_45 = arith.constant 0.000000e+00 : f32
    %167 = vector.broadcast %cst_44 : f32 to vector<16x16xf32>
    %168 = vector.broadcast %cst_45 : f32 to vector<16x16xf32>
    %169 = arith.select %166, %167, %168 : vector<16x16xi1>, vector<16x16xf32>
    %cst_46 = arith.constant dense<0.000000e+00> : vector<16xf32>
    %170 = vector.multi_reduction <add>, %169, %cst_46 [1] : vector<16x16xf32> to vector<16xf32>
    %171 = vector.shape_cast %170 : vector<16xf32> to vector<16x1xf32>
    %cst_47 = arith.constant 5.000000e+00 : f32
    %172 = vector.broadcast %cst_47 : f32 to vector<16x1xf32>
    %173 = arith.cmpf oge, %171, %172 : vector<16x1xf32>
    %174 = arith.andi %41, %173 : vector<16x1xi1>
    %cst_48 = arith.constant 0x7F800000 : f32
    %175 = vector.broadcast %cst_48 : f32 to vector<16x1xf32>
    %176 = arith.select %174, %160, %175 : vector<16x1xi1>, vector<16x1xf32>
    %177 = tpu.transpose %176, [1, 0] : vector<16x1xf32> -> vector<1x16xf32>
    %cst_49 = arith.constant dense<0x7F800000> : vector<1xf32>
    %178 = vector.multi_reduction <minimumf>, %177, %cst_49 [1] : vector<1x16xf32> to vector<1xf32>
    %179 = vector.shape_cast %178 : vector<1xf32> to vector<1x1xf32>
    %cst_50 = arith.constant 9.99999997E-7 : f32
    %180 = vector.broadcast %cst_50 : f32 to vector<1x1xf32>
    %181 = arith.addf %179, %180 : vector<1x1xf32>
    %182 = vector.broadcast %181 : vector<1x1xf32> to vector<16x1xf32>
    %183 = arith.divf %160, %182 : vector<16x1xf32>
    %184 = vector.broadcast %11 : vector<1x1xf32> to vector<16x1xf32>
    %185 = arith.cmpf ogt, %183, %184 : vector<16x1xf32>
    %186 = arith.extui %185 : vector<16x1xi1> to vector<16x1xi32>
    %187 = arith.sitofp %186 : vector<16x1xi32> to vector<16x1xf32>
    %188 = vector.broadcast %187 : vector<16x1xf32> to vector<16x16xf32>
    %189 = vector.broadcast %8 : vector<1x16xf32> to vector<16x16xf32>
    %190 = arith.mulf %188, %189 : vector<16x16xf32>
    %191 = vector.broadcast %6 : vector<1x16xf32> to vector<16x16xf32>
    %192 = arith.addf %191, %190 : vector<16x16xf32>
    %193 = vector.broadcast %187 : vector<16x1xf32> to vector<16x16xf32>
    %194 = vector.broadcast %9 : vector<1x16xf32> to vector<16x16xf32>
    %195 = arith.mulf %193, %194 : vector<16x16xf32>
    %196 = vector.broadcast %7 : vector<1x16xf32> to vector<16x16xf32>
    %197 = arith.addf %196, %195 : vector<16x16xf32>
    %198 = arith.mulf %154, %192 : vector<16x16xf32>
    %199 = arith.mulf %155, %197 : vector<16x16xf32>
    %200 = arith.subf %198, %199 : vector<16x16xf32>
    %201 = arith.mulf %154, %197 : vector<16x16xf32>
    %202 = arith.mulf %155, %192 : vector<16x16xf32>
    %203 = arith.addf %201, %202 : vector<16x16xf32>
    %204 = tpu.concatenate %200, %203 in 0 : vector<16x16xf32>, vector<16x16xf32> -> vector<32x16xf32>
    %205 = arith.truncf %204 : vector<32x16xf32> to vector<32x16xbf16>
    %cst_51 = arith.constant dense<0.000000e+00> : vector<16x16xf32>
    %206 = tpu.matmul %35, %205, %cst_51 {dimension_numbers = #tpu.dot_dimension_numbers<[1], [0], [0], [1], [0, 0, 1, 1], [], []>} : vector<16x32xbf16>, vector<32x16xbf16>, vector<16x16xf32> -> vector<16x16xf32>
    %207 = vector.extract_strided_slice %33 {offsets = [48, 0], sizes = [16, 16], strides = [1, 1]} : vector<64x16xf32> to vector<16x16xf32>
    %cst_52 = arith.constant dense<0.000000e+00> : vector<32x16xf32>
    %208 = tpu.matmul %34, %207, %cst_52 {dimension_numbers = #tpu.dot_dimension_numbers<[1], [0], [0], [1], [0, 0, 1, 1], [], []>} : vector<32x16xf32>, vector<16x16xf32>, vector<32x16xf32> -> vector<32x16xf32>
    %209 = vector.extract_strided_slice %208 {offsets = [0, 0], sizes = [16, 16], strides = [1, 1]} : vector<32x16xf32> to vector<16x16xf32>
    %210 = vector.extract_strided_slice %208 {offsets = [16, 0], sizes = [16, 16], strides = [1, 1]} : vector<32x16xf32> to vector<16x16xf32>
    %211 = arith.mulf %209, %209 : vector<16x16xf32>
    %212 = arith.mulf %210, %210 : vector<16x16xf32>
    %213 = arith.addf %211, %212 : vector<16x16xf32>
    %cst_53 = arith.constant dense<0.000000e+00> : vector<16xf32>
    %214 = vector.multi_reduction <add>, %213, %cst_53 [1] : vector<16x16xf32> to vector<16xf32>
    %215 = vector.shape_cast %214 : vector<16xf32> to vector<16x1xf32>
    %216 = tpu.transpose %215, [1, 0] : vector<16x1xf32> -> vector<1x16xf32>
    %217 = vector.broadcast %216 : vector<1x16xf32> to vector<16x16xf32>
    %218 = vector.broadcast %215 : vector<16x1xf32> to vector<16x16xf32>
    %219 = arith.cmpf ole, %217, %218 : vector<16x16xf32>
    %220 = vector.broadcast %38 : vector<1x16xi1> to vector<16x16xi1>
    %221 = arith.andi %220, %219 : vector<16x16xi1>
    %cst_54 = arith.constant 1.000000e+00 : f32
    %cst_55 = arith.constant 0.000000e+00 : f32
    %222 = vector.broadcast %cst_54 : f32 to vector<16x16xf32>
    %223 = vector.broadcast %cst_55 : f32 to vector<16x16xf32>
    %224 = arith.select %221, %222, %223 : vector<16x16xi1>, vector<16x16xf32>
    %cst_56 = arith.constant dense<0.000000e+00> : vector<16xf32>
    %225 = vector.multi_reduction <add>, %224, %cst_56 [1] : vector<16x16xf32> to vector<16xf32>
    %226 = vector.shape_cast %225 : vector<16xf32> to vector<16x1xf32>
    %cst_57 = arith.constant 5.000000e+00 : f32
    %227 = vector.broadcast %cst_57 : f32 to vector<16x1xf32>
    %228 = arith.cmpf oge, %226, %227 : vector<16x1xf32>
    %229 = arith.andi %41, %228 : vector<16x1xi1>
    %cst_58 = arith.constant 0x7F800000 : f32
    %230 = vector.broadcast %cst_58 : f32 to vector<16x1xf32>
    %231 = arith.select %229, %215, %230 : vector<16x1xi1>, vector<16x1xf32>
    %232 = tpu.transpose %231, [1, 0] : vector<16x1xf32> -> vector<1x16xf32>
    %cst_59 = arith.constant dense<0x7F800000> : vector<1xf32>
    %233 = vector.multi_reduction <minimumf>, %232, %cst_59 [1] : vector<1x16xf32> to vector<1xf32>
    %234 = vector.shape_cast %233 : vector<1xf32> to vector<1x1xf32>
    %cst_60 = arith.constant 9.99999997E-7 : f32
    %235 = vector.broadcast %cst_60 : f32 to vector<1x1xf32>
    %236 = arith.addf %234, %235 : vector<1x1xf32>
    %237 = vector.broadcast %236 : vector<1x1xf32> to vector<16x1xf32>
    %238 = arith.divf %215, %237 : vector<16x1xf32>
    %239 = vector.broadcast %11 : vector<1x1xf32> to vector<16x1xf32>
    %240 = arith.cmpf ogt, %238, %239 : vector<16x1xf32>
    %241 = arith.extui %240 : vector<16x1xi1> to vector<16x1xi32>
    %242 = arith.sitofp %241 : vector<16x1xi32> to vector<16x1xf32>
    %243 = vector.broadcast %242 : vector<16x1xf32> to vector<16x16xf32>
    %244 = vector.broadcast %8 : vector<1x16xf32> to vector<16x16xf32>
    %245 = arith.mulf %243, %244 : vector<16x16xf32>
    %246 = vector.broadcast %6 : vector<1x16xf32> to vector<16x16xf32>
    %247 = arith.addf %246, %245 : vector<16x16xf32>
    %248 = vector.broadcast %242 : vector<16x1xf32> to vector<16x16xf32>
    %249 = vector.broadcast %9 : vector<1x16xf32> to vector<16x16xf32>
    %250 = arith.mulf %248, %249 : vector<16x16xf32>
    %251 = vector.broadcast %7 : vector<1x16xf32> to vector<16x16xf32>
    %252 = arith.addf %251, %250 : vector<16x16xf32>
    %253 = arith.mulf %209, %247 : vector<16x16xf32>
    %254 = arith.mulf %210, %252 : vector<16x16xf32>
    %255 = arith.subf %253, %254 : vector<16x16xf32>
    %256 = arith.mulf %209, %252 : vector<16x16xf32>
    %257 = arith.mulf %210, %247 : vector<16x16xf32>
    %258 = arith.addf %256, %257 : vector<16x16xf32>
    %259 = tpu.concatenate %255, %258 in 0 : vector<16x16xf32>, vector<16x16xf32> -> vector<32x16xf32>
    %260 = arith.truncf %259 : vector<32x16xf32> to vector<32x16xbf16>
    %cst_61 = arith.constant dense<0.000000e+00> : vector<16x16xf32>
    %261 = tpu.matmul %35, %260, %cst_61 {dimension_numbers = #tpu.dot_dimension_numbers<[1], [0], [0], [1], [0, 0, 1, 1], [], []>} : vector<16x32xbf16>, vector<32x16xbf16>, vector<16x16xf32> -> vector<16x16xf32>
    %262 = tpu.concatenate %96, %151, %206, %261 in 0 : vector<16x16xf32>, vector<16x16xf32>, vector<16x16xf32>, vector<16x16xf32> -> vector<64x16xf32>
    %cst_62 = arith.constant dense<0.000000e+00> : vector<64xf32>
    %263 = vector.multi_reduction <add>, %262, %cst_62 [1] : vector<64x16xf32> to vector<64xf32>
    %264 = vector.shape_cast %263 : vector<64xf32> to vector<64x1xf32>
    %cst_63 = arith.constant 1.600000e+01 : f32
    %265 = vector.broadcast %cst_63 : f32 to vector<64x1xf32>
    %266 = arith.divf %264, %265 : vector<64x1xf32>
    %267 = vector.broadcast %266 : vector<64x1xf32> to vector<64x16xf32>
    %268 = arith.subf %262, %267 : vector<64x16xf32>
    %269 = arith.mulf %268, %268 : vector<64x16xf32>
    %cst_64 = arith.constant dense<0.000000e+00> : vector<64xf32>
    %270 = vector.multi_reduction <add>, %269, %cst_64 [1] : vector<64x16xf32> to vector<64xf32>
    %271 = vector.shape_cast %270 : vector<64xf32> to vector<64x1xf32>
    %cst_65 = arith.constant 1.600000e+01 : f32
    %272 = vector.broadcast %cst_65 : f32 to vector<64x1xf32>
    %273 = arith.divf %271, %272 : vector<64x1xf32>
    %274 = vector.broadcast %266 : vector<64x1xf32> to vector<64x16xf32>
    %275 = arith.subf %262, %274 : vector<64x16xf32>
    %cst_66 = arith.constant 9.99999974E-6 : f32
    %276 = vector.broadcast %cst_66 : f32 to vector<64x1xf32>
    %277 = arith.addf %273, %276 : vector<64x1xf32>
    %278 = math.rsqrt %277 : vector<64x1xf32>
    %279 = vector.broadcast %278 : vector<64x1xf32> to vector<64x16xf32>
    %280 = arith.mulf %275, %279 : vector<64x16xf32>
    %281 = vector.broadcast %4 : vector<1x16xf32> to vector<64x16xf32>
    %282 = arith.mulf %280, %281 : vector<64x16xf32>
    %283 = vector.broadcast %5 : vector<1x16xf32> to vector<64x16xf32>
    %284 = arith.addf %282, %283 : vector<64x16xf32>
    %285 = arith.truncf %284 : vector<64x16xf32> to vector<64x16xbf16>
    %c0_67 = arith.constant 0 : index
    %c0_68 = arith.constant 0 : index
    %286 = vector.load %arg5[%c0_67, %c0_68] : memref<16x512xbf16, #tpu.memory_space<vmem>>, vector<16x512xbf16>
    %cst_69 = arith.constant dense<0.000000e+00> : vector<64x512xf32>
    %287 = tpu.matmul %285, %286, %cst_69 {dimension_numbers = #tpu.dot_dimension_numbers<[1], [0], [0], [1], [0, 0, 1, 1], [], []>} : vector<64x16xbf16>, vector<16x512xbf16>, vector<64x512xf32> -> vector<64x512xf32>
    %c0_70 = arith.constant 0 : index
    %c0_71 = arith.constant 0 : index
    %288 = vector.load %arg6[%c0_70, %c0_71] : memref<1x512xf32, #tpu.memory_space<vmem>>, vector<1x512xf32>
    %289 = vector.broadcast %288 : vector<1x512xf32> to vector<64x512xf32>
    %290 = arith.addf %287, %289 : vector<64x512xf32>
    %291 = vector.extract_strided_slice %290 {offsets = [0, 0], sizes = [64, 128], strides = [1, 1]} : vector<64x512xf32> to vector<64x128xf32>
    %292 = vector.extract_strided_slice %290 {offsets = [0, 128], sizes = [64, 128], strides = [1, 1]} : vector<64x512xf32> to vector<64x128xf32>
    %293 = vector.extract_strided_slice %290 {offsets = [0, 256], sizes = [64, 128], strides = [1, 1]} : vector<64x512xf32> to vector<64x128xf32>
    %294 = vector.extract_strided_slice %290 {offsets = [0, 384], sizes = [64, 128], strides = [1, 1]} : vector<64x512xf32> to vector<64x128xf32>
    %c1_i32 = arith.constant 1 : i32
    %295 = tpu.dynamic_rotate %292 by %c1_i32 dim 0 : vector<64x128xf32>, i32 -> vector<64x128xf32>
    %c0_72 = arith.constant 0 : index
    %c0_73 = arith.constant 0 : index
    %296 = vector.load %arg8[%c0_72, %c0_73] : memref<64x1xf32, #tpu.memory_space<vmem>>, vector<64x1xf32>
    %297 = vector.broadcast %296 : vector<64x1xf32> to vector<64x128xf32>
    %298 = arith.mulf %295, %297 : vector<64x128xf32>
    %c63_i32 = arith.constant 63 : i32
    %299 = tpu.dynamic_rotate %294 by %c63_i32 dim 0 : vector<64x128xf32>, i32 -> vector<64x128xf32>
    %c0_74 = arith.constant 0 : index
    %c0_75 = arith.constant 0 : index
    %300 = vector.load %arg9[%c0_74, %c0_75] : memref<64x1xf32, #tpu.memory_space<vmem>>, vector<64x1xf32>
    %301 = vector.broadcast %300 : vector<64x1xf32> to vector<64x128xf32>
    %302 = arith.mulf %299, %301 : vector<64x128xf32>
    %303 = arith.addf %298, %293 : vector<64x128xf32>
    %304 = arith.addf %303, %302 : vector<64x128xf32>
    %305 = arith.truncf %291 : vector<64x128xf32> to vector<64x128xbf16>
    %306 = arith.truncf %304 : vector<64x128xf32> to vector<64x128xbf16>
    %cst_76 = arith.constant 5.000000e-01 : bf16
    %307 = vector.broadcast %cst_76 : bf16 to vector<64x128xbf16>
    %308 = arith.mulf %307, %306 : vector<64x128xbf16>
    %cst_77 = arith.constant 4.467770e-02 : bf16
    %309 = vector.broadcast %cst_77 : bf16 to vector<64x128xbf16>
    %310 = arith.mulf %309, %306 : vector<64x128xbf16>
    %311 = arith.mulf %310, %306 : vector<64x128xbf16>
    %312 = arith.mulf %311, %306 : vector<64x128xbf16>
    %313 = arith.addf %306, %312 : vector<64x128xbf16>
    %cst_78 = arith.constant 7.968750e-01 : bf16
    %314 = vector.broadcast %cst_78 : bf16 to vector<64x128xbf16>
    %315 = arith.mulf %314, %313 : vector<64x128xbf16>
    %316 = math.tanh %315 : vector<64x128xbf16>
    %cst_79 = arith.constant 1.000000e+00 : bf16
    %317 = vector.broadcast %cst_79 : bf16 to vector<64x128xbf16>
    %318 = arith.addf %317, %316 : vector<64x128xbf16>
    %319 = arith.mulf %308, %318 : vector<64x128xbf16>
    %320 = arith.mulf %305, %319 : vector<64x128xbf16>
    %cst_80 = arith.constant 5.000000e-01 : bf16
    %321 = vector.broadcast %cst_80 : bf16 to vector<64x128xbf16>
    %322 = arith.mulf %321, %305 : vector<64x128xbf16>
    %cst_81 = arith.constant 4.467770e-02 : bf16
    %323 = vector.broadcast %cst_81 : bf16 to vector<64x128xbf16>
    %324 = arith.mulf %323, %305 : vector<64x128xbf16>
    %325 = arith.mulf %324, %305 : vector<64x128xbf16>
    %326 = arith.mulf %325, %305 : vector<64x128xbf16>
    %327 = arith.addf %305, %326 : vector<64x128xbf16>
    %cst_82 = arith.constant 7.968750e-01 : bf16
    %328 = vector.broadcast %cst_82 : bf16 to vector<64x128xbf16>
    %329 = arith.mulf %328, %327 : vector<64x128xbf16>
    %330 = math.tanh %329 : vector<64x128xbf16>
    %cst_83 = arith.constant 1.000000e+00 : bf16
    %331 = vector.broadcast %cst_83 : bf16 to vector<64x128xbf16>
    %332 = arith.addf %331, %330 : vector<64x128xbf16>
    %333 = arith.mulf %322, %332 : vector<64x128xbf16>
    %334 = arith.mulf %306, %333 : vector<64x128xbf16>
    %335 = arith.addf %320, %334 : vector<64x128xbf16>
    %c0_84 = arith.constant 0 : index
    %c0_85 = arith.constant 0 : index
    %336 = vector.load %arg7[%c0_84, %c0_85] : memref<128x16xbf16, #tpu.memory_space<vmem>>, vector<128x16xbf16>
    %cst_86 = arith.constant dense<0.000000e+00> : vector<64x16xf32>
    %337 = tpu.matmul %335, %336, %cst_86 {dimension_numbers = #tpu.dot_dimension_numbers<[1], [0], [0], [1], [0, 0, 1, 1], [], []>} : vector<64x128xbf16>, vector<128x16xbf16>, vector<64x16xf32> -> vector<64x16xf32>
    %338 = vector.broadcast %10 : vector<1x16xf32> to vector<64x16xf32>
    %339 = arith.addf %337, %338 : vector<64x16xf32>
    %340 = arith.addf %1, %339 : vector<64x16xf32>
    %c0_87 = arith.constant 0 : index
    %c0_88 = arith.constant 0 : index
    %c0_89 = arith.constant 0 : index
    %341 = vector.load %arg10[%c0_87, %c0_88, %c0_89] : memref<1x64x16xf32, #tpu.memory_space<vmem>>, vector<1x64x16xf32>
    %342 = vector.shape_cast %341 : vector<1x64x16xf32> to vector<64x16xf32>
    %343 = vector.shape_cast %340 : vector<64x16xf32> to vector<1x64x16xf32>
    tpu.vector_store %arg10[%c0_87, %c0_88, %c0_89], %343 {strides = array<i32>} : memref<1x64x16xf32, #tpu.memory_space<vmem>>, vector<1x64x16xf32>,
    return
  }
  func.func @transform_0(%arg0: i32) -> (i32, i32, i32) {
    %c0_i32 = arith.constant 0 : i32
    %c0_i32_0 = arith.constant 0 : i32
    %c0_i32_1 = arith.constant 0 : i32
    return %arg0, %c0_i32, %c0_i32_0 : i32, i32, i32
  }
  func.func @transform_1(%arg0: i32) -> (i32, i32) {
    %c0_i32 = arith.constant 0 : i32
    %c0_i32_0 = arith.constant 0 : i32
    %c0_i32_1 = arith.constant 0 : i32
    return %c0_i32, %c0_i32_0 : i32, i32
  }
  func.func @transform_2(%arg0: i32) -> (i32, i32) {
    %c0_i32 = arith.constant 0 : i32
    %c0_i32_0 = arith.constant 0 : i32
    %c0_i32_1 = arith.constant 0 : i32
    return %c0_i32, %c0_i32_0 : i32, i32
  }
  func.func @transform_3(%arg0: i32) -> (i32, i32) {
    %c0_i32 = arith.constant 0 : i32
    %c0_i32_0 = arith.constant 0 : i32
    %c0_i32_1 = arith.constant 0 : i32
    return %c0_i32, %c0_i32_0 : i32, i32
  }
  func.func @transform_4(%arg0: i32) -> (i32, i32) {
    %c0_i32 = arith.constant 0 : i32
    %c0_i32_0 = arith.constant 0 : i32
    %c0_i32_1 = arith.constant 0 : i32
    return %c0_i32, %c0_i32_0 : i32, i32
  }
  func.func @transform_5(%arg0: i32) -> (i32, i32) {
    %c0_i32 = arith.constant 0 : i32
    %c0_i32_0 = arith.constant 0 : i32
    %c0_i32_1 = arith.constant 0 : i32
    return %c0_i32, %c0_i32_0 : i32, i32
  }
  func.func @transform_6(%arg0: i32) -> (i32, i32) {
    %c0_i32 = arith.constant 0 : i32
    %c0_i32_0 = arith.constant 0 : i32
    %c0_i32_1 = arith.constant 0 : i32
    return %c0_i32, %c0_i32_0 : i32, i32
  }
  func.func @transform_7(%arg0: i32) -> (i32, i32) {
    %c0_i32 = arith.constant 0 : i32
    %c0_i32_0 = arith.constant 0 : i32
    %c0_i32_1 = arith.constant 0 : i32
    return %c0_i32, %c0_i32_0 : i32, i32
  }
  func.func @transform_8(%arg0: i32) -> (i32, i32) {
    %c0_i32 = arith.constant 0 : i32
    %c0_i32_0 = arith.constant 0 : i32
    %c0_i32_1 = arith.constant 0 : i32
    return %c0_i32, %c0_i32_0 : i32, i32
  }
  func.func @transform_9(%arg0: i32) -> (i32, i32, i32) {
    %c0_i32 = arith.constant 0 : i32
    %c0_i32_0 = arith.constant 0 : i32
    %c0_i32_1 = arith.constant 0 : i32
    return %arg0, %c0_i32, %c0_i32_0 : i32, i32, i32
  }
}

</mosaic_0001>

<bundles_post_ra>
// kernel: tpu_custom_call.1
= control target key start
LH: loop header
LB: loop body
LE: loop exit
PB: predicated region body
PF: predicated region fallthrough
CT: control target
= control target key end

     0   :  { %s2906_s30 = smov 0   ;;  %s3958_s0 = inlined_call_operand.vmem [shape: f32[2,64,16], index: 0, kind: input, shape index: {}]   ;;  %s3959_s1 = inlined_call_operand.vmem [shape: f32[10,16], index: 1, kind: input, shape index: {}]   ;;  %s3960_s2 = inlined_call_operand.vmem [shape: f32[32,16], index: 2, kind: input, shape index: {}]   ;;  %s3961_s3 = inlined_call_operand.vmem [shape: bf16[16,32], index: 3, kind: input, shape index: {}]   ;;  %s3962_s4 = inlined_call_operand.vmem [shape: bf16[16,512], index: 4, kind: input, shape index: {}]   ;;  %s3963_s5 = inlined_call_operand.vmem [shape: f32[1,512], index: 5, kind: input, shape index: {}]   ;;  %s3964_s6 = inlined_call_operand.vmem [shape: bf16[128,16], index: 6, kind: input, shape index: {}]   ;;  %s3965_s7 = inlined_call_operand.vmem [shape: f32[64,1], index: 7, kind: input, shape index: {}]   ;;  %s3966_s8 = inlined_call_operand.vmem [shape: f32[64,1], index: 8, kind: input, shape index: {}]   ;;  %s3967_s9 = inlined_call_operand.vmem [shape: f32[2,64,16], index: 9, kind: output, shape index: {}]  }
   0x1 LB: > { %s2596_s10 = sadd.s32 4294967295, %s2851_s30   ;;  %p2600_p0 = scmp.ge.s32.totalorder %s2851_s30, 1  ;;  %s2851_s30 = sphi %s2906_s30, %s19_s30  }
   0x2   : > { %p287_p1 = scmp.lt.s32.totalorder %s2851_s30, 3 }
   0x4   : > { %p288_p2 = pnand %p2600_p0, %p287_p1 }
   0x5   : > { %p323_p3 = scmp.lt.s32.totalorder (!%p288_p2), %s2596_s10, 1 }
   0x6   : > { %291 = sbr.rel (%p288_p2) target bundleno = 3603 (0xe13), region = 56 }
   0xb   : > { %s3975_s10 = smov (!%p323_p3, %s2596_s10), 1  ;;  %vm352_vm0 = vcmask 130048   ;;  %v2853_v4 = vmov 16.0   ;;  %v2939_v35 = vld [vmem:[%s3959_s1] ss:$0 sm:$0xff]  ;;  %v2960_v50 = vld [vmem:[%s3960_s2 + $0x8] sm:$0xff] }
   0xc   : > { %s2703_s11 = sshll.u32 %s3975_s10, 6  ;;  %2763 = vrcp.f32 %v2853_v4  ;;  %v2944_v39 = vld [vmem:[%s3959_s1 + $0x1] ss:$0 sm:$0xff]  ;;  %v2967_v51 = vld [vmem:[%s3960_s2 + $0x10] sm:$0xff]  ;;  %v2974_v52 = vld [vmem:[%s3960_s2 + $0x18] sm:$0xff] }
   0xd   : > { %s2922_s14 = scalar_lea.vmem %s3958_s0, %s2703_s11  ;;  %v2953_v49 = vld [vmem:[%s3960_s2] sm:$0xff]  ;;  %s3929_s28 = scalar_lea.vmem %s3967_s9, %s2703_s11 }
   0xe   : > { %v335_v0 = vld [vmem:[%s2922_s14 + $0x8] sm:$0xff]  ;;  %v334_v2 = vld [vmem:[%s2922_s14] sm:$0xff] }
   0xf   : > { %v356_v1 = vsel %vm352_vm0, %v335_v0, 0.0  ;;  %v353_v3 = vsel %vm352_vm0, %v334_v2, 0.0 }
  0x10   : > { %357 = vadd.xlane.f32.xlu0 %v356_v1 }
  0x12   : > { %v2764_v5 = vpop.eup %2763 }
  0x13   : > { %v378_v6 = vmul.f32 16.0, %v2764_v5  ;;  %vm382_vm1 = vweird.f32 %v2764_v5 }
  0x15   : > { %v379_v7 = vsub.f32 1.0, %v378_v6 }
  0x17   : > { %v380_v8 = vmul.f32 %v2764_v5, %v379_v7  ;;  %v2854_v7 = vmov 0.0  }
  0x18   : > { %354 = vadd.xlane.f32.xlu0 %v353_v3  ;;  %v560_v3 = vlaneseq }
  0x19   : > { %v381_v9 = vadd.f32 %v2764_v5, %v380_v8 }
  0x1a   : > { %v3002_v4 = vand.u32 127, %v560_v3 }
  0x1b   : > { %v2928_v10 = vsel %vm382_vm1, %v2764_v5, %v381_v9 }
  0x1c   : > { %vm562_vm8 = vcmp.lt.s32.totalorder %v3002_v4, 9 }
  0x83   : > { %v358_v11 = vpop.xlane.xlu0 %357 }
  0x84   : > { %v385_v12 = vmul.f32 %v2928_v10, %v358_v11 }
  0x86   : > { %v393_v13 = vsub.f32 %v335_v0, %v385_v12 }
  0x88   : > { %v401_v14 = vmul.f32 %v393_v13, %v393_v13 }
  0x8a   : > { %v411_v15 = vsel %vm352_vm0, %v401_v14, 0.0  ;;  %v337_v14 = vld [vmem:[%s2922_s14 + $0x18] sm:$0xff] }
  0x8b   : > { %412 = vadd.xlane.f32.xlu1 %v411_v15  ;;  %v355_v16 = vpop.xlane.xlu0 %354 }
  0x8c   : > { %v384_v17 = vmul.f32 %v2928_v10, %v355_v16  ;;  %v362_v16 = vsel %vm352_vm0, %v337_v14, 0.0 }
  0x8e   : > { %v392_v18 = vsub.f32 %v334_v2, %v384_v17  ;;  %v3019_v17 = vshrl.u32 %v560_v3, 7 }
  0x90   : > { %v400_v19 = vmul.f32 %v392_v18, %v392_v18 }
  0x92   : > { %v408_v20 = vsel %vm352_vm0, %v400_v19, 0.0  ;;  %v3022_v19 = vadd.s32 8, %v3019_v17 }
  0x93   : > { %409 = vadd.xlane.f32.xlu1 %v408_v20 }
  0x94   : > { %vm567_vm14 = vcmp.lt.s32.totalorder %v3022_v19, 9 }
  0xfe   : > { %v413_v21 = vpop.xlane.xlu1 %412 }
  0xff   : > { %v433_v22 = vmul.f32 %v413_v21, %v2928_v10 }
 0x101   : > { %v441_v23 = vadd.f32 1e-05, %v433_v22 }
 0x103   : > { %2765 = vrsqrt.f32 %v441_v23  ;;  %vm464_vm3 = vweird.f32 %v441_v23 }
 0x106   : > { %v410_v24 = vpop.xlane.xlu1 %409 }
 0x107   : > { %v432_v25 = vmul.f32 %v410_v24, %v2928_v10  ;;  %v3029_v24 = vld [vmem:[%s2922_s14 + $0x38] sm:$0xff] }
 0x109   : > { %v2766_v26 = vpop.eup %2765  ;;  %v440_v27 = vadd.f32 1e-05, %v432_v25 }
 0x10a   : > { %v459_v28 = vmul.f32 %v2766_v26, %v441_v23  ;;  %vm465_vm2 = vweird.f32 %v2766_v26 }
 0x10b   : > { %2767 = vrsqrt.f32 %v440_v27  ;;  %vm466_vm4 = vmor %vm464_vm3, %vm465_vm2  ;;  %vm454_vm6 = vweird.f32 %v440_v27 }
 0x10c   : > { %v460_v29 = vmul.f32 %v2766_v26, %v459_v28 }
 0x10e   : > { %v461_v30 = vmul.f32 0.5, %v460_v29 }
 0x110   : > { %v462_v31 = vsub.f32 1.5, %v461_v30 }
 0x111   : > { %v2768_v32 = vpop.eup %2767 }
 0x112   : > { %v449_v33 = vmul.f32 %v2768_v32, %v440_v27  ;;  %v463_v34 = vmul.f32 %v2766_v26, %v462_v31  ;;  %vm455_vm5 = vweird.f32 %v2768_v32  ;;  %v374_v27 = vsel %vm352_vm0, %v3029_v24, 0.0 }
 0x113   : > { %vm456_vm7 = vmor %vm454_vm6, %vm455_vm5 }
 0x114   : > { %v450_v36 = vmul.f32 %v2768_v32, %v449_v33  ;;  %v467_v37 = vsel %vm466_vm4, %v2766_v26, %v463_v34 }
 0x115   : > { %v529_v38 = vmul.f32 %v467_v37, %v393_v13  ;;  %v336_v13 = vld [vmem:[%s2922_s14 + $0x10] sm:$0xff] }
 0x116   : > { %v451_v40 = vmul.f32 0.5, %v450_v36  ;;  %v359_v15 = vsel %vm352_vm0, %v336_v13, 0.0  ;;  %v339_v36 = vld [vmem:[%s2922_s14 + $0x28] sm:$0xff] }
 0x117   : > { %v538_v41 = vmul.f32 %v2939_v35, %v529_v38  ;;  %v368_v37 = vsel %vm352_vm0, %v339_v36, 0.0  ;;  %v338_v38 = vld [vmem:[%s2922_s14 + $0x20] sm:$0xff] }
 0x118   : > { %v452_v42 = vsub.f32 1.5, %v451_v40  ;;  %v365_v40 = vsel %vm352_vm0, %v338_v38, 0.0 }
 0x119   : > { %v547_v43 = vadd.f32 %v2944_v39, %v538_v41 }
 0x11a   : > { %v453_v44 = vmul.f32 %v2768_v32, %v452_v42 }
 0x11b   : > { %594 = vmatpush.msra.mxu0 %v547_v43 }
 0x11c   : > { %v457_v45 = vsel %vm456_vm7, %v2768_v32, %v453_v44 }
 0x11d   : > { %v528_v46 = vmul.f32 %v457_v45, %v392_v18 }
 0x11f   : > { %v537_v47 = vmul.f32 %v2939_v35, %v528_v46 }
 0x121   : > { %v546_v48 = vadd.f32 %v2944_v39, %v537_v47 }
 0x123   : > { %595 = vmatpush.msra.mxu0 %v546_v48 }
 0x124   : > { %2605 = vmatmul.msk.f32.vlgmr.msra.gmra.mxu0 %vm352_vm0, %v2953_v49 }
 0x12c   : > { %2606 = vmatmul.msk.f32.gmra.mxu0 %vm352_vm0, %v2960_v50 }
 0x134   : > { %2607 = vmatmul.msk.f32.gmra.mxu0 %vm352_vm0, %v2967_v51 }
 0x13c   : > { %2608 = vmatmul.msk.f32.gmra.mxu0 %vm352_vm0, %v2974_v52 }
 0x1a1   : > { %v2978_v53 = vpop.f32.mrf.mxu0 }
 0x1a2   : > { %v609_v56 = vmul.f32 %v2978_v53, %v2978_v53 }
 0x1a9   : > { %v2980_v54 = vpop.f32.mrf.mxu0 }
 0x1aa   : > { %v610_v61 = vmul.f32 %v2980_v54, %v2980_v54 }
 0x1b1   : > { %v2982_v55 = vpop.f32.mrf.mxu0 }
 0x1b2   : > { %v611_v57 = vmul.f32 %v2982_v55, %v2982_v55 }
 0x1b4   : > { %v613_v58 = vadd.f32 %v611_v57, %v609_v56 }
 0x1b6   : > { %v615_v59 = vsel %vm352_vm0, %v613_v58, 0.0 }
 0x1b7   : > { %616 = vadd.xlane.f32.xlu2 %v615_v59 }
 0x1b9   : > { %v2989_v60 = vpop.f32.mrf.mxu0 }
 0x1ba   : > { %v612_v62 = vmul.f32 %v2989_v60, %v2989_v60 }
 0x1bc   : > { %v614_v63 = vadd.f32 %v612_v62, %v610_v61 }
 0x1be   : > { %v618_v0 = vsel %vm352_vm0, %v614_v63, 0.0 }
 0x1bf   : > { %619 = vadd.xlane.f32.xlu2 %v618_v0 }
 0x22a   : > { %v2996_v1 = vpop.xlane.xlu2 %616 }
 0x22b   : > { %621 = vxpose.xlu0.b32.start [1/2] (short) (narrow) %v2996_v1, 8 }
 0x232   : > { %v2999_v2 = vpop.xlane.xlu2 %619 }
 0x233   : > { %622 = vxpose.xlu0.b32.end [2/2] (short) (narrow) %v2999_v2, 8 }
 0x2a4   : > { %375 = vadd.xlane.f32.xlu0 %v374_v27 }
 0x2cf   : > { %v637_v5 = vpop.trf.xlu0 }
 0x2d0   : > { %v653_v6 = vperm.slane %v637_v5, 0 }
 0x2d2   : > { %vm654_vm9 = vcmp.le.f32.partialorder %v653_v6, %v2996_v1  ;;  %vm655_vm10 = vcmp.le.f32.partialorder %v653_v6, %v2999_v2 }
 0x2d3   : > { %vm659_vm11 = vmand %vm562_vm8, %vm655_vm10 }
 0x2d4   : > { %v661_v8 = vsel %vm659_vm11, 1.0, %v2854_v7  ;;  %vm658_vm12 = vmand %vm562_vm8, %vm654_vm9  ;;  %vm706_vm9 = vcmask 122880  }
 0x2d5   : > { %v665_v9 = vsel %vm352_vm0, %v661_v8, 0.0  ;;  %v660_v11 = vsel %vm658_vm12, 1.0, %v2854_v7 }
 0x2d6   : > { %666 = vadd.xlane.f32.xlu2 %v665_v9  ;;  %v662_v12 = vsel %vm352_vm0, %v660_v11, 0.0 }
 0x2d7   : > { %663 = vadd.xlane.f32.xlu1 %v662_v12 }
 0x2de   : > { %360 = vadd.xlane.f32.xlu2 %v359_v15 }
 0x2df   : > { %363 = vadd.xlane.f32.xlu1 %v362_v16 }
 0x349   : > { %v667_v18 = vpop.xlane.xlu2 %666 }
 0x34a   : > { %v664_v20 = vpop.xlane.xlu1 %663  ;;  %vm669_vm15 = vcmp.ge.f32.partialorder %v667_v18, 5.0 }
 0x34b   : > { %vm668_vm13 = vcmp.ge.f32.partialorder %v664_v20, 5.0  ;;  %vm671_vm1 = vmand %vm567_vm14, %vm669_vm15 }
 0x34c   : > { %v672_v21 = vsel %vm668_vm13, %v2996_v1, inf  ;;  %v673_v28 = vsel %vm671_vm1, %v2999_v2, inf }
 0x34d   : > { %674 = vxpose.xlu1.b32.start [1/2] (short) (narrow) %v672_v21, 8 }
 0x351   : > { %v361_v22 = vpop.xlane.xlu2 %360 }
 0x352   : > { %v364_v23 = vpop.xlane.xlu1 %363  ;;  %v386_v26 = vmul.f32 %v2928_v10, %v361_v22 }
 0x353   : > { %v387_v25 = vmul.f32 %v2928_v10, %v364_v23 }
 0x354   : > { %v394_v30 = vsub.f32 %v336_v13, %v386_v26 }
 0x355   : > { %v395_v29 = vsub.f32 %v337_v14, %v387_v25  ;;  %675 = vxpose.xlu1.b32.end [2/2] (short) (narrow) %v673_v28, 8  ;;  %v3059_v28 = vld [vmem:[%s2922_s14 + $0x30] sm:$0xff] }
 0x356   : > { %v402_v33 = vmul.f32 %v394_v30, %v394_v30 }
 0x357   : > { %v403_v31 = vmul.f32 %v395_v29, %v395_v29 }
 0x358   : > { %v414_v34 = vsel %vm352_vm0, %v402_v33, 0.0 }
 0x359   : > { %v417_v32 = vsel %vm352_vm0, %v403_v31, 0.0  ;;  %v376_v31 = vpop.xlane.xlu0 %375 }
 0x35a   : > { %418 = vadd.xlane.f32.xlu2 %v417_v32  ;;  %v391_v33 = vmul.f32 %v2928_v10, %v376_v31 }
 0x362   : > { %415 = vadd.xlane.f32.xlu2 %v414_v34 }
 0x36a   : > { %369 = vadd.xlane.f32.xlu2 %v368_v37 }
 0x372   : > { %366 = vadd.xlane.f32.xlu2 %v365_v40  ;;  %v2855_v40 = vmov 0  }
 0x373   : > { %2730 = vset.pattern.permute.xlu2 %v2855_v40 }
 0x3cd   : > { %v419_v41 = vpop.xlane.xlu2 %418 }
 0x3ce   : > { %v435_v42 = vmul.f32 %v419_v41, %v2928_v10 }
 0x3d0   : > { %v443_v43 = vadd.f32 1e-05, %v435_v42 }
 0x3d2   : > { %2769 = vrsqrt.f32 %v443_v43  ;;  %vm484_vm2 = vweird.f32 %v443_v43 }
 0x3d5   : > { %v416_v44 = vpop.xlane.xlu2 %415 }
 0x3d6   : > { %v434_v45 = vmul.f32 %v416_v44, %v2928_v10 }
 0x3d8   : > { %v2770_v46 = vpop.eup %2769  ;;  %v442_v47 = vadd.f32 1e-05, %v434_v45 }
 0x3d9   : > { %v479_v48 = vmul.f32 %v2770_v46, %v443_v43  ;;  %vm485_vm3 = vweird.f32 %v2770_v46 }
 0x3da   : > { %2771 = vrsqrt.f32 %v442_v47  ;;  %vm486_vm4 = vmor %vm484_vm2, %vm485_vm3  ;;  %vm474_vm5 = vweird.f32 %v442_v47 }
 0x3db   : > { %v480_v56 = vmul.f32 %v2770_v46, %v479_v48 }
 0x3dd   : > { %v481_v57 = vmul.f32 0.5, %v480_v56  ;;  %v370_v58 = vpop.xlane.xlu2 %369 }
 0x3de   : > { %v389_v59 = vmul.f32 %v2928_v10, %v370_v58 }
 0x3df   : > { %v482_v61 = vsub.f32 1.5, %v481_v57 }
 0x3e0   : > { %v2772_v62 = vpop.eup %2771  ;;  %v3045_v63 = vsub.f32 %v339_v36, %v389_v59  ;;  %v399_v36 = vsub.f32 %v3029_v24, %v391_v33 }
 0x3e1   : > { %v469_v0 = vmul.f32 %v2772_v62, %v442_v47  ;;  %v483_v3 = vmul.f32 %v2770_v46, %v482_v61  ;;  %vm475_vm6 = vweird.f32 %v2772_v62 }
 0x3e2   : > { %v405_v5 = vmul.f32 %v3045_v63, %v3045_v63  ;;  %vm476_vm7 = vmor %vm474_vm5, %vm475_vm6  ;;  %v407_v37 = vmul.f32 %v399_v36, %v399_v36 }
 0x3e3   : > { %v470_v6 = vmul.f32 %v2772_v62, %v469_v0  ;;  %v487_v8 = vsel %vm486_vm4, %v2770_v46, %v483_v3 }
 0x3e4   : > { %v423_v9 = vsel %vm352_vm0, %v405_v5, 0.0  ;;  %v531_v11 = vmul.f32 %v487_v8, %v395_v29 }
 0x3e5   : > { %v471_v12 = vmul.f32 0.5, %v470_v6  ;;  %424 = vadd.xlane.f32.xlu1 %v423_v9  ;;  %v367_v25 = vpop.xlane.xlu2 %366 }
 0x3e6   : > { %v540_v13 = vmul.f32 %v2939_v35, %v531_v11  ;;  %v388_v27 = vmul.f32 %v2928_v10, %v367_v25 }
 0x3e7   : > { %v472_v14 = vsub.f32 1.5, %v471_v12 }
 0x3e8   : > { %v549_v15 = vadd.f32 %v2944_v39, %v540_v13  ;;  %v3061_v29 = vsub.f32 %v338_v38, %v388_v27  ;;  %v429_v38 = vsel %vm352_vm0, %v407_v37, 0.0 }
 0x3e9   : > { %v473_v16 = vmul.f32 %v2772_v62, %v472_v14 }
 0x3ea   : > { %808 = vmatpush.msra.mxu2 %v549_v15  ;;  %v404_v32 = vmul.f32 %v3061_v29, %v3061_v29 }
 0x3eb   : > { %v477_v18 = vsel %vm476_vm7, %v2772_v62, %v473_v16  ;;  %v3081_v62 = vld [vmem:[%s3959_s1 + $0x9] ss:$0 sm:$0xff] }
 0x3ec   : > { %v530_v20 = vmul.f32 %v477_v18, %v394_v30  ;;  %v371_v30 = vsel %vm352_vm0, %v3059_v28, 0.0  ;;  %v420_v34 = vsel %vm352_vm0, %v404_v32, 0.0 }
 0x3ee   : > { %v539_v21 = vmul.f32 %v2939_v35, %v530_v20 }
 0x3f0   : > { %v548_v22 = vadd.f32 %v2944_v39, %v539_v21 }
 0x3f1   : > { %v690_v23 = vpop.trf.xlu1 }
 0x3f2   : > { %809 = vmatpush.msra.mxu2 %v548_v22  ;;  %v707_v26 = vsel %vm706_vm9, %v690_v23, inf }
 0x3f3   : > { %708 = vmin.xlane.f32.xlu2 %v707_v26  ;;  %2616 = vmatmul.msk.f32.vlgmr.msra.gmra.mxu2 %vm352_vm0, %v2953_v49 }
 0x3fb   : > { %372 = vadd.xlane.f32.xlu2 %v371_v30  ;;  %2617 = vmatmul.msk.f32.gmra.mxu2 %vm352_vm0, %v2960_v50 }
 0x403   : > { %421 = vadd.xlane.f32.xlu2 %v420_v34  ;;  %2618 = vmatmul.msk.f32.gmra.mxu2 %vm352_vm0, %v2967_v51 }
 0x40b   : > { %430 = vadd.xlane.f32.xlu2 %v429_v38  ;;  %2619 = vmatmul.msk.f32.gmra.mxu2 %vm352_vm0, %v2974_v52 }
 0x466   : > { %v709_v41 = vpop.xlane.xlu2 %708 }
 0x467   : > { %v710_v42 = vadd.f32 1e-06, %v709_v41 }
 0x469   : > { %v711_v43 = vperm.slane %v710_v42, 0 }
 0x46b   : > { %2773 = vrcp.f32 %v711_v43  ;;  %v723_v47 = vand.u32 2147483648, %v711_v43  ;;  %v721_v57 = vand.u32 2147483647, %v711_v43  ;;  %vm717_vm11 = vweird.f32 %v711_v43 }
 0x46d   : > { %v724_v59 = vor.u32 1.1754944e-38, %v723_v47  ;;  %vm722_vm13 = vcmp.eq.f32.partialorder %v721_v57, 8.507059e+37 }
 0x46e   : > { %v373_v44 = vpop.xlane.xlu2 %372 }
 0x46f   : > { %v390_v27 = vmul.f32 %v2928_v10, %v373_v44 }
 0x471   : > { %v2774_v24 = vpop.eup %2773  ;;  %v3098_v30 = vsub.f32 %v3059_v28, %v390_v27 }
 0x472   : > { %v713_v45 = vmul.f32 %v2774_v24, %v711_v43  ;;  %vm718_vm10 = vweird.f32 %v2774_v24  ;;  %v425_v43 = vpop.xlane.xlu1 %424 }
 0x473   : > { %vm719_vm12 = vmor %vm717_vm11, %vm718_vm10  ;;  %v406_v31 = vmul.f32 %v3098_v30, %v3098_v30 }
 0x474   : > { %v714_v46 = vsub.f32 1.0, %v713_v45 }
 0x475   : > { %v426_v33 = vsel %vm352_vm0, %v406_v31, 0.0 }
 0x476   : > { %v715_v48 = vmul.f32 %v2774_v24, %v714_v46  ;;  %v422_v56 = vpop.xlane.xlu2 %421  ;;  %v3090_v18 = vpop.f32.mrf.mxu2 }
 0x477   : > { %v823_v34 = vmul.f32 %v3090_v18, %v3090_v18  ;;  %v436_v47 = vmul.f32 %v422_v56, %v2928_v10  ;;  %v3126_v56 = vld [vmem:[%s3959_s1 + $0x6] ss:$0 sm:$0xff] }
 0x478   : > { %v716_v58 = vadd.f32 %v2774_v24, %v715_v48 }
 0x479   : > { %v444_v48 = vadd.f32 1e-05, %v436_v47 }
 0x47a   : > { %v720_v61 = vsel %vm719_vm12, %v2774_v24, %v716_v58  ;;  %v437_v24 = vmul.f32 %v425_v43, %v2928_v10 }
 0x47b   : > { %v725_v0 = vsel %vm722_vm13, %v724_v59, %v720_v61  ;;  %vm494_vm10 = vweird.f32 %v444_v48 }
 0x47c   : > { %v726_v3 = vmul.f32 %v725_v0, %v2996_v1  ;;  %v727_v5 = vmul.f32 %v725_v0, %v2999_v2  ;;  %v445_v46 = vadd.f32 1e-05, %v437_v24 }
 0x47e   : > { %v431_v6 = vpop.xlane.xlu2 %430  ;;  %vm729_vm15 = vcmp.gt.f32.partialorder %v726_v3, %v3081_v62  ;;  %vm730_vm1 = vcmp.gt.f32.partialorder %v727_v5, %v3081_v62  ;;  %v3094_v26 = vpop.f32.mrf.mxu2  ;;  %vm504_vm5 = vweird.f32 %v445_v46 }
 0x47f   : > { %v439_v8 = vmul.f32 %v431_v6, %v2928_v10  ;;  %v2609_v9 = vsel %vm729_vm15, 1.0, %v2854_v7  ;;  %v2610_v11 = vsel %vm730_vm1, 1.0, %v2854_v7  ;;  %v824_v28 = vmul.f32 %v3094_v26, %v3094_v26 }
 0x480   : > { %v2731_v12 = vpack.i.bf16 %v2610_v11, %v2609_v9 }
 0x481   : > { %v447_v13 = vadd.f32 1e-05, %v439_v8 }
 0x482   : > { %2732 = vperm.xlu2 %2730, %v2731_v12  }
 0x483   : > { %2775 = vrsqrt.f32 %v447_v13  ;;  %vm524_vm2 = vweird.f32 %v447_v13 }
 0x484   : > { %2777 = vrsqrt.f32 %v445_v46 }
 0x485   : > { %2779 = vrsqrt.f32 %v444_v48 }
 0x486   : > { %v3102_v32 = vpop.f32.mrf.mxu2 }
 0x489   : > { %v2776_v14 = vpop.eup %2775 }
 0x48a   : > { %v519_v15 = vmul.f32 %v2776_v14, %v447_v13  ;;  %vm525_vm3 = vweird.f32 %v2776_v14  ;;  %v2778_v57 = vpop.eup %2777  ;;  %v3131_v13 = vld [vmem:[%s3959_s1 + $0x7] ss:$0 sm:$0xff] }
 0x48b   : > { %vm526_vm4 = vmor %vm524_vm2, %vm525_vm3  ;;  %v499_v58 = vmul.f32 %v2778_v57, %v445_v46  ;;  %v2780_v59 = vpop.eup %2779  ;;  %vm505_vm6 = vweird.f32 %v2778_v57  ;;  %vm776_vm2 = vcmask 261120  }
 0x48c   : > { %v520_v1 = vmul.f32 %v2776_v14, %v519_v15  ;;  %v489_v0 = vmul.f32 %v2780_v59, %v444_v48  ;;  %vm3119_vm7 = vmor %vm504_vm5, %vm505_vm6  ;;  %vm495_vm11 = vweird.f32 %v2780_v59  ;;  %v3136_v15 = vld [vmem:[%s3959_s1 + $0x4] ss:$0 sm:$0xff] }
 0x48d   : > { %v500_v61 = vmul.f32 %v2778_v57, %v499_v58  ;;  %vm3145_vm12 = vmor %vm494_vm10, %vm495_vm11 }
 0x48e   : > { %v521_v16 = vmul.f32 0.5, %v520_v1  ;;  %v3109_v38 = vpop.f32.mrf.mxu2  ;;  %v490_v5 = vmul.f32 %v2780_v59, %v489_v0  ;;  %v3141_v1 = vld [vmem:[%s3959_s1 + $0x5] ss:$0 sm:$0xff] }
 0x48f   : > { %v826_v41 = vmul.f32 %v3109_v38, %v3109_v38  ;;  %v501_v3 = vmul.f32 0.5, %v500_v61 }
 0x490   : > { %v522_v2 = vsub.f32 1.5, %v521_v16  ;;  %v491_v8 = vmul.f32 0.5, %v490_v5 }
 0x491   : > { %v828_v44 = vadd.f32 %v826_v41, %v824_v28  ;;  %v502_v6 = vsub.f32 1.5, %v501_v3 }
 0x492   : > { %v523_v20 = vmul.f32 %v2776_v14, %v522_v2  ;;  %v492_v11 = vsub.f32 1.5, %v491_v8 }
 0x493   : > { %v832_v45 = vsel %vm352_vm0, %v828_v44, 0.0  ;;  %v503_v9 = vmul.f32 %v2778_v57, %v502_v6 }
 0x494   : > { %v527_v21 = vsel %vm526_vm4, %v2776_v14, %v523_v20  ;;  %v493_v20 = vmul.f32 %v2780_v59, %v492_v11 }
 0x495   : > { %v535_v22 = vmul.f32 %v527_v21, %v399_v36  ;;  %v825_v36 = vmul.f32 %v3102_v32, %v3102_v32  ;;  %v507_v21 = vsel %vm3119_vm7, %v2778_v57, %v503_v9 }
 0x496   : > { %v533_v28 = vmul.f32 %v507_v21, %v3045_v63  ;;  %v497_v41 = vsel %vm3145_vm12, %v2780_v59, %v493_v20 }
 0x497   : > { %v544_v23 = vmul.f32 %v2939_v35, %v535_v22  ;;  %v827_v37 = vadd.f32 %v825_v36, %v823_v34  ;;  %v532_v58 = vmul.f32 %v497_v41, %v3061_v29 }
 0x498   : > { %v542_v3 = vmul.f32 %v2939_v35, %v533_v28 }
 0x499   : > { %v553_v25 = vadd.f32 %v2944_v39, %v544_v23  ;;  %v829_v42 = vsel %vm352_vm0, %v827_v37, 0.0  ;;  %v541_v5 = vmul.f32 %v2939_v35, %v532_v58 }
 0x49b   : > { %1202 = vmatpush.msrb.mxu0 %v553_v25 }
 0x4ab   : > { %427 = vadd.xlane.f32.xlu2 %v426_v33 }
 0x4b3   : > { %830 = vadd.xlane.f32.xlu2 %v829_v42 }
 0x4bb   : > { %833 = vadd.xlane.f32.xlu2 %v832_v45 }
 0x4dc   : > { %v2733_v14 = vpop.permute.xlu2 %2732 }
 0x4dd   : > { %v2735_v16 = vunpack.i.h.bf16 %v2733_v14  ;;  %v2734_v2 = vunpack.i.l.bf16 %v2733_v14 }
 0x4df   : > { %v747_v23 = vmul.f32 %v3126_v56, %v2735_v16  ;;  %v753_v25 = vmul.f32 %v3131_v13, %v2735_v16  ;;  %v746_v27 = vmul.f32 %v3126_v56, %v2734_v2  ;;  %v752_v31 = vmul.f32 %v3131_v13, %v2734_v2 }
 0x4e1   : > { %v750_v33 = vadd.f32 %v3136_v15, %v747_v23  ;;  %v756_v34 = vadd.f32 %v3141_v1, %v753_v25  ;;  %v749_v36 = vadd.f32 %v3136_v15, %v746_v27  ;;  %v755_v37 = vadd.f32 %v3141_v1, %v752_v31 }
 0x4e3   : > { %v763_v42 = vmul.f32 %v755_v37, %v2978_v53  ;;  %v764_v43 = vmul.f32 %v756_v34, %v2980_v54  ;;  %v765_v44 = vmul.f32 %v749_v36, %v2982_v55  ;;  %v766_v24 = vmul.f32 %v750_v33, %v2989_v60 }
 0x4e4   : > { %v757_v45 = vmul.f32 %v749_v36, %v2978_v53  ;;  %v758_v46 = vmul.f32 %v750_v33, %v2980_v54  ;;  %v759_v47 = vmul.f32 %v755_v37, %v2982_v55  ;;  %v760_v48 = vmul.f32 %v756_v34, %v2989_v60 }
 0x4e5   : > { %v767_v63 = vadd.f32 %v765_v44, %v763_v42  ;;  %v768_v57 = vadd.f32 %v766_v24, %v764_v43  ;;  %v551_v53 = vadd.f32 %v2944_v39, %v542_v3  ;;  %v550_v54 = vadd.f32 %v2944_v39, %v541_v5 }
 0x4e6   : > { %v761_v61 = vsub.f32 %v757_v45, %v759_v47  ;;  %v762_v0 = vsub.f32 %v758_v46, %v760_v48 }
 0x4e7   : > { %v770_v59 = vpack.c.bf16 %v768_v57, %v767_v63 }
 0x4e8   : > { %v769_v6 = vpack.c.bf16 %v762_v0, %v761_v61 }
 0x4e9   : > { %786 = vmatpush.bf16.msra.mxu1 %v770_v59 }
 0x4ed   : > { %787 = vmatpush.bf16.msra.mxu1 %v769_v6 }
 0x4f1   : > { %1005 = vmatpush.msrb.mxu1 %v551_v53 }
 0x4f3   : > { %1006 = vmatpush.msrb.mxu1 %v550_v54 }
 0x51e   : > { %v428_v55 = vpop.xlane.xlu2 %427 }
 0x51f   : > { %v438_v60 = vmul.f32 %v428_v55, %v2928_v10 }
 0x521   : > { %v446_v29 = vadd.f32 1e-05, %v438_v60 }
 0x523   : > { %2781 = vrsqrt.f32 %v446_v29  ;;  %vm514_vm15 = vweird.f32 %v446_v29 }
 0x526   : > { %v3174_v8 = vpop.xlane.xlu2 %830 }
 0x527   : > { %835 = vxpose.xlu2.b32.start [1/2] (short) (narrow) %v3174_v8, 8 }
 0x529   : > { %v2782_v9 = vpop.eup %2781 }
 0x52a   : > { %v509_v11 = vmul.f32 %v2782_v9, %v446_v29  ;;  %vm515_vm13 = vweird.f32 %v2782_v9 }
 0x52b   : > { %vm516_vm1 = vmor %vm514_vm15, %vm515_vm13 }
 0x52c   : > { %v510_v12 = vmul.f32 %v2782_v9, %v509_v11 }
 0x52e   : > { %v511_v14 = vmul.f32 0.5, %v510_v12  ;;  %v3177_v16 = vpop.xlane.xlu2 %833 }
 0x52f   : > { %836 = vxpose.xlu2.b32.end [2/2] (short) (narrow) %v3177_v16, 8 }
 0x530   : > { %v512_v2 = vsub.f32 1.5, %v511_v14 }
 0x532   : > { %v513_v20 = vmul.f32 %v2782_v9, %v512_v2 }
 0x534   : > { %v517_v21 = vsel %vm516_vm1, %v2782_v9, %v513_v20 }
 0x535   : > { %v534_v22 = vmul.f32 %v517_v21, %v3098_v30  ;;  %v3194_v30 = vld [vmem:[%s3961_s3] sm:$0xff] }
 0x536   : > { %2615 = vmatmul.msk.bf16.vlgmr.msra.gmra.mxu1 %vm776_vm2, %v3194_v30 }
 0x537   : > { %v543_v23 = vmul.f32 %v2939_v35, %v534_v22 }
 0x539   : > { %v552_v25 = vadd.f32 %v2944_v39, %v543_v23 }
 0x53b   : > { %1203 = vmatpush.msrb.mxu0 %v552_v25 }
 0x53c   : > { %2630 = vmatmul.msk.f32.vlgmr.msrb.gmra.mxu0 %vm352_vm0, %v2953_v49 }
 0x544   : > { %2631 = vmatmul.msk.f32.gmra.mxu0 %vm352_vm0, %v2960_v50 }
 0x546   : > { %2623 = vmatmul.msk.f32.vlgmr.msrb.gmra.mxu1 %vm352_vm0, %v2953_v49 }
 0x54c   : > { %2632 = vmatmul.msk.f32.gmra.mxu0 %vm352_vm0, %v2967_v51 }
 0x54e   : > { %2624 = vmatmul.msk.f32.gmra.mxu1 %vm352_vm0, %v2960_v50 }
 0x554   : > { %2633 = vmatmul.msk.f32.gmra.mxu0 %vm352_vm0, %v2974_v52 }
 0x556   : > { %2625 = vmatmul.msk.f32.gmra.mxu1 %vm352_vm0, %v2967_v51 }
 0x55e   : > { %2626 = vmatmul.msk.f32.gmra.mxu1 %vm352_vm0, %v2974_v52 }
 0x5b3   : > { %v3244_v52 = vpop.f32.mrf.mxu1 }
 0x5b9   : > { %v3196_v35 = vpop.f32.mrf.mxu0 }
 0x5ba   : > { %v1217_v41 = vmul.f32 %v3196_v35, %v3196_v35 }
 0x5bb   : > { %v3246_v59 = vpop.f32.mrf.mxu1 }
 0x5c0   : > { %v851_v39 = vpop.trf.xlu2 }
 0x5c1   : > { %v867_v27 = vperm.slane %v851_v39, 0  ;;  %v3200_v31 = vpop.f32.mrf.mxu0 }
 0x5c2   : > { %v1218_v45 = vmul.f32 %v3200_v31, %v3200_v31 }
 0x5c3   : > { %vm868_vm3 = vcmp.le.f32.partialorder %v867_v27, %v3174_v8  ;;  %vm869_vm4 = vcmp.le.f32.partialorder %v867_v27, %v3177_v16  ;;  %v3248_v61 = vpop.f32.mrf.mxu1 }
 0x5c4   : > { %vm871_vm5 = vmand %vm562_vm8, %vm869_vm4  ;;  %v1020_v5 = vmul.f32 %v3248_v61, %v3248_v61 }
 0x5c5   : > { %v873_v33 = vsel %vm871_vm5, 1.0, %v2854_v7  ;;  %vm870_vm6 = vmand %vm562_vm8, %vm868_vm3 }
 0x5c6   : > { %v877_v34 = vsel %vm352_vm0, %v873_v33, 0.0  ;;  %v872_v36 = vsel %vm870_vm6, 1.0, %v2854_v7 }
 0x5c7   : > { %878 = vadd.xlane.f32.xlu1 %v877_v34  ;;  %v874_v37 = vsel %vm352_vm0, %v872_v36, 0.0 }
 0x5c8   : > { %875 = vadd.xlane.f32.xlu0 %v874_v37 }
 0x5c9   : > { %v3212_v28 = vpop.f32.mrf.mxu0 }
 0x5ca   : > { %v1219_v42 = vmul.f32 %v3212_v28, %v3212_v28 }
 0x5cb   : > { %v3250_v0 = vpop.f32.mrf.mxu1 }
 0x5cc   : > { %v1221_v43 = vadd.f32 %v1219_v42, %v1217_v41  ;;  %v1021_v55 = vmul.f32 %v3250_v0, %v3250_v0 }
 0x5ce   : > { %v1223_v44 = vsel %vm352_vm0, %v1221_v43, 0.0 }
 0x5d0   : > { %1224 = vadd.xlane.f32.xlu0 %v1223_v44 }
 0x5d1   : > { %v3221_v24 = vpop.f32.mrf.mxu0 }
 0x5d2   : > { %v1220_v49 = vmul.f32 %v3221_v24, %v3221_v24 }
 0x5d3   : > { %v3252_v3 = vpop.f32.mrf.mxu1 }
 0x5d4   : > { %v1222_v46 = vadd.f32 %v1220_v49, %v1218_v45  ;;  %v1022_v6 = vmul.f32 %v3252_v3, %v3252_v3 }
 0x5d6   : > { %v1226_v47 = vsel %vm352_vm0, %v1222_v46, 0.0  ;;  %v1024_v53 = vadd.f32 %v1022_v6, %v1020_v5 }
 0x5d7   : > { %1227 = vadd.xlane.f32.xlu1 %v1226_v47 }
 0x5d8   : > { %v1026_v29 = vsel %vm352_vm0, %v1024_v53, 0.0 }
 0x5db   : > { %v3258_v54 = vpop.f32.mrf.mxu1 }
 0x5dc   : > { %v1023_v60 = vmul.f32 %v3258_v54, %v3258_v54 }
 0x5de   : > { %v1025_v9 = vadd.f32 %v1023_v60, %v1021_v55 }
 0x5e0   : > { %v1029_v11 = vsel %vm352_vm0, %v1025_v9, 0.0 }
 0x63a   : > { %v879_v63 = vpop.xlane.xlu1 %878 }
 0x63b   : > { %v876_v48 = vpop.xlane.xlu0 %875  ;;  %vm881_vm10 = vcmp.ge.f32.partialorder %v879_v63, 5.0 }
 0x63c   : > { %vm880_vm7 = vcmp.ge.f32.partialorder %v876_v48, 5.0  ;;  %vm883_vm11 = vmand %vm567_vm14, %vm881_vm10 }
 0x63d   : > { %v884_v50 = vsel %vm880_vm7, %v3174_v8, inf  ;;  %v885_v58 = vsel %vm883_vm11, %v3177_v16, inf }
 0x63e   : > { %886 = vxpose.xlu1.b32.start [1/2] (short) (narrow) %v884_v50, 8 }
 0x643   : > { %v3237_v57 = vpop.xlane.xlu0 %1224 }
 0x644   : > { %1229 = vxpose.xlu0.b32.start [1/2] (short) (narrow) %v3237_v57, 8 }
 0x646   : > { %887 = vxpose.xlu1.b32.end [2/2] (short) (narrow) %v885_v58, 8 }
 0x64a   : > { %v3241_v51 = vpop.xlane.xlu1 %1227 }
 0x64c   : > { %1230 = vxpose.xlu0.b32.end [2/2] (short) (narrow) %v3241_v51, 8 }
 0x6bd   : > { %1027 = vadd.xlane.f32.xlu0 %v1026_v29 }
 0x6c5   : > { %1030 = vadd.xlane.f32.xlu0 %v1029_v11 }
 0x6e2   : > { %v902_v12 = vpop.trf.xlu1 }
 0x6e3   : > { %v918_v14 = vsel %vm706_vm9, %v902_v12, inf }
 0x6e4   : > { %919 = vmin.xlane.f32.xlu1 %v918_v14 }
 0x6e8   : > { %v1245_v2 = vpop.trf.xlu0 }
 0x6e9   : > { %v1261_v41 = vperm.slane %v1245_v2, 0 }
 0x6eb   : > { %vm1262_vm5 = vcmp.le.f32.partialorder %v1261_v41, %v3237_v57  ;;  %vm1263_vm11 = vcmp.le.f32.partialorder %v1261_v41, %v3241_v51 }
 0x6ec   : > { %vm1264_vm7 = vmand %vm562_vm8, %vm1262_vm5 }
 0x6ed   : > { %v1266_v50 = vsel %vm1264_vm7, 1.0, %v2854_v7 }
 0x6ee   : > { %v1268_v5 = vsel %vm352_vm0, %v1266_v50, 0.0 }
 0x730   : > { %v3267_v20 = vpop.xlane.xlu0 %1027 }
 0x731   : > { %1032 = vxpose.xlu0.b32.start [1/2] (short) (narrow) %v3267_v20, 8 }
 0x738   : > { %v3270_v21 = vpop.xlane.xlu0 %1030 }
 0x739   : > { %1033 = vxpose.xlu0.b32.end [2/2] (short) (narrow) %v3270_v21, 8 }
 0x757   : > { %v920_v22 = vpop.xlane.xlu1 %919 }
 0x758   : > { %v921_v23 = vadd.f32 1e-06, %v920_v22 }
 0x75a   : > { %v922_v25 = vperm.slane %v921_v23, 0 }
 0x75c   : > { %2783 = vrcp.f32 %v922_v25  ;;  %vm928_vm12 = vweird.f32 %v922_v25  ;;  %v934_v42 = vand.u32 2147483648, %v922_v25  ;;  %v932_v45 = vand.u32 2147483647, %v922_v25 }
 0x75e   : > { %v935_v48 = vor.u32 1.1754944e-38, %v934_v42  ;;  %vm933_vm10 = vcmp.eq.f32.partialorder %v932_v45, 8.507059e+37 }
 0x762   : > { %v2784_v39 = vpop.eup %2783 }
 0x763   : > { %v924_v27 = vmul.f32 %v2784_v39, %v922_v25  ;;  %vm929_vm1 = vweird.f32 %v2784_v39 }
 0x764   : > { %vm930_vm6 = vmor %vm928_vm12, %vm929_vm1 }
 0x765   : > { %v925_v33 = vsub.f32 1.0, %v924_v27  ;;  %vm1265_vm12 = vmand %vm562_vm8, %vm1263_vm11 }
 0x766   : > { %v1267_v55 = vsel %vm1265_vm12, 1.0, %v2854_v7 }
 0x767   : > { %v926_v36 = vmul.f32 %v2784_v39, %v925_v33  ;;  %v1271_v9 = vsel %vm352_vm0, %v1267_v55, 0.0 }
 0x769   : > { %v927_v44 = vadd.f32 %v2784_v39, %v926_v36 }
 0x76b   : > { %v931_v63 = vsel %vm930_vm6, %v2784_v39, %v927_v44 }
 0x76c   : > { %v936_v58 = vsel %vm933_vm10, %v935_v48, %v931_v63 }
 0x76d   : > { %v937_v6 = vmul.f32 %v936_v58, %v3174_v8  ;;  %v938_v53 = vmul.f32 %v936_v58, %v3177_v16 }
 0x7a0   : > { %2736 = vset.pattern.permute.xlu0 %v2855_v40 }
 0x7d5   : > { %v1048_v34 = vpop.trf.xlu0 }
 0x7d6   : > { %v1064_v37 = vperm.slane %v1048_v34, 0 }
 0x7d8   : > { %vm1065_vm13 = vcmp.le.f32.partialorder %v1064_v37, %v3267_v20  ;;  %vm1066_vm15 = vcmp.le.f32.partialorder %v1064_v37, %v3270_v21 }
 0x7d9   : > { %vm1068_vm3 = vmand %vm562_vm8, %vm1066_vm15  ;;  %vm940_vm15 = vcmp.gt.f32.partialorder %v938_v53, %v3081_v62 }
 0x7da   : > { %v1070_v43 = vsel %vm1068_vm3, 1.0, %v2854_v7  ;;  %vm1067_vm4 = vmand %vm562_vm8, %vm1065_vm13  ;;  %vm939_vm13 = vcmp.gt.f32.partialorder %v937_v6, %v3081_v62  ;;  %v2621_v29 = vsel %vm940_vm15, 1.0, %v2854_v7 }
 0x7db   : > { %v1074_v49 = vsel %vm352_vm0, %v1070_v43, 0.0  ;;  %v1069_v46 = vsel %vm1067_vm4, 1.0, %v2854_v7  ;;  %v2620_v60 = vsel %vm939_vm13, 1.0, %v2854_v7 }
 0x7dc   : > { %1075 = vadd.xlane.f32.xlu0 %v1074_v49  ;;  %v1071_v47 = vsel %vm352_vm0, %v1069_v46, 0.0  ;;  %v2737_v8 = vpack.i.bf16 %v2621_v29, %v2620_v60 }
 0x7dd   : > { %1072 = vadd.xlane.f32.xlu2 %v1071_v47 }
 0x7e5   : > { %1269 = vadd.xlane.f32.xlu2 %v1268_v5 }
 0x7ed   : > { %1272 = vadd.xlane.f32.xlu2 %v1271_v9 }
 0x7f0   : > { %2738 = vperm.xlu0 %2736, %v2737_v8  }
 0x84f   : > { %v1076_v11 = vpop.xlane.xlu0 %1075 }
 0x850   : > { %v1073_v16 = vpop.xlane.xlu2 %1072  ;;  %vm1078_vm8 = vcmp.ge.f32.partialorder %v1076_v11, 5.0 }
 0x851   : > { %vm1077_vm1 = vcmp.ge.f32.partialorder %v1073_v16, 5.0  ;;  %vm1080_vm3 = vmand %vm567_vm14, %vm1078_vm8 }
 0x852   : > { %v1081_v4 = vsel %vm1077_vm1, %v3267_v20, inf  ;;  %v1082_v12 = vsel %vm1080_vm3, %v3270_v21, inf }
 0x853   : > { %1083 = vxpose.xlu2.b32.start [1/2] (short) (narrow) %v1081_v4, 8 }
 0x858   : > { %v1270_v53 = vpop.xlane.xlu2 %1269 }
 0x859   : > { %vm1274_vm4 = vcmp.ge.f32.partialorder %v1270_v53, 5.0 }
 0x85b   : > { %1084 = vxpose.xlu2.b32.end [2/2] (short) (narrow) %v1082_v12, 8 }
 0x860   : > { %v1273_v55 = vpop.xlane.xlu2 %1272 }
 0x861   : > { %vm1275_vm5 = vcmp.ge.f32.partialorder %v1273_v55, 5.0 }
 0x862   : > { %v2739_v14 = vpop.permute.xlu0 %2738  ;;  %vm1277_vm6 = vmand %vm567_vm14, %vm1275_vm5 }
 0x863   : > { %v2741_v2 = vunpack.i.h.bf16 %v2739_v14  ;;  %v2740_v22 = vunpack.i.l.bf16 %v2739_v14 }
 0x865   : > { %v956_v23 = vmul.f32 %v3126_v56, %v2741_v2  ;;  %v960_v25 = vmul.f32 %v3131_v13, %v2741_v2  ;;  %v955_v39 = vmul.f32 %v3126_v56, %v2740_v22  ;;  %v959_v27 = vmul.f32 %v3131_v13, %v2740_v22 }
 0x867   : > { %v958_v33 = vadd.f32 %v3136_v15, %v956_v23  ;;  %v962_v34 = vadd.f32 %v3141_v1, %v960_v25  ;;  %v957_v36 = vadd.f32 %v3136_v15, %v955_v39  ;;  %v961_v37 = vadd.f32 %v3141_v1, %v959_v27 }
 0x869   : > { %v969_v41 = vmul.f32 %v961_v37, %v3090_v18  ;;  %v970_v42 = vmul.f32 %v962_v34, %v3094_v26  ;;  %v971_v43 = vmul.f32 %v957_v36, %v3102_v32  ;;  %v972_v44 = vmul.f32 %v958_v33, %v3109_v38 }
 0x86a   : > { %v963_v45 = vmul.f32 %v957_v36, %v3090_v18  ;;  %v964_v49 = vmul.f32 %v958_v33, %v3094_v26  ;;  %v965_v46 = vmul.f32 %v961_v37, %v3102_v32  ;;  %v966_v47 = vmul.f32 %v962_v34, %v3109_v38 }
 0x86b   : > { %v973_v48 = vadd.f32 %v971_v43, %v969_v41  ;;  %v974_v63 = vadd.f32 %v972_v44, %v970_v42  ;;  %v1278_v32 = vsel %vm1274_vm4, %v3237_v57, inf  ;;  %v1279_v38 = vsel %vm1277_vm6, %v3241_v51, inf }
 0x86c   : > { %v967_v58 = vsub.f32 %v963_v45, %v965_v46  ;;  %v968_v5 = vsub.f32 %v964_v49, %v966_v47  ;;  %v1388_v36 = vsel %vm352_vm0, %v3246_v59, 0.0 }
 0x86d   : > { %v976_v50 = vpack.c.bf16 %v974_v63, %v973_v48 }
 0x86e   : > { %v975_v6 = vpack.c.bf16 %v968_v5, %v967_v58 }
 0x86f   : > { %983 = vmatpush.bf16.msra.mxu3 %v976_v50 }
 0x873   : > { %984 = vmatpush.bf16.msra.mxu3 %v975_v6 }
 0x876   : > { %2622 = vmatmul.msk.bf16.vlgmr.msra.gmra.mxu3 %vm776_vm2, %v3194_v30 }
 0x8ec   : > { %v1099_v18 = vpop.trf.xlu2 }
 0x8ed   : > { %v1115_v26 = vsel %vm706_vm9, %v1099_v18, inf }
 0x8ee   : > { %1116 = vmin.xlane.f32.xlu1 %v1115_v26 }
 0x928   : > { %1280 = vxpose.xlu1.b32.start [1/2] (short) (narrow) %v1278_v32, 8 }
 0x930   : > { %1281 = vxpose.xlu1.b32.end [2/2] (short) (narrow) %v1279_v38, 8 }
 0x961   : > { %v1117_v60 = vpop.xlane.xlu1 %1116 }
 0x962   : > { %v1118_v29 = vadd.f32 1e-06, %v1117_v60 }
 0x964   : > { %v1119_v9 = vperm.slane %v1118_v29, 0 }
 0x966   : > { %2785 = vrcp.f32 %v1119_v9  ;;  %v1131_v4 = vand.u32 2147483648, %v1119_v9  ;;  %v1129_v14 = vand.u32 2147483647, %v1119_v9  ;;  %vm1125_vm10 = vweird.f32 %v1119_v9 }
 0x968   : > { %v1132_v22 = vor.u32 1.1754944e-38, %v1131_v4  ;;  %vm1130_vm14 = vcmp.eq.f32.partialorder %v1129_v14, 8.507059e+37 }
 0x96c   : > { %v2786_v8 = vpop.eup %2785 }
 0x96d   : > { %v1121_v16 = vmul.f32 %v2786_v8, %v1119_v9  ;;  %vm1126_vm7 = vweird.f32 %v2786_v8 }
 0x96e   : > { %vm1127_vm11 = vmor %vm1125_vm10, %vm1126_vm7 }
 0x96f   : > { %v1122_v11 = vsub.f32 1.0, %v1121_v16 }
 0x971   : > { %v1123_v12 = vmul.f32 %v2786_v8, %v1122_v11 }
 0x973   : > { %v1124_v2 = vadd.f32 %v2786_v8, %v1123_v12 }
 0x975   : > { %v1128_v19 = vsel %vm1127_vm11, %v2786_v8, %v1124_v2 }
 0x976   : > { %v1133_v23 = vsel %vm1130_vm14, %v1132_v22, %v1128_v19 }
 0x977   : > { %v1134_v25 = vmul.f32 %v1133_v23, %v3267_v20  ;;  %v1135_v39 = vmul.f32 %v1133_v23, %v3270_v21 }
 0x979   : > { %vm1136_vm12 = vcmp.gt.f32.partialorder %v1134_v25, %v3081_v62  ;;  %vm1137_vm13 = vcmp.gt.f32.partialorder %v1135_v39, %v3081_v62 }
 0x97a   : > { %v2627_v27 = vsel %vm1136_vm12, 1.0, %v2854_v7  ;;  %v2628_v33 = vsel %vm1137_vm13, 1.0, %v2854_v7 }
 0x97b   : > { %v2742_v34 = vpack.i.bf16 %v2628_v33, %v2627_v27 }
 0x97d   : > { %2743 = vperm.xlu0 %2736, %v2742_v34   ;;  %v1385_v34 = vsel %vm352_vm0, %v3244_v52, 0.0 }
 0x983   : > { %2752 = vset.pattern.permute.xlu1 %v2855_v40 }
 0x990   : > { %1389 = vadd.xlane.f32.xlu1 %v1388_v36  ;;  %v986_v36 = vpop.f32.mrf.mxu3 }
 0x9cc   : > { %v1296_v37 = vpop.trf.xlu1 }
 0x9cd   : > { %v1312_v20 = vsel %vm706_vm9, %v1296_v37, inf  ;;  %v1391_v37 = vsel %vm352_vm0, %v986_v36, 0.0 }
 0x9ce   : > { %1313 = vmin.xlane.f32.xlu2 %v1312_v20 }
 0x9ef   : > { %v2744_v21 = vpop.permute.xlu0 %2743 }
 0x9f0   : > { %v2746_v41 = vunpack.i.h.bf16 %v2744_v21  ;;  %v2745_v42 = vunpack.i.l.bf16 %v2744_v21 }
 0x9f2   : > { %v1153_v43 = vmul.f32 %v3126_v56, %v2746_v41  ;;  %v1157_v44 = vmul.f32 %v3131_v13, %v2746_v41  ;;  %v1152_v45 = vmul.f32 %v3126_v56, %v2745_v42  ;;  %v1156_v49 = vmul.f32 %v3131_v13, %v2745_v42 }
 0x9f4   : > { %v1155_v40 = vadd.f32 %v3136_v15, %v1153_v43  ;;  %v1159_v46 = vadd.f32 %v3141_v1, %v1157_v44  ;;  %v1154_v47 = vadd.f32 %v3136_v15, %v1152_v45  ;;  %v1158_v48 = vadd.f32 %v3141_v1, %v1156_v49 }
 0x9f6   : > { %v1166_v63 = vmul.f32 %v1158_v48, %v3248_v61  ;;  %v1167_v50 = vmul.f32 %v1159_v46, %v3250_v0  ;;  %v1168_v58 = vmul.f32 %v1154_v47, %v3252_v3  ;;  %v1169_v5 = vmul.f32 %v1155_v40, %v3258_v54 }
 0x9f7   : > { %v1160_v6 = vmul.f32 %v1154_v47, %v3248_v61  ;;  %v1161_v53 = vmul.f32 %v1155_v40, %v3250_v0  ;;  %v1162_v55 = vmul.f32 %v1158_v48, %v3252_v3  ;;  %v1163_v18 = vmul.f32 %v1159_v46, %v3258_v54 }
 0x9f8   : > { %v1170_v26 = vadd.f32 %v1168_v58, %v1166_v63  ;;  %v1171_v32 = vadd.f32 %v1169_v5, %v1167_v50 }
 0x9f9   : > { %v1164_v60 = vsub.f32 %v1160_v6, %v1162_v55  ;;  %v1165_v29 = vsub.f32 %v1161_v53, %v1163_v18 }
 0x9fa   : > { %v1173_v38 = vpack.c.bf16 %v1171_v32, %v1170_v26 }
 0x9fb   : > { %v1172_v9 = vpack.c.bf16 %v1165_v29, %v1164_v60 }
 0x9fc   : > { %1180 = vmatpush.bf16.msrb.mxu3 %v1173_v38 }
 0xa00   : > { %1181 = vmatpush.bf16.msrb.mxu3 %v1172_v9 }
 0xa03   : > { %2629 = vmatmul.msk.bf16.vlgmr.msrb.gmra.mxu3 %vm776_vm2, %v3194_v30 }
 0xa41   : > { %v1314_v8 = vpop.xlane.xlu2 %1313 }
 0xa42   : > { %v1315_v16 = vadd.f32 1e-06, %v1314_v8 }
 0xa44   : > { %v1316_v61 = vperm.slane %v1315_v16, 0 }
 0xa46   : > { %2787 = vrcp.f32 %v1316_v61  ;;  %v1328_v4 = vand.u32 2147483648, %v1316_v61  ;;  %v1326_v12 = vand.u32 2147483647, %v1316_v61  ;;  %vm1322_vm15 = vweird.f32 %v1316_v61 }
 0xa48   : > { %v1329_v2 = vor.u32 1.1754944e-38, %v1328_v4  ;;  %vm1327_vm8 = vcmp.eq.f32.partialorder %v1326_v12, 8.507059e+37 }
 0xa4c   : > { %v2788_v0 = vpop.eup %2787 }
 0xa4d   : > { %v1318_v11 = vmul.f32 %v2788_v0, %v1316_v61  ;;  %vm1323_vm9 = vweird.f32 %v2788_v0 }
 0xa4e   : > { %vm1324_vm1 = vmor %vm1322_vm15, %vm1323_vm9 }
 0xa4f   : > { %v1319_v3 = vsub.f32 1.0, %v1318_v11 }
 0xa51   : > { %v1320_v54 = vmul.f32 %v2788_v0, %v1319_v3 }
 0xa53   : > { %v1321_v14 = vadd.f32 %v2788_v0, %v1320_v54 }
 0xa55   : > { %v1325_v22 = vsel %vm1324_vm1, %v2788_v0, %v1321_v14 }
 0xa56   : > { %v1330_v19 = vsel %vm1327_vm8, %v1329_v2, %v1325_v22 }
 0xa57   : > { %v1331_v23 = vmul.f32 %v1330_v19, %v3237_v57  ;;  %v1332_v25 = vmul.f32 %v1330_v19, %v3241_v51  ;;  %v988_v57 = vpop.f32.mrf.mxu3 }
 0xa58   : > { %v1394_v51 = vsel %vm352_vm0, %v988_v57, 0.0 }
 0xa59   : > { %vm1333_vm3 = vcmp.gt.f32.partialorder %v1331_v23, %v3081_v62  ;;  %vm1334_vm4 = vcmp.gt.f32.partialorder %v1332_v25, %v3081_v62 }
 0xa5a   : > { %v2634_v39 = vsel %vm1333_vm3, 1.0, %v2854_v7  ;;  %v2635_v27 = vsel %vm1334_vm4, 1.0, %v2854_v7 }
 0xa5b   : > { %v2747_v33 = vpack.i.bf16 %v2635_v27, %v2634_v39  ;;  %v2639_v27 = vld [vmem:[%s3962_s4] sm:$0xf] }
 0xa5d   : > { %2748 = vperm.xlu0 %2736, %v2747_v33   ;;  %v2708_v33 = vld [vmem:[%s3962_s4 + $0xc] sm:$0xf0] }
 0xa86   : > { %v1183_v61 = vpop.f32.mrf.mxu3 }
 0xa87   : > { %1386 = vadd.xlane.f32.xlu0 %v1385_v34  ;;  %v1397_v3 = vsel %vm352_vm0, %v1183_v61, 0.0  ;;  %v2647_v34 = vld [vmem:[%s3962_s4 + $0x8] sm:$0xf] }
 0xa8e   : > { %v3410_v12 = vpop.f32.mrf.mxu3 }
 0xa8f   : > { %1392 = vadd.xlane.f32.xlu0 %v1391_v37  ;;  %v1400_v14 = vsel %vm352_vm0, %v3410_v12, 0.0  ;;  %v2640_v37 = vor.u32 %v2708_v33, %v2639_v27  ;;  %v3482_v33 = vld [vmem:[%s3959_s1 + $0x3] ss:$0 sm:$0xff] }
 0xa91   : > { %1636 = vmatpush.bf16.msrb.mxu2 %v2640_v37  ;;  %2718 = vmatpush.bf16.msra.mxu3 %v2640_v37 }
 0xa97   : > { %1395 = vadd.xlane.f32.xlu0 %v1394_v51  ;;  %v2707_v51 = vld [vmem:[%s3962_s4 + $0xc] sm:$0xf] }
 0xacf   : > { %v2749_v20 = vpop.permute.xlu0 %2748 }
 0xad0   : > { %v2751_v62 = vunpack.i.h.bf16 %v2749_v20  ;;  %v2750_v21 = vunpack.i.l.bf16 %v2749_v20 }
 0xad2   : > { %v1350_v41 = vmul.f32 %v3126_v56, %v2751_v62  ;;  %v1354_v7 = vmul.f32 %v3131_v13, %v2751_v62  ;;  %v1349_v42 = vmul.f32 %v3126_v56, %v2750_v21  ;;  %v1353_v43 = vmul.f32 %v3131_v13, %v2750_v21  ;;  %v2649_v62 = vld [vmem:[%s3962_s4 + $0x18] sm:$0xf0] }
 0xad3   : > { %v2652_v21 = vor.u32 %v2707_v51, %v2649_v62 }
 0xad4   : > { %v1352_v44 = vadd.f32 %v3136_v15, %v1350_v41  ;;  %v1356_v45 = vadd.f32 %v3141_v1, %v1354_v7  ;;  %v1351_v49 = vadd.f32 %v3136_v15, %v1349_v42  ;;  %v1355_v40 = vadd.f32 %v3141_v1, %v1353_v43 }
 0xad5   : > { %1723 = vmatpush.bf16.msra.mxu0 %v2652_v21 }
 0xad6   : > { %v1358_v46 = vmul.f32 %v1352_v44, %v3200_v31  ;;  %v1360_v47 = vmul.f32 %v1356_v45, %v3221_v24  ;;  %v1364_v48 = vmul.f32 %v1356_v45, %v3200_v31  ;;  %v1366_v63 = vmul.f32 %v1352_v44, %v3221_v24  ;;  %v1390_v31 = vpop.xlane.xlu1 %1389 }
 0xad7   : > { %v1357_v56 = vmul.f32 %v1351_v49, %v3196_v35  ;;  %v1359_v13 = vmul.f32 %v1355_v40, %v3212_v28  ;;  %v1363_v50 = vmul.f32 %v1355_v40, %v3196_v35  ;;  %v1365_v58 = vmul.f32 %v1351_v49, %v3212_v28 }
 0xad8   : > { %v1368_v5 = vadd.f32 %v1366_v63, %v1364_v48  ;;  %v1362_v53 = vsub.f32 %v1358_v46, %v1360_v47  ;;  %v1410_v26 = vmul.f32 %v1390_v31, %v2928_v10 }
 0xad9   : > { %v1367_v15 = vadd.f32 %v1365_v58, %v1363_v50  ;;  %v1361_v1 = vsub.f32 %v1357_v56, %v1359_v13 }
 0xada   : > { %v3391_v32 = vsub.f32 %v3246_v59, %v1410_v26 }
 0xadb   : > { %v1370_v6 = vpack.c.bf16 %v1368_v5, %v1367_v15  ;;  %v1369_v55 = vpack.c.bf16 %v1362_v53, %v1361_v1 }
 0xadc   : > { %v1426_v9 = vmul.f32 %v3391_v32, %v3391_v32 }
 0xadd   : > { %1377 = vmatpush.bf16.msra.mxu1 %v1370_v6 }
 0xade   : > { %v1436_v16 = vsel %vm352_vm0, %v1426_v9, 0.0 }
 0xae1   : > { %1378 = vmatpush.bf16.msra.mxu1 %v1369_v55 }
 0xae4   : > { %2636 = vmatmul.msk.bf16.vlgmr.msra.gmra.mxu1 %vm776_vm2, %v3194_v30 }
 0xafa   : > { %v1387_v24 = vpop.xlane.xlu0 %1386 }
 0xafb   : > { %v1409_v18 = vmul.f32 %v1387_v24, %v2928_v10 }
 0xafd   : > { %v3386_v35 = vsub.f32 %v3244_v52, %v1409_v18 }
 0xaff   : > { %v1425_v28 = vmul.f32 %v3386_v35, %v3386_v35 }
 0xb01   : > { %v1433_v38 = vsel %vm352_vm0, %v1425_v28, 0.0 }
 0xb02   : > { %1434 = vadd.xlane.f32.xlu0 %v1433_v38  ;;  %v1393_v60 = vpop.xlane.xlu0 %1392 }
 0xb03   : > { %v1411_v30 = vmul.f32 %v1393_v60, %v2928_v10 }
 0xb05   : > { %v3395_v29 = vsub.f32 %v986_v36, %v1411_v30 }
 0xb07   : > { %v1427_v52 = vmul.f32 %v3395_v29, %v3395_v29 }
 0xb09   : > { %v1439_v8 = vsel %vm352_vm0, %v1427_v52, 0.0 }
 0xb0a   : > { %1440 = vadd.xlane.f32.xlu2 %v1439_v8  ;;  %v1396_v59 = vpop.xlane.xlu0 %1395  ;;  %1437 = vadd.xlane.f32.xlu0 %v1436_v16 }
 0xb0b   : > { %v1412_v0 = vmul.f32 %v1396_v59, %v2928_v10 }
 0xb0d   : > { %v3404_v11 = vsub.f32 %v988_v57, %v1412_v0  ;;  %v2709_v57 = vld [vmem:[%s3962_s4 + $0x14] sm:$0xf0]  ;;  %v2706_v0 = vld [vmem:[%s3962_s4 + $0x4] sm:$0xf] }
 0xb0e   : > { %v2648_v20 = vor.u32 %v2709_v57, %v2647_v34 }
 0xb0f   : > { %v1428_v4 = vmul.f32 %v3404_v11, %v3404_v11 }
 0xb10   : > { %1694 = vmatpush.bf16.msrb.mxu1 %v2648_v20 }
 0xb11   : > { %v1442_v54 = vsel %vm352_vm0, %v1428_v4, 0.0 }
 0xb12   : > { %1398 = vadd.xlane.f32.xlu2 %v1397_v3  ;;  %1443 = vadd.xlane.f32.xlu0 %v1442_v54  ;;  %v2641_v3 = vld [vmem:[%s3962_s4 + $0x10] sm:$0xf0] }
 0xb1a   : > { %1401 = vadd.xlane.f32.xlu0 %v1400_v14 }
 0xb61   : > { %v3414_v2 = vpop.f32.mrf.mxu1 }
 0xb62   : > { %v1403_v22 = vsel %vm352_vm0, %v3414_v2, 0.0 }
 0xb63   : > { %1404 = vadd.xlane.f32.xlu2 %v1403_v22 }
 0xb69   : > { %v3418_v19 = vpop.f32.mrf.mxu1 }
 0xb6a   : > { %v1406_v23 = vsel %vm352_vm0, %v3418_v19, 0.0 }
 0xb6b   : > { %1407 = vadd.xlane.f32.xlu0 %v1406_v23 }
 0xb75   : > { %v1435_v25 = vpop.xlane.xlu0 %1434 }
 0xb76   : > { %v1457_v39 = vmul.f32 %v1435_v25, %v2928_v10 }
 0xb78   : > { %v1465_v36 = vadd.f32 1e-05, %v1457_v39 }
 0xb7a   : > { %2789 = vrsqrt.f32 %v1465_v36  ;;  %vm1479_vm5 = vweird.f32 %v1465_v36 }
 0xb7d   : > { %v1441_v41 = vpop.xlane.xlu2 %1440  ;;  %v1438_v7 = vpop.xlane.xlu0 %1437 }
 0xb7e   : > { %v1459_v42 = vmul.f32 %v1441_v41, %v2928_v10  ;;  %v1458_v43 = vmul.f32 %v1438_v7, %v2928_v10 }
 0xb80   : > { %v2790_v44 = vpop.eup %2789  ;;  %v3443_v45 = vadd.f32 1e-05, %v1459_v42  ;;  %v1466_v49 = vadd.f32 1e-05, %v1458_v43 }
 0xb81   : > { %v1474_v40 = vmul.f32 %v2790_v44, %v1465_v36  ;;  %vm1480_vm2 = vweird.f32 %v2790_v44 }
 0xb82   : > { %2791 = vrsqrt.f32 %v3443_v45  ;;  %vm1481_vm6 = vmor %vm1479_vm5, %vm1480_vm2  ;;  %vm1489_vm10 = vweird.f32 %v1466_v49  ;;  %vm1499_vm15 = vweird.f32 %v3443_v45 }
 0xb83   : > { %v1475_v46 = vmul.f32 %v2790_v44, %v1474_v40  ;;  %2793 = vrsqrt.f32 %v1466_v49 }
 0xb85   : > { %v1476_v47 = vmul.f32 0.5, %v1475_v46  ;;  %v1399_v48 = vpop.xlane.xlu2 %1398  ;;  %v1444_v63 = vpop.xlane.xlu0 %1443 }
 0xb86   : > { %v1413_v56 = vmul.f32 %v1399_v48, %v2928_v10  ;;  %v1460_v13 = vmul.f32 %v1444_v63, %v2928_v10  ;;  %v1840_v48 = vld [vmem:[%s3966_s8 + $0x28] sm:$0xff]  ;;  %v1841_v63 = vld [vmem:[%s3966_s8 + $0x30] sm:$0xff] }
 0xb87   : > { %v1477_v50 = vsub.f32 1.5, %v1476_v47  ;;  %v1766_v47 = vld [vmem:[%s3965_s7 + $0x20] sm:$0xff] }
 0xb88   : > { %v3448_v58 = vpop.eup %2791  ;;  %v3450_v5 = vsub.f32 %v1183_v61, %v1413_v56  ;;  %v1468_v15 = vadd.f32 1e-05, %v1460_v13  ;;  %v3466_v61 = vld [vmem:[%s3959_s1 + $0x2] ss:$0 sm:$0xff] }
 0xb89   : > { %v2794_v6 = vpop.eup %2793  ;;  %v1478_v1 = vmul.f32 %v2790_v44, %v1477_v50  ;;  %v1494_v53 = vmul.f32 %v3448_v58, %v3443_v45  ;;  %vm1500_vm12 = vweird.f32 %v3448_v58  ;;  %v1762_v45 = vld [vmem:[%s3965_s7] sm:$0xff] }
 0xb8a   : > { %v1484_v55 = vmul.f32 %v2794_v6, %v1466_v49  ;;  %2795 = vrsqrt.f32 %v1468_v15  ;;  %v1429_v31 = vmul.f32 %v3450_v5, %v3450_v5  ;;  %vm1490_vm7 = vweird.f32 %v2794_v6  ;;  %vm1501_vm1 = vmor %vm1499_vm15, %vm1500_vm12 }
 0xb8b   : > { %v1482_v28 = vsel %vm1481_vm6, %v2790_v44, %v1478_v1  ;;  %v1495_v38 = vmul.f32 %v3448_v58, %v1494_v53  ;;  %vm1491_vm11 = vmor %vm1489_vm10, %vm1490_vm7  ;;  %vm1509_vm13 = vweird.f32 %v1468_v15  ;;  %vm1826_vm7 = vcmp.lt.s32.totalorder %v3019_v17, 7 }
 0xb8c   : > { %v1485_v24 = vmul.f32 %v2794_v6, %v1484_v55  ;;  %v1445_v18 = vsel %vm352_vm0, %v1429_v31, 0.0  ;;  %v1553_v16 = vmul.f32 %v1482_v28, %v3386_v35  ;;  %v1837_v28 = vld [vmem:[%s3966_s8 + $0x10] sm:$0xff] }
 0xb8d   : > { %v1402_v26 = vpop.xlane.xlu0 %1401  ;;  %1446 = vadd.xlane.f32.xlu2 %v1445_v18  ;;  %v1496_v4 = vmul.f32 0.5, %v1495_v38 }
 0xb8e   : > { %v1486_v60 = vmul.f32 0.5, %v1485_v24  ;;  %v1414_v30 = vmul.f32 %v1402_v26, %v2928_v10  ;;  %v1562_v27 = vmul.f32 %v3466_v61, %v1553_v16  ;;  %v1835_v24 = vld [vmem:[%s3966_s8] sm:$0xff] }
 0xb8f   : > { %v1497_v34 = vsub.f32 1.5, %v1496_v4 }
 0xb90   : > { %v2796_v9 = vpop.eup %2795  ;;  %v1487_v52 = vsub.f32 1.5, %v1486_v60  ;;  %v3460_v8 = vsub.f32 %v3410_v12, %v1414_v30  ;;  %v2644_v12 = vor.u32 %v2706_v0, %v2641_v3  ;;  %v1571_v51 = vadd.f32 %v3482_v33, %v1562_v27 }
 0xb91   : > { %v1504_v59 = vmul.f32 %v2796_v9, %v1468_v15  ;;  %vm1510_vm14 = vweird.f32 %v2796_v9 }
 0xb92   : > { %v1488_v54 = vmul.f32 %v2794_v6, %v1487_v52  ;;  %v1430_v35 = vmul.f32 %v3460_v8, %v3460_v8  ;;  %1665 = vmatpush.bf16.msra.mxu2 %v2644_v12  ;;  %vm1511_vm9 = vmor %vm1509_vm13, %vm1510_vm14  ;;  %v1767_v52 = vld [vmem:[%s3965_s7 + $0x28] sm:$0xff] }
 0xb93   : > { %v1505_v14 = vmul.f32 %v2796_v9, %v1504_v59 }
 0xb94   : > { %v1492_v22 = vsel %vm1491_vm11, %v2794_v6, %v1488_v54  ;;  %v1448_v23 = vsel %vm352_vm0, %v1430_v35, 0.0  ;;  %v1768_v35 = vld [vmem:[%s3965_s7 + $0x30] sm:$0xff]  ;;  %vm1753_vm11 = vcmp.lt.s32.totalorder %v3019_v17, 1 }
 0xb95   : > { %v1554_v25 = vmul.f32 %v1492_v22, %v3391_v32  ;;  %v1506_v39 = vmul.f32 0.5, %v1505_v14  ;;  %1449 = vadd.xlane.f32.xlu0 %v1448_v23  ;;  %v1498_v32 = vmul.f32 %v3448_v58, %v1497_v34 }
 0xb97   : > { %v1507_v36 = vsub.f32 1.5, %v1506_v39  ;;  %v1563_v37 = vmul.f32 %v3466_v61, %v1554_v25  ;;  %v1502_v41 = vsel %vm1501_vm1, %v3448_v58, %v1498_v32  ;;  %v1838_v39 = vld [vmem:[%s3966_s8 + $0x18] sm:$0xff] }
 0xb98   : > { %v1555_v42 = vmul.f32 %v1502_v41, %v3395_v29  ;;  %v1836_v29 = vld [vmem:[%s3966_s8 + $0x8] sm:$0xff] }
 0xb99   : > { %v1508_v57 = vmul.f32 %v2796_v9, %v1507_v36  ;;  %v1572_v20 = vadd.f32 %v3482_v33, %v1563_v37  ;;  %v1842_v36 = vld [vmem:[%s3966_s8 + $0x38] sm:$0xff] }
 0xb9a   : > { %v1564_v44 = vmul.f32 %v3466_v61, %v1555_v42  ;;  %v3577_v42 = vld [vmem:[%s3963_s5] sm:$0xf] }
 0xb9b   : > { %v1579_v62 = vpack.c.bf16 %v1572_v20, %v1571_v51  ;;  %v1512_v21 = vsel %vm1511_vm9, %v2796_v9, %v1508_v57 }
 0xb9c   : > { %v1556_v7 = vmul.f32 %v1512_v21, %v3404_v11  ;;  %v1573_v40 = vadd.f32 %v3482_v33, %v1564_v44  ;;  %v1765_v11 = vld [vmem:[%s3965_s7 + $0x18] sm:$0xff] }
 0xb9d   : > { %2653 = vmatmul.msk.bf16.vlgmr.msrb.gmra.mxu2 %vm352_vm0, %v1579_v62  ;;  %2661 = vmatmul.msk.bf16.vlgmr.msrb.gmra.mxu1 %vm352_vm0, %v1579_v62 }
 0xb9e   : > { %2665 = vmatmul.msk.bf16.vlgmr.msra.gmra.mxu0 %vm352_vm0, %v1579_v62  ;;  %v1565_v43 = vmul.f32 %v3466_v61, %v1556_v7 }
 0xba0   : > { %v1574_v49 = vadd.f32 %v3482_v33, %v1565_v43 }
 0xba2   : > { %v1580_v46 = vpack.c.bf16 %v1574_v49, %v1573_v40 }
 0xba9   : > { %1772 = vperm.xlu0 %2736, %v1762_v45  }
 0xbad   : > { %2654 = vmatmul.msk.bf16.gmra.mxu2 %vm352_vm0, %v1580_v46  ;;  %2662 = vmatmul.msk.bf16.gmra.mxu1 %vm352_vm0, %v1580_v46 }
 0xbae   : > { %2666 = vmatmul.msk.bf16.gmra.mxu0 %vm352_vm0, %v1580_v46 }
 0xbb1   : > { %1850 = vperm.xlu0 %2736, %v1836_v29  }
 0xbb9   : > { %1787 = vperm.xlu0 %2736, %v1765_v11  }
 0xbbd   : > { %2657 = vmatmul.msk.bf16.vlgmr.msra.gmra.mxu2 %vm352_vm0, %v1579_v62  ;;  %v1839_v62 = vld [vmem:[%s3966_s8 + $0x20] sm:$0xff] }
 0xbc1   : > { %1792 = vperm.xlu0 %2736, %v1766_v47  }
 0xbc9   : > { %1870 = vperm.xlu0 %2736, %v1840_v48  }
 0xbcd   : > { %2658 = vmatmul.msk.bf16.gmra.mxu2 %vm352_vm0, %v1580_v46 }
 0xbd1   : > { %1875 = vperm.xlu0 %2736, %v1841_v63  }
 0xbd6   : > { %v1405_v56 = vpop.xlane.xlu2 %1404 }
 0xbd7   : > { %v1415_v13 = vmul.f32 %v1405_v56, %v2928_v10 }
 0xbd9   : > { %v3525_v50 = vsub.f32 %v3414_v2, %v1415_v13  ;;  %v1763_v2 = vld [vmem:[%s3965_s7 + $0x8] sm:$0xff] }
 0xbdb   : > { %v1431_v58 = vmul.f32 %v3525_v50, %v3525_v50 }
 0xbdd   : > { %v1451_v15 = vsel %vm352_vm0, %v1431_v58, 0.0 }
 0xbde   : > { %1452 = vadd.xlane.f32.xlu1 %v1451_v15  ;;  %v1408_v6 = vpop.xlane.xlu0 %1407 }
 0xbdf   : > { %v1416_v1 = vmul.f32 %v1408_v6, %v2928_v10 }
 0xbe1   : > { %v3532_v53 = vsub.f32 %v3418_v19, %v1416_v1  ;;  %v1764_v19 = vld [vmem:[%s3965_s7 + $0x10] sm:$0xff] }
 0xbe3   : > { %v1432_v55 = vmul.f32 %v3532_v53, %v3532_v53 }
 0xbe5   : > { %v1454_v31 = vsel %vm352_vm0, %v1432_v55, 0.0 }
 0xbe6   : > { %1455 = vadd.xlane.f32.xlu2 %v1454_v31 }
 0xbf7   : > { %1777 = vperm.xlu1 %2752, %v1763_v2  }
 0xbfe   : > { %1845 = vperm.xlu2 %2730, %v1835_v24  }
 0xbff   : > { %1782 = vperm.xlu1 %2752, %v1764_v19  }
 0xc00   : > { %v1447_v18 = vpop.xlane.xlu2 %1446 }
 0xc01   : > { %v1461_v26 = vmul.f32 %v1447_v18, %v2928_v10 }
 0xc03   : > { %v1469_v38 = vadd.f32 1e-05, %v1461_v26 }
 0xc05   : > { %2797 = vrsqrt.f32 %v1469_v38  ;;  %vm1519_vm3 = vweird.f32 %v1469_v38 }
 0xc06   : > { %1855 = vperm.xlu2 %2730, %v1837_v28  }
 0xc07   : > { %1860 = vperm.xlu1 %2752, %v1838_v39  }
 0xc08   : > { %v1450_v60 = vpop.xlane.xlu0 %1449 }
 0xc09   : > { %v1462_v30 = vmul.f32 %v1450_v60, %v2928_v10 }
 0xc0b   : > { %v1470_v9 = vadd.f32 1e-05, %v1462_v30  ;;  %v2798_v16 = vpop.eup %2797 }
 0xc0c   : > { %v1514_v59 = vmul.f32 %v2798_v16, %v1469_v38  ;;  %vm1520_vm8 = vweird.f32 %v2798_v16 }
 0xc0d   : > { %2799 = vrsqrt.f32 %v1470_v9  ;;  %vm1521_vm4 = vmor %vm1519_vm3, %vm1520_vm8  ;;  %vm1529_vm5 = vweird.f32 %v1470_v9 }
 0xc0e   : > { %1797 = vperm.xlu2 %2730, %v1767_v52   ;;  %v1515_v0 = vmul.f32 %v2798_v16, %v1514_v59 }
 0xc0f   : > { %1865 = vperm.xlu1 %2752, %v1839_v62  }
 0xc10   : > { %v1516_v3 = vmul.f32 0.5, %v1515_v0 }
 0xc12   : > { %v1517_v54 = vsub.f32 1.5, %v1516_v3 }
 0xc13   : > { %v2800_v4 = vpop.eup %2799 }
 0xc14   : > { %v1524_v12 = vmul.f32 %v2800_v4, %v1470_v9  ;;  %v1518_v14 = vmul.f32 %v2798_v16, %v1517_v54  ;;  %vm1530_vm2 = vweird.f32 %v2800_v4 }
 0xc15   : > { %vm1531_vm6 = vmor %vm1529_vm5, %vm1530_vm2 }
 0xc16   : > { %v1525_v22 = vmul.f32 %v2800_v4, %v1524_v12  ;;  %1802 = vperm.xlu2 %2730, %v1768_v35   ;;  %v1522_v23 = vsel %vm1521_vm4, %v2798_v16, %v1518_v14 }
 0xc17   : > { %v1557_v34 = vmul.f32 %v1522_v23, %v3450_v5 }
 0xc18   : > { %v1526_v25 = vmul.f32 0.5, %v1525_v22 }
 0xc19   : > { %v1566_v51 = vmul.f32 %v3466_v61, %v1557_v34 }
 0xc1a   : > { %v1527_v27 = vsub.f32 1.5, %v1526_v25 }
 0xc1b   : > { %v1575_v21 = vadd.f32 %v3482_v33, %v1566_v51  ;;  %v3600_v16 = vpop.f32.mrf.mxu0 }
 0xc1c   : > { %v1528_v37 = vmul.f32 %v2800_v4, %v1527_v27 }
 0xc1e   : > { %v1532_v57 = vsel %vm1531_vm6, %v2800_v4, %v1528_v37  ;;  %1880 = vperm.xlu2 %2730, %v1842_v36  }
 0xc1f   : > { %v1558_v20 = vmul.f32 %v1532_v57, %v3460_v8  ;;  %v3580_v8 = vperm.slane %v3577_v42, 0 }
 0xc20   : > { %v3566_v32 = vpop.f32.mrf.mxu2 }
 0xc21   : > { %v1567_v5 = vmul.f32 %v3466_v61, %v1558_v20 }
 0xc23   : > { %v1576_v41 = vadd.f32 %v3482_v33, %v1567_v5  ;;  %v1727_v39 = vpop.f32.mrf.mxu0 }
 0xc25   : > { %v1581_v7 = vpack.c.bf16 %v1576_v41, %v1575_v21 }
 0xc27   : > { %2655 = vmatmul.msk.bf16.vlgmr.msra.gmra.mxu3 %vm352_vm0, %v1581_v7  ;;  %2659 = vmatmul.msk.bf16.gmra.mxu2 %vm352_vm0, %v1581_v7 }
 0xc28   : > { %v1640_v43 = vpop.f32.mrf.mxu2  ;;  %2663 = vmatmul.msk.bf16.gmra.mxu1 %vm352_vm0, %v1581_v7  ;;  %2667 = vmatmul.msk.bf16.gmra.mxu0 %vm352_vm0, %v1581_v7  ;;  %v3607_v7 = vpop.f32.mrf.mxu1 }
 0xc29   : > { %v1641_v44 = vadd.f32 %v1640_v43, %v3580_v8 }
 0xc2b   : > { %v1908_v45 = vpack.c.bf16 %v1641_v44, %v1641_v44 }
 0xc2d   : > { %v3587_v49 = vunpack.c.l.bf16 %v1908_v45  ;;  %v1730_v45 = vpop.f32.mrf.mxu0 }
 0xc2f   : > { %v2188_v40 = vmul.f32 0.044677734, %v3587_v49 }
 0xc30   : > { %v1643_v46 = vpop.f32.mrf.mxu2 }
 0xc31   : > { %v2196_v29 = vpack.c.bf16 %v2188_v40, %v2188_v40  ;;  %v1644_v11 = vadd.f32 %v1643_v46, %v3580_v8 }
 0xc33   : > { %v2204_v47 = vunpack.c.l.bf16 %v2196_v29  ;;  %v1909_v48 = vpack.c.bf16 %v1644_v11, %v1644_v11  ;;  %v3613_v29 = vperm.slane %v3577_v42, 3 }
 0xc35   : > { %v2212_v63 = vmul.f32 %v2204_v47, %v3587_v49  ;;  %v3592_v56 = vunpack.c.l.bf16 %v1909_v48 }
 0xc37   : > { %v2220_v13 = vpack.c.bf16 %v2212_v63, %v2212_v63  ;;  %v2189_v58 = vmul.f32 0.044677734, %v3592_v56 }
 0xc38   : > { %v1645_v28 = vpop.f32.mrf.mxu2 }
 0xc39   : > { %v2228_v15 = vunpack.c.l.bf16 %v2220_v13  ;;  %v2197_v6 = vpack.c.bf16 %v2189_v58, %v2189_v58  ;;  %v1646_v30 = vadd.f32 %v1645_v28, %v3580_v8  ;;  %v3620_v13 = vadd.f32 %v1730_v45, %v3613_v29 }
 0xc3a   : > { %v3624_v58 = vperm.slane %v3577_v42, 1 }
 0xc3b   : > { %v2236_v1 = vmul.f32 %v2228_v15, %v3587_v49  ;;  %v2205_v55 = vunpack.c.l.bf16 %v2197_v6  ;;  %v1910_v3 = vpack.c.bf16 %v1646_v30, %v1646_v30 }
 0xc3d   : > { %v2244_v31 = vpack.c.bf16 %v2236_v1, %v2236_v1  ;;  %v2213_v2 = vmul.f32 %v2205_v55, %v3592_v56  ;;  %v3603_v14 = vunpack.c.l.bf16 %v1910_v3  ;;  %v3627_v1 = vpop.permute.xlu0 %1772  ;;  %v3630_v55 = vadd.f32 %v1727_v39, %v3613_v29  ;;  %v1732_v3 = vpop.f32.mrf.mxu0  ;;  %v1769_v39 = vld [vmem:[%s3965_s7 + $0x38] sm:$0xff] }
 0xc3e   : > { %1807 = vperm.xlu1 %2752, %v1769_v39  }
 0xc3f   : > { %v2252_v24 = vunpack.c.l.bf16 %v2244_v31  ;;  %v2221_v19 = vpack.c.bf16 %v2213_v2, %v2213_v2  ;;  %v2190_v25 = vmul.f32 0.044677734, %v3603_v14  ;;  %v2172_v2 = vmul.f32 0.5, %v3587_v49 }
 0xc40   : > { %v1667_v36 = vpop.f32.mrf.mxu2 }
 0xc41   : > { %v2260_v18 = vadd.f32 %v2252_v24, %v3587_v49  ;;  %v2229_v26 = vunpack.c.l.bf16 %v2221_v19  ;;  %v2198_v20 = vpack.c.bf16 %v2190_v25, %v2190_v25  ;;  %v3638_v28 = vadd.f32 %v1667_v36, %v3624_v58 }
 0xc43   : > { %v2268_v38 = vpack.c.bf16 %v2260_v18, %v2260_v18  ;;  %v2237_v60 = vmul.f32 %v2229_v26, %v3592_v56  ;;  %v2206_v21 = vunpack.c.l.bf16 %v2198_v20  ;;  %v1820_v18 = vrot.slane %v3620_v13, 1 }
 0xc45   : > { %v2276_v9 = vunpack.c.l.bf16 %v2268_v38  ;;  %v2245_v52 = vpack.c.bf16 %v2237_v60, %v2237_v60  ;;  %v2214_v11 = vmul.f32 %v2206_v21, %v3603_v14 }
 0xc47   : > { %v2284_v59 = vmul.f32 0.796875, %v2276_v9  ;;  %v2253_v0 = vunpack.c.l.bf16 %v2245_v52  ;;  %v2222_v31 = vpack.c.bf16 %v2214_v11, %v2214_v11  ;;  %v1698_v9 = vpop.f32.mrf.mxu1  ;;  %v1819_v52 = vrot.slane %v3630_v55, 1 }
 0xc48   : > { %v1669_v47 = vpop.f32.mrf.mxu2 }
 0xc49   : > { %v2292_v4 = vpack.c.bf16 %v2284_v59, %v2284_v59  ;;  %v2261_v54 = vadd.f32 %v2253_v0, %v3592_v56  ;;  %v3634_v24 = vadd.f32 %v1669_v47, %v3624_v58  ;;  %v2230_v59 = vunpack.c.l.bf16 %v2222_v31 }
 0xc4a   : > { %v2180_v0 = vpack.c.bf16 %v2172_v2, %v2172_v2 }
 0xc4b   : > { %v2300_v35 = vunpack.c.l.bf16 %v2292_v4  ;;  %v2269_v12 = vpack.c.bf16 %v2261_v54, %v2261_v54  ;;  %v1746_v4 = vrot.slane %v3634_v24, 7 }
 0xc4c   : > { %v2348_v20 = vunpack.c.l.bf16 %v2180_v0 }
 0xc4d   : > { %v2277_v22 = vunpack.c.l.bf16 %v2269_v12  ;;  %2801 = vtanh.f32 %v2300_v35  ;;  %v3648_v12 = vperm.slane %v3577_v42, 2 }
 0xc4f   : > { %v2285_v23 = vmul.f32 0.796875, %v2277_v22  ;;  %v1832_v22 = vsel %vm1826_vm7, %v1819_v52, %v1820_v18  ;;  %v1699_v45 = vadd.f32 %v1698_v9, %v3648_v12 }
 0xc51   : > { %v1453_v27 = vpop.xlane.xlu1 %1452  ;;  %v2293_v34 = vpack.c.bf16 %v2285_v23, %v2285_v23  ;;  %v1672_v23 = vpop.f32.mrf.mxu2 }
 0xc52   : > { %v1463_v37 = vmul.f32 %v1453_v27, %v2928_v10  ;;  %v3674_v21 = vadd.f32 %v1672_v23, %v3624_v58 }
 0xc53   : > { %v2301_v57 = vunpack.c.l.bf16 %v2293_v34  ;;  %v2802_v51 = vpop.eup %2801  ;;  %v1745_v34 = vrot.slane %v3638_v28, 7 }
 0xc54   : > { %v1471_v62 = vadd.f32 1e-05, %v1463_v37  ;;  %v2316_v5 = vpack.c.bf16 %v2802_v51, %v2802_v51  ;;  %v3663_v37 = vadd.f32 %v1732_v3, %v3613_v29 }
 0xc55   : > { %2803 = vtanh.f32 %v2301_v57  ;;  %v2238_v57 = vmul.f32 %v2230_v59, %v3603_v14 }
 0xc56   : > { %2805 = vrsqrt.f32 %v1471_v62  ;;  %v2324_v40 = vunpack.c.l.bf16 %v2316_v5  ;;  %vm1539_vm14 = vweird.f32 %v1471_v62  ;;  %v2173_v5 = vmul.f32 0.5, %v3592_v56 }
 0xc57   : > { %v2246_v24 = vpack.c.bf16 %v2238_v57, %v2238_v57 }
 0xc58   : > { %v2332_v6 = vadd.f32 1.0, %v2324_v40  ;;  %v1851_v40 = vpop.permute.xlu0 %1850  ;;  %v2181_v2 = vpack.c.bf16 %v2173_v5, %v2173_v5 }
 0xc59   : > { %v1456_v41 = vpop.xlane.xlu2 %1455  ;;  %v2254_v39 = vunpack.c.l.bf16 %v2246_v24 }
 0xc5a   : > { %v1464_v43 = vmul.f32 %v1456_v41, %v2928_v10  ;;  %v2340_v60 = vpack.c.bf16 %v2332_v6, %v2332_v6  ;;  %v1821_v6 = vrot.slane %v3663_v37, 1 }
 0xc5b   : > { %v2804_v44 = vpop.eup %2803 }
 0xc5c   : > { %v3610_v46 = vpop.eup %2805  ;;  %v3616_v48 = vadd.f32 1e-05, %v1464_v43  ;;  %v2317_v10 = vpack.c.bf16 %v2804_v44, %v2804_v44  ;;  %v2356_v36 = vunpack.c.l.bf16 %v2340_v60  ;;  %v1760_v43 = vsel %vm1753_vm11, %v1745_v34, %v1746_v4 }
 0xc5d   : > { %v1534_v63 = vmul.f32 %v3610_v46, %v1471_v62  ;;  %vm1540_vm10 = vweird.f32 %v3610_v46 }
 0xc5e   : > { %2807 = vrsqrt.f32 %v3616_v48  ;;  %v2325_v26 = vunpack.c.l.bf16 %v2317_v10  ;;  %vm3668_vm12 = vmor %vm1539_vm14, %vm1540_vm10  ;;  %v1884_v10 = vmul.f32 %v1851_v40, %v1832_v22  ;;  %vm1549_vm9 = vweird.f32 %v3616_v48 }
 0xc5f   : > { %v1535_v15 = vmul.f32 %v3610_v46, %v1534_v63  ;;  %v2349_v22 = vunpack.c.l.bf16 %v2181_v2 }
 0xc60   : > { %v2333_v27 = vadd.f32 1.0, %v2325_v26 }
 0xc61   : > { %v1536_v19 = vmul.f32 0.5, %v1535_v15  ;;  %v3656_v25 = vpop.permute.xlu2 %1845  ;;  %v2364_v15 = vmul.f32 %v2356_v36, %v2348_v20 }
 0xc62   : > { %v2341_v47 = vpack.c.bf16 %v2333_v27, %v2333_v27 }
 0xc63   : > { %v1537_v38 = vsub.f32 1.5, %v1536_v19  ;;  %v1747_v19 = vrot.slane %v3674_v21, 7  ;;  %v2372_v0 = vpack.c.bf16 %v2364_v15, %v2364_v15 }
 0xc64   : > { %v2808_v30 = vpop.eup %2807  ;;  %v2357_v9 = vunpack.c.l.bf16 %v2341_v47 }
 0xc65   : > { %v1538_v54 = vmul.f32 %v3610_v46, %v1537_v38  ;;  %v1544_v35 = vmul.f32 %v2808_v30, %v3616_v48  ;;  %vm1550_vm13 = vweird.f32 %v2808_v30  ;;  %v1701_v38 = vpop.f32.mrf.mxu1  ;;  %v1831_v48 = vsel %vm1826_vm7, %v1820_v18, %v1821_v6 }
 0xc66   : > { %vm1551_vm15 = vmor %vm1549_vm9, %vm1550_vm13  ;;  %v1702_v23 = vadd.f32 %v1701_v38, %v3648_v12  ;;  %v2365_v57 = vmul.f32 %v2357_v9, %v2349_v22  ;;  %v2380_v20 = vunpack.c.l.bf16 %v2372_v0 }
 0xc67   : > { %v1545_v42 = vmul.f32 %v2808_v30, %v1544_v35  ;;  %v1542_v62 = vsel %vm3668_vm12, %v3610_v46, %v1538_v54 }
 0xc68   : > { %v1559_v46 = vmul.f32 %v1542_v62, %v3525_v50  ;;  %v2373_v40 = vpack.c.bf16 %v2365_v57, %v2365_v57 }
 0xc69   : > { %v1546_v41 = vmul.f32 0.5, %v1545_v42  ;;  %v1778_v44 = vpop.permute.xlu1 %1777  ;;  %v1856_v54 = vpop.permute.xlu2 %1855 }
 0xc6a   : > { %v1811_v11 = vmul.f32 %v1778_v44, %v1760_v43  ;;  %v1568_v50 = vmul.f32 %v3466_v61, %v1559_v46  ;;  %v1885_v51 = vmul.f32 %v1856_v54, %v1831_v48  ;;  %v2262_v43 = vadd.f32 %v2254_v39, %v3603_v14 }
 0xc6b   : > { %v1547_v63 = vsub.f32 1.5, %v1546_v41 }
 0xc6c   : > { %v1892_v31 = vadd.f32 %v1811_v11, %v1699_v45  ;;  %v1577_v13 = vadd.f32 %v3482_v33, %v1568_v50 }
 0xc6d   : > { %v1548_v26 = vmul.f32 %v2808_v30, %v1547_v63 }
 0xc6e   : > { %v1900_v60 = vadd.f32 %v1892_v31, %v1884_v10  ;;  %v2381_v10 = vunpack.c.l.bf16 %v2373_v40  ;;  %v1674_v40 = vpop.f32.mrf.mxu2 }
 0xc6f   : > { %v1552_v59 = vsel %vm1551_vm15, %v2808_v30, %v1548_v26  ;;  %v1759_v30 = vsel %vm1753_vm11, %v1746_v4, %v1747_v19 }
 0xc70   : > { %v1560_v3 = vmul.f32 %v1552_v59, %v3532_v53  ;;  %v1916_v35 = vpack.c.bf16 %v1900_v60, %v1900_v60 }
 0xc71   : > { %v1783_v53 = vpop.permute.xlu1 %1782 }
 0xc72   : > { %v1924_v27 = vunpack.c.l.bf16 %v1916_v35  ;;  %v1812_v42 = vmul.f32 %v1783_v53, %v1759_v30  ;;  %v1569_v36 = vmul.f32 %v3466_v61, %v1560_v3  ;;  %v2270_v61 = vpack.c.bf16 %v2262_v43, %v2262_v43 }
 0xc74   : > { %v1948_v5 = vmul.f32 0.044677734, %v1924_v27  ;;  %v1893_v62 = vadd.f32 %v1812_v42, %v1702_v23  ;;  %v1578_v18 = vadd.f32 %v3482_v33, %v1569_v36  ;;  %v3704_v41 = vmul.f32 %v2380_v20, %v1924_v27 }
 0xc75   : > { %v2278_v2 = vunpack.c.l.bf16 %v2270_v61 }
 0xc76   : > { %v1956_v4 = vpack.c.bf16 %v1948_v5, %v1948_v5  ;;  %v1901_v44 = vadd.f32 %v1893_v62, %v1885_v51  ;;  %v1582_v45 = vpack.c.bf16 %v1578_v18, %v1577_v13 }
 0xc77   : > { %v2286_v9 = vmul.f32 0.796875, %v2278_v2 }
 0xc78   : > { %v1964_v11 = vunpack.c.l.bf16 %v1956_v4  ;;  %v1917_v47 = vpack.c.bf16 %v1901_v44, %v1901_v44  ;;  %2656 = vmatmul.msk.bf16.gmra.mxu3 %vm352_vm0, %v1582_v45  ;;  %2660 = vmatmul.msk.bf16.gmra.mxu2 %vm352_vm0, %v1582_v45 }
 0xc79   : > { %2664 = vmatmul.msk.bf16.gmra.mxu1 %vm352_vm0, %v1582_v45  ;;  %2668 = vmatmul.msk.bf16.gmra.mxu0 %vm352_vm0, %v1582_v45  ;;  %v2294_v35 = vpack.c.bf16 %v2286_v9, %v2286_v9 }
 0xc7a   : > { %v1972_v33 = vmul.f32 %v1964_v11, %v1924_v27  ;;  %v1925_v63 = vunpack.c.l.bf16 %v1917_v47  ;;  %v1932_v11 = vmul.f32 0.5, %v1924_v27 }
 0xc7b   : > { %v2302_v30 = vunpack.c.l.bf16 %v2294_v35 }
 0xc7c   : > { %v1980_v15 = vpack.c.bf16 %v1972_v33, %v1972_v33  ;;  %v1949_v46 = vmul.f32 0.044677734, %v1925_v63  ;;  %v3711_v31 = vmul.f32 %v2381_v10, %v1925_v63  ;;  %v1639_v10 = vadd.f32 %v3566_v32, %v3580_v8 }
 0xc7d   : > { %2809 = vtanh.f32 %v2302_v30 }
 0xc7e   : > { %v1988_v24 = vunpack.c.l.bf16 %v1980_v15  ;;  %v1957_v26 = vpack.c.bf16 %v1949_v46, %v1949_v46  ;;  %v3716_v15 = vadd.f32 %v1674_v40, %v3624_v58  ;;  %v1940_v46 = vpack.c.bf16 %v1932_v11, %v1932_v11 }
 0xc80   : > { %v1996_v38 = vmul.f32 %v1988_v24, %v1924_v27  ;;  %v1965_v60 = vunpack.c.l.bf16 %v1957_v26  ;;  %v1748_v9 = vrot.slane %v3716_v15, 7 }
 0xc82   : > { %v2004_v59 = vpack.c.bf16 %v1996_v38, %v1996_v38  ;;  %v1973_v0 = vmul.f32 %v1965_v60, %v1925_v63  ;;  %v1907_v60 = vpack.c.bf16 %v1639_v10, %v1639_v10 }
 0xc83   : > { %v2810_v13 = vpop.eup %2809 }
 0xc84   : > { %v2012_v3 = vunpack.c.l.bf16 %v2004_v59  ;;  %v1981_v54 = vpack.c.bf16 %v1973_v0, %v1973_v0  ;;  %v2318_v4 = vpack.c.bf16 %v2810_v13, %v2810_v13  ;;  %v2108_v59 = vunpack.c.l.bf16 %v1940_v46 }
 0xc86   : > { %v2020_v50 = vadd.f32 %v2012_v3, %v1924_v27  ;;  %v1989_v22 = vunpack.c.l.bf16 %v1981_v54  ;;  %v2326_v61 = vunpack.c.l.bf16 %v2318_v4  ;;  %v2174_v27 = vmul.f32 0.5, %v3603_v14 }
 0xc87   : > { %v1933_v54 = vmul.f32 0.5, %v1925_v63 }
 0xc88   : > { %v2028_v23 = vpack.c.bf16 %v2020_v50, %v2020_v50  ;;  %v1997_v48 = vmul.f32 %v1989_v22, %v1925_v63  ;;  %v2334_v24 = vadd.f32 1.0, %v2326_v61  ;;  %v3720_v22 = vunpack.c.l.bf16 %v1907_v60 }
 0xc8a   : > { %v2036_v53 = vunpack.c.l.bf16 %v2028_v23  ;;  %v2005_v39 = vpack.c.bf16 %v1997_v48, %v1997_v48  ;;  %v2342_v35 = vpack.c.bf16 %v2334_v24, %v2334_v24  ;;  %v1758_v23 = vsel %vm1753_vm11, %v1747_v19, %v1748_v9 }
 0xc8b   : > { %v2182_v48 = vpack.c.bf16 %v2174_v27, %v2174_v27  ;;  %v2187_v13 = vmul.f32 0.044677734, %v3720_v22 }
 0xc8c   : > { %v2044_v42 = vmul.f32 0.796875, %v2036_v53  ;;  %v2013_v36 = vunpack.c.l.bf16 %v2005_v39 }
 0xc8d   : > { %v2350_v19 = vunpack.c.l.bf16 %v2182_v48 }
 0xc8e   : > { %v2052_v57 = vpack.c.bf16 %v2044_v42, %v2044_v42  ;;  %v2021_v51 = vadd.f32 %v2013_v36, %v1925_v63  ;;  %v1788_v42 = vpop.permute.xlu0 %1787  ;;  %v1703_v36 = vpop.f32.mrf.mxu1 }
 0xc90   : > { %v2060_v20 = vunpack.c.l.bf16 %v2052_v57  ;;  %v2029_v5 = vpack.c.bf16 %v2021_v51, %v2021_v51  ;;  %v1941_v57 = vpack.c.bf16 %v1933_v54, %v1933_v54  ;;  %v2358_v51 = vunpack.c.l.bf16 %v2342_v35 }
 0xc91   : > { %v2397_v54 = vpack.c.bf16 %v3711_v31, %v3711_v31 }
 0xc92   : > { %2811 = vtanh.f32 %v2060_v20  ;;  %v2037_v62 = vunpack.c.l.bf16 %v2029_v5  ;;  %v1813_v20 = vmul.f32 %v1788_v42, %v1758_v23  ;;  %v2109_v11 = vunpack.c.l.bf16 %v1941_v57 }
 0xc94   : > { %v2045_v18 = vmul.f32 0.796875, %v2037_v62 }
 0xc96   : > { %v2053_v43 = vpack.c.bf16 %v2045_v18, %v2045_v18  ;;  %v1861_v18 = vpop.permute.xlu1 %1860 }
 0xc98   : > { %v2812_v44 = vpop.eup %2811  ;;  %v2061_v45 = vunpack.c.l.bf16 %v2053_v43  ;;  %v1704_v43 = vadd.f32 %v1703_v36, %v3648_v12 }
 0xc99   : > { %v2076_v47 = vpack.c.bf16 %v2812_v44, %v2812_v44  ;;  %v2396_v44 = vpack.c.bf16 %v3704_v41, %v3704_v41 }
 0xc9a   : > { %2813 = vtanh.f32 %v2061_v45  ;;  %v1894_v61 = vadd.f32 %v1813_v20, %v1704_v43 }
 0xc9b   : > { %v2084_v33 = vunpack.c.l.bf16 %v2076_v47  ;;  %v2366_v47 = vmul.f32 %v2358_v51, %v2350_v19 }
 0xc9d   : > { %v2092_v2 = vadd.f32 1.0, %v2084_v33  ;;  %v2374_v41 = vpack.c.bf16 %v2366_v47, %v2366_v47 }
 0xc9e   : > { %v1866_v15 = vpop.permute.xlu1 %1865 }
 0xc9f   : > { %v2100_v26 = vpack.c.bf16 %v2092_v2, %v2092_v2  ;;  %v2195_v2 = vpack.c.bf16 %v2187_v13, %v2187_v13 }
 0xca0   : > { %v2814_v38 = vpop.eup %2813 }
 0xca1   : > { %v2116_v0 = vunpack.c.l.bf16 %v2100_v26  ;;  %v2077_v3 = vpack.c.bf16 %v2814_v38, %v2814_v38  ;;  %v2412_v26 = vunpack.c.l.bf16 %v2396_v44  ;;  %v2203_v37 = vunpack.c.l.bf16 %v2195_v2 }
 0xca3   : > { %v2124_v50 = vmul.f32 %v2116_v0, %v2108_v59  ;;  %v2085_v32 = vunpack.c.l.bf16 %v2077_v3  ;;  %v2382_v3 = vunpack.c.l.bf16 %v2374_v41  ;;  %v2211_v23 = vmul.f32 %v2203_v37, %v3720_v22 }
 0xca5   : > { %v1735_v30 = vpop.f32.mrf.mxu0  ;;  %v2132_v53 = vpack.c.bf16 %v2124_v50, %v2124_v50  ;;  %v2093_v39 = vadd.f32 1.0, %v2085_v32  ;;  %v2219_v36 = vpack.c.bf16 %v2211_v23, %v2211_v23 }
 0xca6   : > { %v3729_v63 = vadd.f32 %v1735_v30, %v3613_v29 }
 0xca7   : > { %v2148_v5 = vunpack.c.l.bf16 %v2132_v53  ;;  %v2101_v62 = vpack.c.bf16 %v2093_v39, %v2093_v39  ;;  %v2413_v53 = vunpack.c.l.bf16 %v2397_v54 }
 0xca8   : > { %v1822_v21 = vrot.slane %v3729_v63, 1 }
 0xca9   : > { %v2156_v4 = vmul.f32 %v2148_v5, %v3587_v49  ;;  %v2117_v45 = vunpack.c.l.bf16 %v2101_v62 }
 0xcaa   : > { %v1830_v40 = vsel %vm1826_vm7, %v1821_v6, %v1822_v21 }
 0xcab   : > { %v1886_v33 = vmul.f32 %v1861_v18, %v1830_v40  ;;  %v2164_v10 = vpack.c.bf16 %v2156_v4, %v2156_v4  ;;  %v2125_v46 = vmul.f32 %v2117_v45, %v2109_v11 }
 0xcad   : > { %v1902_v24 = vadd.f32 %v1894_v61, %v1886_v33  ;;  %v2404_v49 = vunpack.c.l.bf16 %v2164_v10  ;;  %v2133_v38 = vpack.c.bf16 %v2125_v46, %v2125_v46  ;;  %v1737_v37 = vpop.f32.mrf.mxu0 }
 0xcaf   : > { %v1918_v60 = vpack.c.bf16 %v1902_v24, %v1902_v24  ;;  %v3743_v27 = vadd.f32 %v2412_v26, %v2404_v49  ;;  %v2149_v59 = vunpack.c.l.bf16 %v2133_v38  ;;  %v1677_v49 = vpop.f32.mrf.mxu2 }
 0xcb1   : > { %v1926_v0 = vunpack.c.l.bf16 %v1918_v60  ;;  %v2157_v6 = vmul.f32 %v2149_v59, %v3592_v56  ;;  %v2227_v56 = vunpack.c.l.bf16 %v2219_v36  ;;  %v1678_v59 = vadd.f32 %v1677_v49, %v3624_v58  ;;  %v1798_v49 = vpop.permute.xlu2 %1797 }
 0xcb3   : > { %v1950_v35 = vmul.f32 0.044677734, %v1926_v0  ;;  %v2165_v50 = vpack.c.bf16 %v2157_v6, %v2157_v6  ;;  %v3748_v32 = vmul.f32 %v2382_v3, %v1926_v0  ;;  %v2235_v31 = vmul.f32 %v2227_v56, %v3720_v22 }
 0xcb4   : > { %v1934_v46 = vmul.f32 0.5, %v1926_v0 }
 0xcb5   : > { %v1958_v48 = vpack.c.bf16 %v1950_v35, %v1950_v35  ;;  %v2405_v30 = vunpack.c.l.bf16 %v2165_v50  ;;  %v2243_v18 = vpack.c.bf16 %v2235_v31, %v2235_v31  ;;  %v1749_v35 = vrot.slane %v1678_v59, 7 }
 0xcb6   : > { %v1942_v38 = vpack.c.bf16 %v1934_v46, %v1934_v46  ;;  %v1738_v50 = vadd.f32 %v1737_v37, %v3613_v29  ;;  %v2171_v37 = vmul.f32 0.5, %v3720_v22 }
 0xcb7   : > { %v1966_v39 = vunpack.c.l.bf16 %v1958_v48  ;;  %v3751_v42 = vadd.f32 %v2413_v53, %v2405_v30  ;;  %v2251_v4 = vunpack.c.l.bf16 %v2243_v18  ;;  %v1757_v53 = vsel %vm1753_vm11, %v1748_v9, %v1749_v35  ;;  %v1679_v9 = vpop.f32.mrf.mxu2 }
 0xcb8   : > { %v2110_v3 = vunpack.c.l.bf16 %v1942_v38 }
 0xcb9   : > { %v1974_v57 = vmul.f32 %v1966_v39, %v1926_v0  ;;  %v2259_v40 = vadd.f32 %v2251_v4, %v3720_v22  ;;  %v1823_v39 = vrot.slane %v1738_v50, 1 }
 0xcbb   : > { %v1982_v51 = vpack.c.bf16 %v1974_v57, %v1974_v57  ;;  %v2267_v61 = vpack.c.bf16 %v2259_v40, %v2259_v40  ;;  %v1793_v57 = vpop.permute.xlu0 %1792  ;;  %v1829_v31 = vsel %vm1826_vm7, %v1822_v21, %v1823_v39 }
 0xcbc   : > { %v1814_v56 = vmul.f32 %v1793_v57, %v1757_v53 }
 0xcbd   : > { %v1990_v20 = vunpack.c.l.bf16 %v1982_v51  ;;  %v2275_v33 = vunpack.c.l.bf16 %v2267_v61  ;;  %v1706_v51 = vpop.f32.mrf.mxu1 }
 0xcbf   : > { %v1998_v5 = vmul.f32 %v1990_v20, %v1926_v0  ;;  %v2283_v24 = vmul.f32 0.796875, %v2275_v33 }
 0xcc1   : > { %v2006_v62 = vpack.c.bf16 %v1998_v5, %v1998_v5  ;;  %v2291_v60 = vpack.c.bf16 %v2283_v24, %v2283_v24  ;;  %v2398_v5 = vpack.c.bf16 %v3748_v32, %v3748_v32 }
 0xcc3   : > { %v2014_v13 = vunpack.c.l.bf16 %v2006_v62  ;;  %v2299_v23 = vunpack.c.l.bf16 %v2291_v60  ;;  %v1707_v62 = vadd.f32 %v1706_v51, %v3648_v12  ;;  %v2179_v51 = vpack.c.bf16 %v2171_v37, %v2171_v37 }
 0xcc5   : > { %v2022_v19 = vadd.f32 %v2014_v13, %v1926_v0  ;;  %v1648_v0 = vpop.f32.mrf.mxu3 }
 0xcc6   : > { %v1649_v63 = vadd.f32 %v1648_v0, %v3580_v8 }
 0xcc7   : > { %v2030_v43 = vpack.c.bf16 %v2022_v19, %v2022_v19  ;;  %v1895_v19 = vadd.f32 %v1814_v56, %v1707_v62  ;;  %v1726_v62 = vadd.f32 %v3600_v16, %v3613_v29  ;;  %v2715_v16 = vld [vmem:[%s3964_s6 + $0x28] sm:$0xff] }
 0xcc9   : > { %v2038_v44 = vunpack.c.l.bf16 %v2030_v43  ;;  %v1887_v43 = vmul.f32 %v1866_v15, %v1829_v31  ;;  %v2716_v15 = vld [vmem:[%s3964_s6 + $0x30] sm:$0xff] }
 0xccb   : > { %v2046_v45 = vmul.f32 0.796875, %v2038_v44  ;;  %v2414_v44 = vunpack.c.l.bf16 %v2398_v5 }
 0xccd   : > { %v2054_v11 = vpack.c.bf16 %v2046_v45, %v2046_v45  ;;  %v1650_v32 = vpop.f32.mrf.mxu3 }
 0xcce   : > { %v1651_v61 = vadd.f32 %v1650_v32, %v3580_v8 }
 0xccf   : > { %v2062_v47 = vunpack.c.l.bf16 %v2054_v11  ;;  %v1903_v11 = vadd.f32 %v1895_v19, %v1887_v43 }
 0xcd1   : > { %2815 = vtanh.f32 %v2062_v47  ;;  %v1919_v46 = vpack.c.bf16 %v1903_v11, %v1903_v11  ;;  %v2347_v11 = vunpack.c.l.bf16 %v2179_v51 }
 0xcd2   : > { %2817 = vtanh.f32 %v2299_v23 }
 0xcd7   : > { %v2816_v10 = vpop.eup %2815 }
 0xcd8   : > { %v2078_v2 = vpack.c.bf16 %v2816_v10, %v2816_v10  ;;  %v2818_v18 = vpop.eup %2817  ;;  %v1911_v10 = vpack.c.bf16 %v1649_v63, %v1649_v63 }
 0xcd9   : > { %v2315_v45 = vpack.c.bf16 %v2818_v18, %v2818_v18 }
 0xcda   : > { %v2086_v26 = vunpack.c.l.bf16 %v2078_v2  ;;  %v1708_v2 = vpop.f32.mrf.mxu1  ;;  %v3778_v60 = vunpack.c.l.bf16 %v1911_v10 }
 0xcdb   : > { %v2323_v33 = vunpack.c.l.bf16 %v2315_v45  ;;  %v1709_v23 = vadd.f32 %v1708_v2, %v3648_v12 }
 0xcdc   : > { %v2094_v41 = vadd.f32 1.0, %v2086_v26  ;;  %v1912_v26 = vpack.c.bf16 %v1651_v61, %v1651_v61  ;;  %v2191_v0 = vmul.f32 0.044677734, %v3778_v60 }
 0xcde   : > { %v2102_v6 = vpack.c.bf16 %v2094_v41, %v2094_v41  ;;  %v2331_v41 = vadd.f32 1.0, %v2323_v33 }
 0xce0   : > { %v2118_v54 = vunpack.c.l.bf16 %v2102_v6  ;;  %v1871_v6 = vpop.permute.xlu0 %1870 }
 0xce2   : > { %v2126_v48 = vmul.f32 %v2118_v54, %v2110_v3  ;;  %v3782_v3 = vunpack.c.l.bf16 %v1919_v46  ;;  %v1818_v46 = vrot.slane %v1726_v62, 1 }
 0xce4   : > { %v2134_v30 = vpack.c.bf16 %v2126_v48, %v2126_v48  ;;  %v3785_v48 = vunpack.c.l.bf16 %v1912_v26  ;;  %v1951_v56 = vmul.f32 0.044677734, %v3782_v3 }
 0xce6   : > { %v2150_v36 = vunpack.c.l.bf16 %v2134_v30  ;;  %v2339_v30 = vpack.c.bf16 %v2331_v41, %v2331_v41  ;;  %v1959_v45 = vpack.c.bf16 %v1951_v56, %v1951_v56 }
 0xce8   : > { %v2158_v20 = vmul.f32 %v2150_v36, %v3603_v14  ;;  %v1680_v14 = vadd.f32 %v1679_v9, %v3624_v58  ;;  %v2355_v43 = vunpack.c.l.bf16 %v2339_v30  ;;  %v1876_v2 = vpop.permute.xlu0 %1875  ;;  %v2714_v30 = vld [vmem:[%s3964_s6 + $0x20] sm:$0xff] }
 0xcea   : > { %v2166_v13 = vpack.c.bf16 %v2158_v20, %v2158_v20  ;;  %v1750_v47 = vrot.slane %v1680_v14, 7  ;;  %v1803_v14 = vpop.permute.xlu2 %1802 }
 0xcec   : > { %v2406_v4 = vunpack.c.l.bf16 %v2166_v13  ;;  %v1756_v24 = vsel %vm1753_vm11, %v1749_v35, %v1750_v47  ;;  %v2717_v35 = vld [vmem:[%s3964_s6 + $0x38] sm:$0xff] }
 0xced   : > { %v1815_v54 = vmul.f32 %v1798_v49, %v1756_v24  ;;  %2496 = vmatpush.bf16.msrb.mxu3 %v2717_v35  ;;  %v3810_v49 = vmul.f32 %v2355_v43, %v2347_v11 }
 0xcee   : > { %v3770_v40 = vadd.f32 %v2414_v44, %v2406_v4  ;;  %v2199_v4 = vpack.c.bf16 %v2191_v0, %v2191_v0  ;;  %v1697_v0 = vadd.f32 %v3607_v7, %v3648_v12 }
 0xcef   : > { %v1896_v20 = vadd.f32 %v1815_v54, %v1709_v23 }
 0xcf0   : > { %v2428_v21 = vpack.c.bf16 %v3770_v40, %v3751_v42  ;;  %v2207_v26 = vunpack.c.l.bf16 %v2199_v4 }
 0xcf1   : > { %2497 = vmatpush.bf16.msrb.mxu3 %v2716_v15 }
 0xcf5   : > { %2498 = vmatpush.bf16.msrb.mxu3 %v2715_v16 }
 0xcf6   : > { %v1740_v38 = vpop.f32.mrf.mxu0  ;;  %v1711_v9 = vpop.f32.mrf.mxu1 }
 0xcf7   : > { %v1741_v59 = vadd.f32 %v1740_v38, %v3613_v29  ;;  %v1712_v61 = vadd.f32 %v1711_v9, %v3648_v12  ;;  %v2713_v9 = vld [vmem:[%s3964_s6 + $0x18] sm:$0xff] }
 0xcf9   : > { %v1824_v50 = vrot.slane %v1741_v59, 1  ;;  %2499 = vmatpush.bf16.msrb.mxu3 %v2714_v30 }
 0xcfb   : > { %v1828_v53 = vsel %vm1826_vm7, %v1823_v39, %v1824_v50  ;;  %v1653_v36 = vpop.f32.mrf.mxu3  ;;  %v1682_v57 = vpop.f32.mrf.mxu2  ;;  %v2192_v39 = vmul.f32 0.044677734, %v3785_v48 }
 0xcfc   : > { %v1888_v5 = vmul.f32 %v1871_v6, %v1828_v53  ;;  %v1683_v31 = vadd.f32 %v1682_v57, %v3624_v58  ;;  %v1967_v6 = vunpack.c.l.bf16 %v1959_v45  ;;  %v1881_v45 = vpop.permute.xlu2 %1880 }
 0xcfd   : > { %v2200_v24 = vpack.c.bf16 %v2192_v39, %v2192_v39  ;;  %2500 = vmatpush.bf16.msrb.mxu3 %v2713_v9 }
 0xcfe   : > { %v1904_v13 = vadd.f32 %v1896_v20, %v1888_v5  ;;  %v1751_v18 = vrot.slane %v1683_v31, 7  ;;  %v1742_v19 = vpop.f32.mrf.mxu0  ;;  %v1713_v20 = vpop.f32.mrf.mxu1  ;;  %v2371_v31 = vpack.c.bf16 %v3810_v49, %v3810_v49  ;;  %v1975_v55 = vmul.f32 %v1967_v6, %v3782_v3 }
 0xcff   : > { %v1743_v44 = vadd.f32 %v1742_v19, %v3613_v29  ;;  %v1808_v5 = vpop.permute.xlu1 %1807  ;;  %v1714_v28 = vadd.f32 %v1713_v20, %v3648_v12  ;;  %v2712_v12 = vld [vmem:[%s3964_s6 + $0x10] sm:$0xff] }
 0xd00   : > { %v1920_v63 = vpack.c.bf16 %v1904_v13, %v1904_v13  ;;  %v1755_v32 = vsel %vm1753_vm11, %v1750_v47, %v1751_v18  ;;  %v1654_v47 = vadd.f32 %v1653_v36, %v3580_v8  ;;  %v2208_v36 = vunpack.c.l.bf16 %v2200_v24 }
 0xd01   : > { %v1816_v33 = vmul.f32 %v1803_v14, %v1755_v32  ;;  %v1825_v10 = vrot.slane %v1743_v44, 1  ;;  %2501 = vmatpush.bf16.msrb.mxu3 %v2712_v12 }
 0xd02   : > { %v3808_v29 = vunpack.c.l.bf16 %v1920_v63  ;;  %v1913_v56 = vpack.c.bf16 %v1654_v47, %v1654_v47  ;;  %v2216_v4 = vmul.f32 %v2208_v36, %v3785_v48 }
 0xd03   : > { %v1897_v38 = vadd.f32 %v1816_v33, %v1712_v61  ;;  %v1827_v41 = vsel %vm1826_vm7, %v1824_v50, %v1825_v10  ;;  %v1655_v59 = vpop.f32.mrf.mxu3  ;;  %v1684_v37 = vpop.f32.mrf.mxu2  ;;  %v1833_v50 = vsel %vm1826_vm7, %v1818_v46, %v1819_v52  ;;  %v1834_v39 = vsel %vm1826_vm7, %v1825_v10, %v1818_v46 }
 0xd04   : > { %v1889_v54 = vmul.f32 %v1876_v2, %v1827_v41  ;;  %v1656_v23 = vadd.f32 %v1655_v59, %v3580_v8  ;;  %v1685_v35 = vadd.f32 %v1684_v37, %v3624_v58  ;;  %v1952_v53 = vmul.f32 0.044677734, %v3808_v29  ;;  %v2711_v59 = vld [vmem:[%s3964_s6 + $0x8] sm:$0xff] }
 0xd05   : > { %v2215_v58 = vmul.f32 %v2207_v26, %v3778_v60  ;;  %v1883_v14 = vmul.f32 %v3656_v25, %v1833_v50  ;;  %v3850_v63 = vunpack.c.l.bf16 %v1913_v56  ;;  %v2224_v46 = vpack.c.bf16 %v2216_v4, %v2216_v4  ;;  %2502 = vmatpush.bf16.msrb.mxu3 %v2711_v59 }
 0xd06   : > { %v1905_v57 = vadd.f32 %v1897_v38, %v1889_v54  ;;  %v1914_v8 = vpack.c.bf16 %v1656_v23, %v1656_v23  ;;  %v1752_v51 = vrot.slane %v1685_v35, 7  ;;  %v1960_v7 = vpack.c.bf16 %v1952_v53, %v1952_v53 }
 0xd07   : > { %v2223_v61 = vpack.c.bf16 %v2215_v58, %v2215_v58  ;;  %v2193_v24 = vmul.f32 0.044677734, %v3850_v63  ;;  %v2379_v54 = vunpack.c.l.bf16 %v2371_v31  ;;  %v2232_v35 = vunpack.c.l.bf16 %v2224_v46 }
 0xd08   : > { %v1921_v15 = vpack.c.bf16 %v1905_v57, %v1905_v57  ;;  %v3831_v62 = vunpack.c.l.bf16 %v1914_v8  ;;  %v1761_v52 = vsel %vm1753_vm11, %v1752_v51, %v1745_v34  ;;  %v1754_v19 = vsel %vm1753_vm11, %v1751_v18, %v1752_v51  ;;  %v2710_v51 = vld [vmem:[%s3964_s6] sm:$0xff] }
 0xd09   : > { %v1810_v13 = vmul.f32 %v3627_v1, %v1761_v52  ;;  %v1968_v43 = vunpack.c.l.bf16 %v1960_v7  ;;  %v1817_v34 = vmul.f32 %v1808_v5, %v1754_v19  ;;  %v1983_v1 = vpack.c.bf16 %v1975_v55, %v1975_v55  ;;  %2503 = vmatpush.bf16.msrb.mxu3 %v2710_v51 }
 0xd0a   : > { %v3847_v44 = vunpack.c.l.bf16 %v1921_v15  ;;  %v2194_v17 = vmul.f32 0.044677734, %v3831_v62  ;;  %v1890_v18 = vmul.f32 %v1881_v45, %v1834_v39  ;;  %v2231_v37 = vunpack.c.l.bf16 %v2223_v61 }
 0xd0b   : > { %v1891_v32 = vadd.f32 %v1810_v13, %v1697_v0  ;;  %v1976_v16 = vmul.f32 %v1968_v43, %v3808_v29  ;;  %v1898_v11 = vadd.f32 %v1817_v34, %v1714_v28  ;;  %v1991_v47 = vunpack.c.l.bf16 %v1983_v1 }
 0xd0c   : > { %v1953_v25 = vmul.f32 0.044677734, %v3847_v44  ;;  %v2202_v38 = vpack.c.bf16 %v2194_v17, %v2194_v17  ;;  %v2201_v0 = vpack.c.bf16 %v2193_v24, %v2193_v24  ;;  %v2239_v56 = vmul.f32 %v2231_v37, %v3778_v60 }
 0xd0d   : > { %v1899_v33 = vadd.f32 %v1891_v32, %v1883_v14  ;;  %v1984_v10 = vpack.c.bf16 %v1976_v16, %v1976_v16  ;;  %v1906_v2 = vadd.f32 %v1898_v11, %v1890_v18  ;;  %v1999_v58 = vmul.f32 %v1991_v47, %v3782_v3 }
 0xd0e   : > { %v1961_v23 = vpack.c.bf16 %v1953_v25, %v1953_v25  ;;  %v2210_v57 = vunpack.c.l.bf16 %v2202_v38  ;;  %v2240_v31 = vmul.f32 %v2232_v35, %v3785_v48  ;;  %v2209_v55 = vunpack.c.l.bf16 %v2201_v0 }
 0xd0f   : > { %v1915_v49 = vpack.c.bf16 %v1899_v33, %v1899_v33  ;;  %v1992_v26 = vunpack.c.l.bf16 %v1984_v10  ;;  %v1922_v41 = vpack.c.bf16 %v1906_v2, %v1906_v2  ;;  %v2007_v13 = vpack.c.bf16 %v1999_v58, %v1999_v58 }
 0xd10   : > { %v1969_v5 = vunpack.c.l.bf16 %v1961_v23  ;;  %v2218_v9 = vmul.f32 %v2210_v57, %v3831_v62  ;;  %v2247_v19 = vpack.c.bf16 %v2239_v56, %v2239_v56  ;;  %v2248_v28 = vpack.c.bf16 %v2240_v31, %v2240_v31 }
 0xd11   : > { %v3862_v6 = vunpack.c.l.bf16 %v1915_v49  ;;  %v3864_v30 = vunpack.c.l.bf16 %v1922_v41  ;;  %v2000_v36 = vmul.f32 %v1992_v26, %v3808_v29  ;;  %v2217_v14 = vmul.f32 %v2209_v55, %v3850_v63 }
 0xd12   : > { %v1977_v4 = vmul.f32 %v1969_v5, %v3847_v44  ;;  %v2226_v16 = vpack.c.bf16 %v2218_v9, %v2218_v9  ;;  %v2015_v1 = vunpack.c.l.bf16 %v2007_v13  ;;  %v2255_v11 = vunpack.c.l.bf16 %v2247_v19 }
 0xd13   : > { %v1947_v50 = vmul.f32 0.044677734, %v3862_v6  ;;  %v3868_v53 = vmul.f32 %v2379_v54, %v3862_v6  ;;  %v1954_v8 = vmul.f32 0.044677734, %v3864_v30  ;;  %v2008_v52 = vpack.c.bf16 %v2000_v36, %v2000_v36 }
 0xd14   : > { %v1985_v12 = vpack.c.bf16 %v1977_v4, %v1977_v4  ;;  %v2256_v61 = vunpack.c.l.bf16 %v2248_v28  ;;  %v2225_v33 = vpack.c.bf16 %v2217_v14, %v2217_v14  ;;  %v2234_v2 = vunpack.c.l.bf16 %v2226_v16 }
 0xd15   : > { %v1955_v20 = vpack.c.bf16 %v1947_v50, %v1947_v50  ;;  %v1962_v7 = vpack.c.bf16 %v1954_v8, %v1954_v8  ;;  %v2016_v32 = vunpack.c.l.bf16 %v2008_v52  ;;  %v2023_v24 = vadd.f32 %v2015_v1, %v3782_v3 }
 0xd16   : > { %v2263_v26 = vadd.f32 %v2255_v11, %v3778_v60  ;;  %v1993_v47 = vunpack.c.l.bf16 %v1985_v12  ;;  %v2264_v38 = vadd.f32 %v2256_v61, %v3785_v48  ;;  %v2233_v41 = vunpack.c.l.bf16 %v2225_v33 }
 0xd17   : > { %v1963_v15 = vunpack.c.l.bf16 %v1955_v20  ;;  %v1970_v39 = vunpack.c.l.bf16 %v1962_v7  ;;  %v2024_v25 = vadd.f32 %v2016_v32, %v3808_v29  ;;  %v2242_v23 = vmul.f32 %v2234_v2, %v3831_v62 }
 0xd18   : > { %v2031_v35 = vpack.c.bf16 %v2023_v24, %v2023_v24  ;;  %v2271_v50 = vpack.c.bf16 %v2263_v26, %v2263_v26  ;;  %v2001_v36 = vmul.f32 %v1993_v47, %v3847_v44  ;;  %v2272_v57 = vpack.c.bf16 %v2264_v38, %v2264_v38 }
 0xd19   : > { %v1971_v43 = vmul.f32 %v1963_v15, %v3862_v6  ;;  %v1978_v34 = vmul.f32 %v1970_v39, %v3864_v30  ;;  %v2032_v37 = vpack.c.bf16 %v2024_v25, %v2024_v25  ;;  %v2241_v8 = vmul.f32 %v2233_v41, %v3850_v63 }
 0xd1a   : > { %v2250_v20 = vpack.c.bf16 %v2242_v23, %v2242_v23  ;;  %v2039_v5 = vunpack.c.l.bf16 %v2031_v35  ;;  %v2279_v7 = vunpack.c.l.bf16 %v2271_v50  ;;  %v2009_v55 = vpack.c.bf16 %v2001_v36, %v2001_v36 }
 0xd1b   : > { %v1979_v45 = vpack.c.bf16 %v1971_v43, %v1971_v43  ;;  %v1986_v17 = vpack.c.bf16 %v1978_v34, %v1978_v34  ;;  %v2040_v58 = vunpack.c.l.bf16 %v2032_v37  ;;  %v2280_v15 = vunpack.c.l.bf16 %v2272_v57 }
 0xd1c   : > { %v2249_v52 = vpack.c.bf16 %v2241_v8, %v2241_v8  ;;  %v2047_v19 = vmul.f32 0.796875, %v2039_v5  ;;  %v2258_v43 = vunpack.c.l.bf16 %v2250_v20  ;;  %v2287_v28 = vmul.f32 0.796875, %v2279_v7 }
 0xd1d   : > { %v1987_v18 = vunpack.c.l.bf16 %v1979_v45  ;;  %v1994_v46 = vunpack.c.l.bf16 %v1986_v17  ;;  %v2048_v39 = vmul.f32 0.796875, %v2040_v58  ;;  %v2017_v34 = vunpack.c.l.bf16 %v2009_v55 }
 0xd1e   : > { %v2288_v14 = vmul.f32 0.796875, %v2280_v15  ;;  %v2257_v1 = vunpack.c.l.bf16 %v2249_v52  ;;  %v2055_v17 = vpack.c.bf16 %v2047_v19, %v2047_v19  ;;  %v2295_v11 = vpack.c.bf16 %v2287_v28, %v2287_v28 }
 0xd1f   : > { %v1995_v10 = vmul.f32 %v1987_v18, %v3862_v6  ;;  %v2002_v54 = vmul.f32 %v1994_v46, %v3864_v30  ;;  %v2056_v32 = vpack.c.bf16 %v2048_v39, %v2048_v39  ;;  %v2266_v18 = vadd.f32 %v2258_v43, %v3831_v62 }
 0xd20   : > { %v2025_v12 = vadd.f32 %v2017_v34, %v3847_v44  ;;  %v2296_v61 = vpack.c.bf16 %v2288_v14, %v2288_v14  ;;  %v2265_v25 = vadd.f32 %v2257_v1, %v3850_v63  ;;  %v2063_v46 = vunpack.c.l.bf16 %v2055_v17 }
 0xd21   : > { %v2003_v49 = vpack.c.bf16 %v1995_v10, %v1995_v10  ;;  %v2010_v56 = vpack.c.bf16 %v2002_v54, %v2002_v54  ;;  %v2064_v33 = vunpack.c.l.bf16 %v2056_v32  ;;  %v2274_v2 = vpack.c.bf16 %v2266_v18, %v2266_v18 }
 0xd22   : > { %v2303_v24 = vunpack.c.l.bf16 %v2295_v11  ;;  %v2304_v26 = vunpack.c.l.bf16 %v2296_v61  ;;  %v2273_v41 = vpack.c.bf16 %v2265_v25, %v2265_v25 }
 0xd23   : > { %v2011_v59 = vunpack.c.l.bf16 %v2003_v49  ;;  %v2018_v13 = vunpack.c.l.bf16 %v2010_v56  ;;  %v2033_v49 = vpack.c.bf16 %v2025_v12, %v2025_v12  ;;  %v2282_v54 = vunpack.c.l.bf16 %v2274_v2 }
 0xd24   : > { %v2281_v50 = vunpack.c.l.bf16 %v2273_v41  ;;  %v1936_v2 = vmul.f32 0.5, %v3808_v29 }
 0xd25   : > { %v2019_v0 = vadd.f32 %v2011_v59, %v3862_v6  ;;  %v2026_v16 = vadd.f32 %v2018_v13, %v3864_v30  ;;  %v1931_v59 = vmul.f32 0.5, %v3862_v6  ;;  %v2041_v23 = vunpack.c.l.bf16 %v2033_v49 }
 0xd26   : > { %v2290_v8 = vmul.f32 0.796875, %v2282_v54  ;;  %v2289_v7 = vmul.f32 0.796875, %v2281_v50 }
 0xd27   : > { %v2027_v51 = vpack.c.bf16 %v2019_v0, %v2019_v0  ;;  %v2034_v10 = vpack.c.bf16 %v2026_v16, %v2026_v16  ;;  %v1939_v36 = vpack.c.bf16 %v1931_v59, %v1931_v59  ;;  %v2049_v58 = vmul.f32 0.796875, %v2041_v23 }
 0xd28   : > { %v2297_v34 = vpack.c.bf16 %v2289_v7, %v2289_v7 }
 0xd29   : > { %v2035_v31 = vunpack.c.l.bf16 %v2027_v51  ;;  %v2042_v38 = vunpack.c.l.bf16 %v2034_v10  ;;  %v2107_v55 = vunpack.c.l.bf16 %v1939_v36  ;;  %v2057_v13 = vpack.c.bf16 %v2049_v58, %v2049_v58 }
 0xd2a   : > { %v2305_v12 = vunpack.c.l.bf16 %v2297_v34 }
 0xd2b   : > { %v2043_v9 = vmul.f32 0.796875, %v2035_v31  ;;  %v2050_v0 = vmul.f32 0.796875, %v2042_v38  ;;  %v2065_v1 = vunpack.c.l.bf16 %v2057_v13 }
 0xd2d   : > { %v2051_v4 = vpack.c.bf16 %v2043_v9, %v2043_v9  ;;  %v2058_v31 = vpack.c.bf16 %v2050_v0, %v2050_v0  ;;  %v2298_v9 = vpack.c.bf16 %v2290_v8, %v2290_v8 }
 0xd2f   : > { %v2059_v45 = vunpack.c.l.bf16 %v2051_v4  ;;  %v2066_v28 = vunpack.c.l.bf16 %v2058_v31  ;;  %v2306_v32 = vunpack.c.l.bf16 %v2298_v9 }
 0xd31   : > { %2819 = vtanh.f32 %v2059_v45 }
 0xd32   : > { %2821 = vtanh.f32 %v2064_v33  ;;  %v2395_v33 = vpack.c.bf16 %v3868_v53, %v3868_v53  ;;  %v2176_v53 = vmul.f32 0.5, %v3785_v48 }
 0xd33   : > { %2823 = vtanh.f32 %v2063_v46 }
 0xd34   : > { %2825 = vtanh.f32 %v2303_v24  ;;  %v1935_v24 = vmul.f32 0.5, %v3782_v3  ;;  %v2411_v38 = vunpack.c.l.bf16 %v2395_v33  ;;  %v2184_v31 = vpack.c.bf16 %v2176_v53, %v2176_v53 }
 0xd35   : > { %2827 = vtanh.f32 %v2304_v26 }
 0xd36   : > { %2829 = vtanh.f32 %v2066_v28  ;;  %v1943_v50 = vpack.c.bf16 %v1935_v24, %v1935_v24  ;;  %v2352_v28 = vunpack.c.l.bf16 %v2184_v31 }
 0xd37   : > { %v2820_v47 = vpop.eup %2819  ;;  %2831 = vtanh.f32 %v2306_v32 }
 0xd38   : > { %v2075_v37 = vpack.c.bf16 %v2820_v47, %v2820_v47  ;;  %v2822_v51 = vpop.eup %2821  ;;  %2833 = vtanh.f32 %v2065_v1 }
 0xd39   : > { %v2824_v56 = vpop.eup %2823  ;;  %v2080_v52 = vpack.c.bf16 %v2822_v51, %v2822_v51  ;;  %2835 = vtanh.f32 %v2305_v12 }
 0xd3a   : > { %v2083_v35 = vunpack.c.l.bf16 %v2075_v37  ;;  %v2826_v5 = vpop.eup %2825  ;;  %v2079_v39 = vpack.c.bf16 %v2824_v56, %v2824_v56  ;;  %v2175_v37 = vmul.f32 0.5, %v3778_v60 }
 0xd3b   : > { %v2828_v6 = vpop.eup %2827  ;;  %v2319_v43 = vpack.c.bf16 %v2826_v5, %v2826_v5  ;;  %v2088_v45 = vunpack.c.l.bf16 %v2080_v52 }
 0xd3c   : > { %v2091_v57 = vadd.f32 1.0, %v2083_v35  ;;  %v2320_v4 = vpack.c.bf16 %v2828_v6, %v2828_v6  ;;  %v2087_v16 = vunpack.c.l.bf16 %v2079_v39  ;;  %v2830_v59 = vpop.eup %2829  ;;  %v1944_v35 = vpack.c.bf16 %v1936_v2, %v1936_v2 }
 0xd3d   : > { %v2327_v18 = vunpack.c.l.bf16 %v2319_v43  ;;  %v2096_v10 = vadd.f32 1.0, %v2088_v45  ;;  %v2832_v54 = vpop.eup %2831  ;;  %v2082_v58 = vpack.c.bf16 %v2830_v59, %v2830_v59  ;;  %v2183_v5 = vpack.c.bf16 %v2175_v37, %v2175_v37 }
 0xd3e   : > { %v2099_v20 = vpack.c.bf16 %v2091_v57, %v2091_v57  ;;  %v2328_v11 = vunpack.c.l.bf16 %v2320_v4  ;;  %v2095_v25 = vadd.f32 1.0, %v2087_v16  ;;  %v2834_v0 = vpop.eup %2833  ;;  %v2112_v7 = vunpack.c.l.bf16 %v1944_v35 }
 0xd3f   : > { %v2335_v49 = vadd.f32 1.0, %v2327_v18  ;;  %v2104_v41 = vpack.c.bf16 %v2096_v10, %v2096_v10  ;;  %v2836_v56 = vpop.eup %2835  ;;  %v2081_v6 = vpack.c.bf16 %v2834_v0, %v2834_v0  ;;  %v2090_v13 = vunpack.c.l.bf16 %v2082_v58 }
 0xd40   : > { %v2115_v15 = vunpack.c.l.bf16 %v2099_v20  ;;  %v2336_v26 = vadd.f32 1.0, %v2328_v11  ;;  %v2351_v4 = vunpack.c.l.bf16 %v2183_v5  ;;  %v1938_v18 = vmul.f32 0.5, %v3864_v30 }
 0xd41   : > { %v2343_v36 = vpack.c.bf16 %v2335_v49, %v2335_v49  ;;  %v2120_v51 = vunpack.c.l.bf16 %v2104_v41  ;;  %v2098_v16 = vadd.f32 1.0, %v2090_v13  ;;  %v1937_v10 = vmul.f32 0.5, %v3847_v44 }
 0xd42   : > { %v2123_v19 = vmul.f32 %v2115_v15, %v2107_v55  ;;  %v2344_v57 = vpack.c.bf16 %v2336_v26, %v2336_v26  ;;  %v2322_v55 = vpack.c.bf16 %v2832_v54, %v2832_v54  ;;  %v2111_v15 = vunpack.c.l.bf16 %v1943_v50 }
 0xd43   : > { %v2359_v52 = vunpack.c.l.bf16 %v2343_v36  ;;  %v2128_v39 = vmul.f32 %v2120_v51, %v2112_v7  ;;  %v2178_v2 = vmul.f32 0.5, %v3831_v62  ;;  %v1946_v26 = vpack.c.bf16 %v1938_v18, %v1938_v18 }
 0xd44   : > { %v2131_v14 = vpack.c.bf16 %v2123_v19, %v2123_v19  ;;  %v2360_v9 = vunpack.c.l.bf16 %v2344_v57  ;;  %v2321_v19 = vpack.c.bf16 %v2836_v56, %v2836_v56  ;;  %v2330_v34 = vunpack.c.l.bf16 %v2322_v55 }
 0xd45   : > { %v2136_v32 = vpack.c.bf16 %v2128_v39, %v2128_v39  ;;  %v1945_v37 = vpack.c.bf16 %v1937_v10, %v1937_v10  ;;  %v2114_v36 = vunpack.c.l.bf16 %v1946_v26 }
 0xd46   : > { %v2147_v17 = vunpack.c.l.bf16 %v2131_v14  ;;  %v2367_v14 = vmul.f32 %v2359_v52, %v2351_v4  ;;  %v2368_v45 = vmul.f32 %v2360_v9, %v2352_v28  ;;  %v2329_v1 = vunpack.c.l.bf16 %v2321_v19 }
 0xd47   : > { %v2338_v12 = vadd.f32 1.0, %v2330_v34  ;;  %v2113_v56 = vunpack.c.l.bf16 %v1945_v37 }
 0xd48   : > { %v2155_v61 = vmul.f32 %v2147_v17, %v3720_v22  ;;  %v2103_v22 = vpack.c.bf16 %v2095_v25, %v2095_v25  ;;  %v2376_v33 = vpack.c.bf16 %v2368_v45, %v2368_v45  ;;  %v2152_v25 = vunpack.c.l.bf16 %v2136_v32 }
 0xd49   : > { %v2337_v24 = vadd.f32 1.0, %v2329_v1  ;;  %v2346_v41 = vpack.c.bf16 %v2338_v12, %v2338_v12 }
 0xd4a   : > { %v2163_v46 = vpack.c.bf16 %v2155_v61, %v2155_v61  ;;  %v2119_v20 = vunpack.c.l.bf16 %v2103_v22  ;;  %v2375_v61 = vpack.c.bf16 %v2367_v14, %v2367_v14  ;;  %v2384_v22 = vunpack.c.l.bf16 %v2376_v33 }
 0xd4b   : > { %v2160_v53 = vmul.f32 %v2152_v25, %v3785_v48  ;;  %v2345_v35 = vpack.c.bf16 %v2337_v24, %v2337_v24  ;;  %v2362_v51 = vunpack.c.l.bf16 %v2346_v41  ;;  %v2838_v41 = vld [vmem:[%s2922_s14 + $0x8] sm:$0xff] }
 0xd4c   : > { %v2403_v47 = vunpack.c.l.bf16 %v2163_v46  ;;  %v2127_v43 = vmul.f32 %v2119_v20, %v2111_v15  ;;  %v2106_v46 = vpack.c.bf16 %v2098_v16, %v2098_v16  ;;  %v2383_v59 = vunpack.c.l.bf16 %v2375_v61 }
 0xd4d   : > { %v2392_v50 = vmul.f32 %v2384_v22, %v3808_v29  ;;  %v2168_v20 = vpack.c.bf16 %v2160_v53, %v2160_v53  ;;  %v2361_v31 = vunpack.c.l.bf16 %v2345_v35  ;;  %v2839_v53 = vld [vmem:[%s2922_s14 + $0x10] sm:$0xff] }
 0xd4e   : > { %v2419_v23 = vadd.f32 %v2411_v38, %v2403_v47  ;;  %v2135_v17 = vpack.c.bf16 %v2127_v43, %v2127_v43  ;;  %v2177_v38 = vmul.f32 0.5, %v3850_v63  ;;  %v2122_v54 = vunpack.c.l.bf16 %v2106_v46 }
 0xd4f   : > { %v2391_v58 = vmul.f32 %v2383_v59, %v3782_v3  ;;  %v2408_v52 = vunpack.c.l.bf16 %v2168_v20  ;;  %v2842_v20 = vld [vmem:[%s2922_s14 + $0x28] sm:$0xff] }
 0xd50   : > { %v2427_v8 = vpack.c.bf16 %v3743_v27, %v2419_v23  ;;  %v2089_v27 = vunpack.c.l.bf16 %v2081_v6  ;;  %v2151_v49 = vunpack.c.l.bf16 %v2135_v17  ;;  %v2186_v23 = vpack.c.bf16 %v2178_v2, %v2178_v2 }
 0xd51   : > { %v2130_v48 = vmul.f32 %v2122_v54, %v2114_v36  ;;  %v2400_v6 = vpack.c.bf16 %v2392_v50, %v2392_v50  ;;  %v2399_v15 = vpack.c.bf16 %v2391_v58, %v2391_v58 }
 0xd52   : > { %2504 = vmatmul.bf16.vlgmr.msrb.gmra.mxu3 %v2427_v8  ;;  %v2097_v11 = vadd.f32 1.0, %v2089_v27  ;;  %v2159_v0 = vmul.f32 %v2151_v49, %v3778_v60  ;;  %v2185_v8 = vpack.c.bf16 %v2177_v38, %v2177_v38  ;;  %v2354_v5 = vunpack.c.l.bf16 %v2186_v23  ;;  %v2837_v49 = vld [vmem:[%s2922_s14] sm:$0xff] }
 0xd53   : > { %v2138_v42 = vpack.c.bf16 %v2130_v48, %v2130_v48  ;;  %v2416_v9 = vunpack.c.l.bf16 %v2400_v6  ;;  %v2415_v19 = vunpack.c.l.bf16 %v2399_v15 }
 0xd54   : > { %v2105_v47 = vpack.c.bf16 %v2097_v11, %v2097_v11  ;;  %v2167_v7 = vpack.c.bf16 %v2159_v0, %v2159_v0  ;;  %v2353_v55 = vunpack.c.l.bf16 %v2185_v8  ;;  %v2370_v29 = vmul.f32 %v2362_v51, %v2354_v5  ;;  %v2840_v0 = vld [vmem:[%s2922_s14 + $0x18] sm:$0xff]  ;;  %v2841_v8 = vld [vmem:[%s2922_s14 + $0x20] sm:$0xff] }
 0xd55   : > { %v2424_v3 = vadd.f32 %v2416_v9, %v2408_v52  ;;  %v2154_v43 = vunpack.c.l.bf16 %v2138_v42 }
 0xd56   : > { %v2121_v57 = vunpack.c.l.bf16 %v2105_v47  ;;  %v2369_v40 = vmul.f32 %v2361_v31, %v2353_v55  ;;  %v2378_v13 = vpack.c.bf16 %v2370_v29, %v2370_v29  ;;  %v2844_v29 = vld [vmem:[%s2922_s14 + $0x38] sm:$0xff] }
 0xd57   : > { %v2162_v45 = vmul.f32 %v2154_v43, %v3831_v62 }
 0xd58   : > { %v2129_v60 = vmul.f32 %v2121_v57, %v2113_v56  ;;  %v2377_v4 = vpack.c.bf16 %v2369_v40, %v2369_v40  ;;  %v2386_v34 = vunpack.c.l.bf16 %v2378_v13 }
 0xd59   : > { %v2170_v17 = vpack.c.bf16 %v2162_v45, %v2162_v45 }
 0xd5a   : > { %v2137_v39 = vpack.c.bf16 %v2129_v60, %v2129_v60  ;;  %v2385_v32 = vunpack.c.l.bf16 %v2377_v4  ;;  %v2394_v1 = vmul.f32 %v2386_v34, %v3864_v30 }
 0xd5b   : > { %v2410_v33 = vunpack.c.l.bf16 %v2170_v17 }
 0xd5c   : > { %v2153_v27 = vunpack.c.l.bf16 %v2137_v39  ;;  %v2393_v18 = vmul.f32 %v2385_v32, %v3847_v44  ;;  %v2402_v12 = vpack.c.bf16 %v2394_v1, %v2394_v1 }
 0xd5e   : > { %v2161_v16 = vmul.f32 %v2153_v27, %v3850_v63  ;;  %v2401_v61 = vpack.c.bf16 %v2393_v18, %v2393_v18  ;;  %v2418_v25 = vunpack.c.l.bf16 %v2402_v12  ;;  %v2762_v63 = vld [vmem:[%s3959_s1 + $0x8] ss:$0 sm:$0xff] }
 0xd60   : > { %v2169_v11 = vpack.c.bf16 %v2161_v16, %v2161_v16  ;;  %v2417_v46 = vunpack.c.l.bf16 %v2401_v61  ;;  %v2426_v62 = vadd.f32 %v2418_v25, %v2410_v33 }
 0xd62   : > { %2509 = vmatmul.bf16.gmra.mxu3 %v2428_v21  ;;  %v2407_v21 = vunpack.c.l.bf16 %v2167_v7  ;;  %v2409_v10 = vunpack.c.l.bf16 %v2169_v11  ;;  %v2843_v7 = vld [vmem:[%s2922_s14 + $0x30] sm:$0xff] }
 0xd64   : > { %v2423_v28 = vadd.f32 %v2415_v19, %v2407_v21  ;;  %v2425_v2 = vadd.f32 %v2417_v46, %v2409_v10 }
 0xd66   : > { %v2429_v14 = vpack.c.bf16 %v2424_v3, %v2423_v28  ;;  %v2430_v24 = vpack.c.bf16 %v2426_v62, %v2425_v2 }
 0xd72   : > { %2514 = vmatmul.bf16.gmra.mxu3 %v2429_v14 }
 0xd82   : > { %2519 = vmatmul.bf16.gmra.mxu3 %v2430_v24 }
 0xdd5   : > { %v2505_v30 = vpop.f32.mrf.mxu3 }
 0xdd6   : > { %v2506_v44 = vadd.f32 %v2762_v63, %v2505_v30 }
 0xdd8   : > { %v2525_v26 = vadd.f32 %v2837_v49, %v2506_v44 }
 0xdda   : > { %2533 = vst.msk [vmem:[%s3929_s28] sm:$0xff] %vm352_vm0, %v2525_v26 }
 0xddd   : > { %v2507_v47 = vpop.f32.mrf.mxu3 }
 0xdde   : > { %v2508_v38 = vadd.f32 %v2762_v63, %v2507_v47 }
 0xde0   : > { %v2526_v59 = vadd.f32 %v2838_v41, %v2508_v38 }
 0xde2   : > { %2534 = vst.msk [vmem:[%s3929_s28 + $0x8] sm:$0xff] %vm352_vm0, %v2526_v59 }
 0xde5   : > { %v2510_v22 = vpop.f32.mrf.mxu3 }
 0xde6   : > { %v2511_v37 = vadd.f32 %v2762_v63, %v2510_v22 }
 0xde8   : > { %v2527_v54 = vadd.f32 %v2839_v53, %v2511_v37 }
 0xdea   : > { %2535 = vst.msk [vmem:[%s3929_s28 + $0x10] sm:$0xff] %vm352_vm0, %v2527_v54 }
 0xded   : > { %v2512_v23 = vpop.f32.mrf.mxu3 }
 0xdee   : > { %v2513_v35 = vadd.f32 %v2762_v63, %v2512_v23 }
 0xdf0   : > { %v2528_v50 = vadd.f32 %v2840_v0, %v2513_v35 }
 0xdf2   : > { %2536 = vst.msk [vmem:[%s3929_s28 + $0x18] sm:$0xff] %vm352_vm0, %v2528_v50 }
 0xdf5   : > { %v2515_v36 = vpop.f32.mrf.mxu3 }
 0xdf6   : > { %v2516_v57 = vadd.f32 %v2762_v63, %v2515_v36 }
 0xdf8   : > { %v2529_v51 = vadd.f32 %v2841_v8, %v2516_v57 }
 0xdfa   : > { %2537 = vst.msk [vmem:[%s3929_s28 + $0x20] sm:$0xff] %vm352_vm0, %v2529_v51 }
 0xdfd   : > { %v2517_v58 = vpop.f32.mrf.mxu3 }
 0xdfe   : > { %v2518_v56 = vadd.f32 %v2762_v63, %v2517_v58 }
 0xe00   : > { %v2530_v48 = vadd.f32 %v2842_v20, %v2518_v56 }
 0xe02   : > { %2538 = vst.msk [vmem:[%s3929_s28 + $0x28] sm:$0xff] %vm352_vm0, %v2530_v48 }
 0xe05   : > { %v2520_v5 = vpop.f32.mrf.mxu3 }
 0xe06   : > { %v2521_v31 = vadd.f32 %v2762_v63, %v2520_v5 }
 0xe08   : > { %v2531_v6 = vadd.f32 %v2843_v7, %v2521_v31 }
 0xe0a   : > { %2539 = vst.msk [vmem:[%s3929_s28 + $0x30] sm:$0xff] %vm352_vm0, %v2531_v6 }
 0xe0d   : > { %v2522_v60 = vpop.f32.mrf.mxu3 }
 0xe0e   : > { %v2523_v55 = vadd.f32 %v2762_v63, %v2522_v60 }
 0xe10   : > { %v2532_v15 = vadd.f32 %v2844_v29, %v2523_v55 }
 0xe12   : > { %2540 = vst.msk [vmem:[%s3929_s28 + $0x38] sm:$0xff] %vm352_vm0, %v2532_v15 }
 0xe13 PF: > { %s19_s30 = sadd.s32 1, %s2851_s30  }
 0xe14   : > { %p16_p4 = scmp.ge.s32.totalorder %s19_s30, 4  }
 0xe16   :  { %18 = sbr.rel (!%p16_p4) target bundleno = 1 (0x1), region = 86 }

</bundles_post_ra>
